<compile_context>
chip_gen: v6e
topology: v6e:2x2x1
jax: 0.10.0
libtpu: 0.0.40
codegen_flags: <defaults>
</compile_context>

<pallas_src>
import functools

import jax
import jax.numpy as jnp
from jax.experimental import pallas as pl
from jax.experimental.pallas import tpu as pltpu

# ----------------------------- model config ---------------------------------
B = 2            # batch
C = 3            # image channels
IMG = 16         # image height/width
PATCH = 8        # ViT patch size -> 2x2 = 4 patches
DV = 32          # CLIP vision width
N_HEADS_V = 2
CLIP_LAYERS = 2
CLIP_DIM = 32    # CLIP image-feature dim (512 in the real model)
D_GPT = 32       # GPT-2 hidden (768 in the real model)
N_HEADS_G = 4
GPT_LAYERS = 2
VOCAB = 128
MAX_POS = 16
T = 8            # text sequence length (combined seq = T + 1)
MLP_MULT = 4


# ------------------------- in-kernel math helpers ----------------------------
def _layernorm(x, g, b, eps=1e-5):
    mu = jnp.mean(x, axis=-1, keepdims=True)
    var = jnp.mean((x - mu) ** 2, axis=-1, keepdims=True)
    return (x - mu) * jax.lax.rsqrt(var + eps) * g + b


def _gelu_new(x):        # GPT-2 "gelu_new" (tanh approximation)
    return 0.5 * x * (1.0 + jnp.tanh(
        jnp.sqrt(2.0 / jnp.pi) * (x + 0.044715 * x * x * x)))


def _quick_gelu(x):      # CLIP QuickGELU: x * sigmoid(1.702 x)
    return x * (1.0 / (1.0 + jnp.exp(-1.702 * x)))


def _dot(a, b):
    return jnp.dot(a, b, preferred_element_type=jnp.float32)


def _dot_bt(a, b):       # a @ b.T without materializing a transpose
    return jax.lax.dot_general(a, b, (((1,), (1,)), ((), ())),
                               preferred_element_type=jnp.float32)


# -------------------- shared transformer layer body --------------------------
def _transformer_layer(resid_ref, attn_ref, wqkv, bqkv, wproj, bproj,
                       w1, b1, w2, b2, ln1g, ln1b, ln2g, ln2b,
                       *, n_heads, causal, batch, seq, activation):
    """One pre-LN transformer layer, updating the VMEM-resident residual."""
    D = resid_ref.shape[-1]
    dh = D // n_heads
    scale = 1.0 / float(dh) ** 0.5

    x = resid_ref[...]                                        # (B*S, D) f32

    # ---- LN1 + fused QKV projection (single lane-packed slab) ----
    h = _layernorm(x, ln1g, ln1b)
    qkv = _dot(h, wqkv) + bqkv                                # (B*S, 3D)

    # ---- attention: heads are static lane-contiguous slices of the slab ----
    if causal:
        qi = jax.lax.broadcasted_iota(jnp.int32, (seq, seq), 0)
        ki = jax.lax.broadcasted_iota(jnp.int32, (seq, seq), 1)
        neg = jnp.where(ki <= qi, 0.0, -1e9)
    for b in range(batch):
        r0 = b * seq
        for hh in range(n_heads):
            c0 = hh * dh
            q = qkv[r0:r0 + seq, c0:c0 + dh]
            k = qkv[r0:r0 + seq, D + c0:D + c0 + dh]
            v = qkv[r0:r0 + seq, 2 * D + c0:2 * D + c0 + dh]
            s = _dot_bt(q, k) * scale                         # (S, S)
            if causal:
                s = s + neg
            m = jnp.max(s, axis=-1, keepdims=True)
            p = jnp.exp(s - m)
            p = p * pl.reciprocal(jnp.sum(p, axis=-1, keepdims=True), approx=True)
            attn_ref[r0:r0 + seq, c0:c0 + dh] = _dot(p, v)

    x = x + (_dot(attn_ref[...], wproj) + bproj)

    # ---- LN2 + MLP ----
    h = _layernorm(x, ln2g, ln2b)
    h = _dot(h, w1) + b1
    h = _quick_gelu(h) if activation == "quick_gelu" else _gelu_new(h)
    h = _dot(h, w2) + b2
    resid_ref[...] = x + h


# ---------- fused CLIP visual encoder (embed + L layers + head + proj) --------
def _clip_encoder_kernel(patch_ref, pw_ref, pb_ref, cls_ref, pos_ref,
                         lnpre_g_ref, lnpre_b_ref,
                         wqkv_ref, bqkv_ref, wproj_ref, bproj_ref,
                         w1_ref, b1_ref, w2_ref, b2_ref,
                         ln1g_ref, ln1b_ref, ln2g_ref, ln2b_ref,
                         lnpost_g_ref, lnpost_b_ref, vis_w_ref,
                         projw_ref, projb_ref,
                         tok_ref, resid_ref, attn_ref,
                         *, n_heads, batch, n_patches):
    l = pl.program_id(0)
    seq = n_patches + 1

    # Layer 0: patch matmul + cls/pos + ln_pre seeds the VMEM residual stream.
    @pl.when(l == 0)
    def _():
        xp = _dot(patch_ref[...], pw_ref[...]) + pb_ref[...]      # (B*NP, DV)
        g = lnpre_g_ref[...]
        bb = lnpre_b_ref[...]
        cls_row = _layernorm(cls_ref[...] + pos_ref[0:1, :], g, bb)   # (1, DV)
        pos_p = pos_ref[1:, :]                                        # (NP, DV)
        for b in range(batch):
            xb = _layernorm(xp[b * n_patches:(b + 1) * n_patches] + pos_p, g, bb)
            resid_ref[b * seq:b * seq + 1, :] = cls_row
            resid_ref[b * seq + 1:(b + 1) * seq, :] = xb

    _transformer_layer(resid_ref, attn_ref,
                       wqkv_ref[0], bqkv_ref[0], wproj_ref[0], bproj_ref[0],
                       w1_ref[0], b1_ref[0], w2_ref[0], b2_ref[0],
                       ln1g_ref[0], ln1b_ref[0], ln2g_ref[0], ln2b_ref[0],
                       n_heads=n_heads, causal=False, batch=batch, seq=seq,
                       activation="quick_gelu")

    # Last layer: ln_post(cls) + visual_proj (no bias) + ProjectionLayer.
    # TODO(synk): torch.no_grad() around CLIP affects backward only; the fused
    # forward here is identical to CLIP-features -> ProjectionLayer.
    @pl.when(l == pl.num_programs(0) - 1)
    def _():
        g = lnpost_g_ref[...]
        bb = lnpost_b_ref[...]
        for b in range(batch):
            cls = resid_ref[b * seq:b * seq + 1, :]                   # (1, DV)
            h = _layernorm(cls, g, bb)
            feat = _dot(h, vis_w_ref[...])                            # no-bias path
            tok_ref[b:b + 1, :] = (_dot(feat, projw_ref[...]) + projb_ref[...]
                                   ).astype(tok_ref.dtype)


def clip_encode(patches, clip_p, proj_w, proj_b, *, batch, n_patches):
    M, K = patches.shape
    dv = clip_p["patch_w"].shape[-1]
    blk = clip_p["blocks"]
    L = blk["w_qkv"].shape[0]
    cd = clip_p["visual_proj"].shape[-1]
    dg = proj_w.shape[-1]
    seq = n_patches + 1
    Hm = MLP_MULT * dv

    c2 = lambda l: (0, 0)        # same block every layer (fetched once)
    c3 = lambda l: (l, 0, 0)     # select this layer's weight slice

    in_specs = [
        pl.BlockSpec((M, K), c2),            # patches
        pl.BlockSpec((K, dv), c2),           # patch_w
        pl.BlockSpec((1, dv), c2),           # patch_b
        pl.BlockSpec((1, dv), c2),           # cls
        pl.BlockSpec((seq, dv), c2),         # pos
        pl.BlockSpec((1, dv), c2),           # ln_pre_g
        pl.BlockSpec((1, dv), c2),           # ln_pre_b
        pl.BlockSpec((1, dv, 3 * dv), c3),   # w_qkv
        pl.BlockSpec((1, 1, 3 * dv), c3),    # b_qkv
        pl.BlockSpec((1, dv, dv), c3),       # w_proj
        pl.BlockSpec((1, 1, dv), c3),        # b_proj
        pl.BlockSpec((1, dv, Hm), c3),       # mlp_w1
        pl.BlockSpec((1, 1, Hm), c3),        # mlp_b1
        pl.BlockSpec((1, Hm, dv), c3),       # mlp_w2
        pl.BlockSpec((1, 1, dv), c3),        # mlp_b2
        pl.BlockSpec((1, 1, dv), c3),        # ln1_g
        pl.BlockSpec((1, 1, dv), c3),        # ln1_b
        pl.BlockSpec((1, 1, dv), c3),        # ln2_g
        pl.BlockSpec((1, 1, dv), c3),        # ln2_b
        pl.BlockSpec((1, dv), c2),           # ln_post_g
        pl.BlockSpec((1, dv), c2),           # ln_post_b
        pl.BlockSpec((dv, cd), c2),          # visual_proj
        pl.BlockSpec((cd, dg), c2),          # proj_w
        pl.BlockSpec((1, dg), c2),           # proj_b
    ]
    return pl.pallas_call(
        functools.partial(_clip_encoder_kernel, n_heads=N_HEADS_V,
                          batch=batch, n_patches=n_patches),
        out_shape=jax.ShapeDtypeStruct((batch, dg), jnp.float32),
        grid=(L,),
        in_specs=in_specs,
        out_specs=pl.BlockSpec((batch, dg), c2),
        scratch_shapes=[pltpu.VMEM((batch * seq, dv), jnp.float32),   # residual
                        pltpu.VMEM((batch * seq, dv), jnp.float32)],  # attn out
        compiler_params=pltpu.CompilerParams(
            dimension_semantics=("arbitrary",)),   # sequential layer carry
    )(patches, clip_p["patch_w"], clip_p["patch_b"], clip_p["cls"],
      clip_p["pos"], clip_p["ln_pre_g"], clip_p["ln_pre_b"],
      blk["w_qkv"], blk["b_qkv"], blk["w_proj"], blk["b_proj"],
      blk["mlp_w1"], blk["mlp_b1"], blk["mlp_w2"], blk["mlp_b2"],
      blk["ln1_g"], blk["ln1_b"], blk["ln2_g"], blk["ln2_b"],
      clip_p["ln_post_g"], clip_p["ln_post_b"], clip_p["visual_proj"],
      proj_w, proj_b)


# --------------- fused GPT-2 stack + ln_f + tied-wte LM head ------------------
def _gpt_lm_kernel(x_ref, wqkv_ref, bqkv_ref, wproj_ref, bproj_ref,
                   w1_ref, b1_ref, w2_ref, b2_ref,
                   ln1g_ref, ln1b_ref, ln2g_ref, ln2b_ref,
                   lnf_g_ref, lnf_b_ref, wte_ref,
                   logits_ref, resid_ref, attn_ref,
                   *, n_heads, batch, seq):
    l = pl.program_id(0)

    @pl.when(l == 0)
    def _():
        resid_ref[...] = x_ref[...]

    _transformer_layer(resid_ref, attn_ref,
                       wqkv_ref[0], bqkv_ref[0], wproj_ref[0], bproj_ref[0],
                       w1_ref[0], b1_ref[0], w2_ref[0], b2_ref[0],
                       ln1g_ref[0], ln1b_ref[0], ln2g_ref[0], ln2b_ref[0],
                       n_heads=n_heads, causal=True, batch=batch, seq=seq,
                       activation="gelu_new")

    # Last layer: ln_f + tied-wte contraction (A @ wte^T, no transpose
    # materialized; VOCAB=128 keeps the logits lane-dense).
    @pl.when(l == pl.num_programs(0) - 1)
    def _():
        h = _layernorm(resid_ref[...], lnf_g_ref[...], lnf_b_ref[...])
        logits_ref[...] = _dot_bt(h, wte_ref[...]).astype(logits_ref.dtype)
    # TODO(synk): at real scale (VOCAB~50k, D=768) the LM head needs a tiled
    # M/N/K grid with an f32 VMEM accumulator and bf16 MXU inputs.


def gpt_lm(x, gpt_p, *, batch, seq):
    M, D = x.shape
    blk = gpt_p["blocks"]
    L = blk["w_qkv"].shape[0]
    Hm = blk["mlp_w1"].shape[-1]
    V = gpt_p["wte"].shape[0]

    c2 = lambda l: (0, 0)
    c3 = lambda l: (l, 0, 0)

    in_specs = [
        pl.BlockSpec((M, D), c2),            # combined embeddings (+pos)
        pl.BlockSpec((1, D, 3 * D), c3),
        pl.BlockSpec((1, 1, 3 * D), c3),
        pl.BlockSpec((1, D, D), c3),
        pl.BlockSpec((1, 1, D), c3),
        pl.BlockSpec((1, D, Hm), c3),
        pl.BlockSpec((1, 1, Hm), c3),
        pl.BlockSpec((1, Hm, D), c3),
        pl.BlockSpec((1, 1, D), c3),
        pl.BlockSpec((1, 1, D), c3),
        pl.BlockSpec((1, 1, D), c3),
        pl.BlockSpec((1, 1, D), c3),
        pl.BlockSpec((1, 1, D), c3),
        pl.BlockSpec((1, D), c2),            # ln_f_g
        pl.BlockSpec((1, D), c2),            # ln_f_b
        pl.BlockSpec((V, D), c2),            # wte (tied LM head, fetched once)
    ]
    return pl.pallas_call(
        functools.partial(_gpt_lm_kernel, n_heads=N_HEADS_G,
                          batch=batch, seq=seq),
        out_shape=jax.ShapeDtypeStruct((M, V), jnp.float32),
        grid=(L,),
        in_specs=in_specs,
        out_specs=pl.BlockSpec((M, V), c2),
        scratch_shapes=[pltpu.VMEM((M, D), jnp.float32),     # residual stream
                        pltpu.VMEM((M, D), jnp.float32)],    # attn out
        compiler_params=pltpu.CompilerParams(
            dimension_semantics=("arbitrary",)),
    )(x, blk["w_qkv"], blk["b_qkv"], blk["w_proj"], blk["b_proj"],
      blk["mlp_w1"], blk["mlp_b1"], blk["mlp_w2"], blk["mlp_b2"],
      blk["ln1_g"], blk["ln1_b"], blk["ln2_g"], blk["ln2_b"],
      gpt_p["ln_f_g"], gpt_p["ln_f_b"], gpt_p["wte"])


# ------------------------------ model forward --------------------------------
def combined_model(image, input_ids, params, attention_mask=None):
    """Forward of CombinedModel: LM logits over [image_token ; text tokens]."""
    # TODO(synk): attention_mask padding path not implemented (call passes None).
    clip_p = params["clip"]
    gpt_p = params["gpt2"]

    Bb, Cc, Hh, Ww = image.shape
    gh, gw = Hh // PATCH, Ww // PATCH
    n_patches = gh * gw

    # NCHW -> (B*NP, C*P*P); flatten order matches a stride-P conv2d weight
    # flattened as (C, kh, kw).  Pure layout glue, stays in JAX.
    patches = (image.reshape(Bb, Cc, gh, PATCH, gw, PATCH)
                    .transpose(0, 2, 4, 1, 3, 5)
                    .reshape(Bb * n_patches, Cc * PATCH * PATCH))

    # Fused CLIP visual encoder + ProjectionLayer -> one image token per sample.
    img_tok = clip_encode(patches, clip_p, params["proj_w"], params["proj_b"],
                          batch=Bb, n_patches=n_patches)           # (B, D_GPT)

    tok = gpt_p["wte"][input_ids]                                  # gather (glue)
    combined = jnp.concatenate([img_tok[:, None, :], tok], axis=1) # (B, T+1, D)
    S = combined.shape[1]
    x = (combined + gpt_p["wpe"][:S][None]).reshape(Bb * S, D_GPT)

    logits = gpt_lm(x, gpt_p, batch=Bb, seq=S)                     # (B*S, VOCAB)
    return logits.reshape(Bb, S, VOCAB)


# ------------------------------ parameter init -------------------------------
def _dense(key, fan_in, fan_out, std=0.02):
    kw, kb = jax.random.split(key)
    return (jax.random.normal(kw, (fan_in, fan_out), jnp.float32) * std,
            jax.random.normal(kb, (fan_out,), jnp.float32) * std)


def _stacked_blocks(key, n_layers, d, mlp_mult=MLP_MULT):
    keys = jax.random.split(key, n_layers)
    cols = {k: [] for k in ("w_qkv", "b_qkv", "w_proj", "b_proj",
                            "mlp_w1", "mlp_b1", "mlp_w2", "mlp_b2")}
    for k in keys:
        k0, k1, k2, k3 = jax.random.split(k, 4)
        wq, bq = _dense(k0, d, 3 * d)
        wp, bp = _dense(k1, d, d)
        w1, b1 = _dense(k2, d, mlp_mult * d)
        w2, b2 = _dense(k3, mlp_mult * d, d)
        cols["w_qkv"].append(wq); cols["b_qkv"].append(bq[None])
        cols["w_proj"].append(wp); cols["b_proj"].append(bp[None])
        cols["mlp_w1"].append(w1); cols["mlp_b1"].append(b1[None])
        cols["mlp_w2"].append(w2); cols["mlp_b2"].append(b2[None])
    blocks = {k: jnp.stack(v) for k, v in cols.items()}
    blocks.update(
        ln1_g=jnp.ones((n_layers, 1, d), jnp.float32),
        ln1_b=jnp.zeros((n_layers, 1, d), jnp.float32),
        ln2_g=jnp.ones((n_layers, 1, d), jnp.float32),
        ln2_b=jnp.zeros((n_layers, 1, d), jnp.float32),
    )
    return blocks


def init_params(key):
    kc, kg, kp = jax.random.split(key, 3)

    # CLIP visual encoder
    kcs = jax.random.split(kc, 5)
    n_patches = (IMG // PATCH) ** 2
    patch_w, patch_b = _dense(kcs[0], C * PATCH * PATCH, DV)
    clip = dict(
        patch_w=patch_w, patch_b=patch_b[None],
        cls=jax.random.normal(kcs[1], (1, DV), jnp.float32) * 0.02,
        pos=jax.random.normal(kcs[2], (n_patches + 1, DV), jnp.float32) * 0.02,
        ln_pre_g=jnp.ones((1, DV), jnp.float32), ln_pre_b=jnp.zeros((1, DV), jnp.float32),
        ln_post_g=jnp.ones((1, DV), jnp.float32), ln_post_b=jnp.zeros((1, DV), jnp.float32),
        visual_proj=jax.random.normal(kcs[3], (DV, CLIP_DIM), jnp.float32) * 0.02,
        blocks=_stacked_blocks(kcs[4], CLIP_LAYERS, DV),
    )

    # GPT-2
    kgs = jax.random.split(kg, 3)
    gpt2 = dict(
        wte=jax.random.normal(kgs[0], (VOCAB, D_GPT), jnp.float32) * 0.02,
        wpe=jax.random.normal(kgs[1], (MAX_POS, D_GPT), jnp.float32) * 0.02,
        ln_f_g=jnp.ones((1, D_GPT), jnp.float32), ln_f_b=jnp.zeros((1, D_GPT), jnp.float32),
        blocks=_stacked_blocks(kgs[2], GPT_LAYERS, D_GPT),
    )

    # ProjectionLayer(clip_dim -> gpt2_dim)
    proj_w, proj_b = _dense(kp, CLIP_DIM, D_GPT)
    return dict(clip=clip, gpt2=gpt2, proj_w=proj_w, proj_b=proj_b[None])


# ----------------------------------- main ------------------------------------
if __name__ == "__main__":
    key = jax.random.PRNGKey(0)
    k_img, k_ids, k_par = jax.random.split(key, 3)

    params = init_params(k_par)
    image = jax.random.normal(k_img, (B, C, IMG, IMG), jnp.float32)      # NCHW
    input_ids = jax.random.randint(k_ids, (B, T), 0, VOCAB)

    fwd = jax.jit(combined_model)
    logits = jax.block_until_ready(fwd(image, input_ids, params))

    assert logits.shape == (B, T + 1, VOCAB), logits.shape
    assert bool(jnp.all(jnp.isfinite(logits)))
    print("KERNEL_OK")
</pallas_src>

<mosaic_0001>
module attributes {stable_mosaic.version = 11 : i64} {
  func.func @_clip_encoder_kernel(%arg0: i32, %arg1: memref<8x192xf32, #tpu.memory_space<vmem>>, %arg2: memref<192x32xf32, #tpu.memory_space<vmem>>, %arg3: memref<1x32xf32, #tpu.memory_space<vmem>>, %arg4: memref<1x32xf32, #tpu.memory_space<vmem>>, %arg5: memref<5x32xf32, #tpu.memory_space<vmem>>, %arg6: memref<1x32xf32, #tpu.memory_space<vmem>>, %arg7: memref<1x32xf32, #tpu.memory_space<vmem>>, %arg8: memref<1x32x96xf32, #tpu.memory_space<vmem>>, %arg9: memref<1x1x96xf32, #tpu.memory_space<vmem>>, %arg10: memref<1x32x32xf32, #tpu.memory_space<vmem>>, %arg11: memref<1x1x32xf32, #tpu.memory_space<vmem>>, %arg12: memref<1x32x128xf32, #tpu.memory_space<vmem>>, %arg13: memref<1x1x128xf32, #tpu.memory_space<vmem>>, %arg14: memref<1x128x32xf32, #tpu.memory_space<vmem>>, %arg15: memref<1x1x32xf32, #tpu.memory_space<vmem>>, %arg16: memref<1x1x32xf32, #tpu.memory_space<vmem>>, %arg17: memref<1x1x32xf32, #tpu.memory_space<vmem>>, %arg18: memref<1x1x32xf32, #tpu.memory_space<vmem>>, %arg19: memref<1x1x32xf32, #tpu.memory_space<vmem>>, %arg20: memref<1x32xf32, #tpu.memory_space<vmem>>, %arg21: memref<1x32xf32, #tpu.memory_space<vmem>>, %arg22: memref<32x32xf32, #tpu.memory_space<vmem>>, %arg23: memref<32x32xf32, #tpu.memory_space<vmem>>, %arg24: memref<1x32xf32, #tpu.memory_space<vmem>>, %arg25: memref<2x32xf32, #tpu.memory_space<vmem>>, %arg26: memref<10x32xf32, #tpu.memory_space<vmem>>, %arg27: memref<10x32xf32, #tpu.memory_space<vmem>>) attributes {dimension_semantics = [#tpu.dimension_semantics<arbitrary>], iteration_bounds = array<i64: 2>, scalar_prefetch = 0 : i64, scratch_operands = 2 : i64, tpu.core_type = #tpu.core_type<tc>, window_params = [{pipeline_mode = #tpu.pipeline_mode<synchronous>, transform_indices = @transform_0, window_bounds = array<i64: 8, 192>}, {pipeline_mode = #tpu.pipeline_mode<synchronous>, transform_indices = @transform_1, window_bounds = array<i64: 192, 32>}, {pipeline_mode = #tpu.pipeline_mode<synchronous>, transform_indices = @transform_2, window_bounds = array<i64: 1, 32>}, {pipeline_mode = #tpu.pipeline_mode<synchronous>, transform_indices = @transform_3, window_bounds = array<i64: 1, 32>}, {pipeline_mode = #tpu.pipeline_mode<synchronous>, transform_indices = @transform_4, window_bounds = array<i64: 5, 32>}, {pipeline_mode = #tpu.pipeline_mode<synchronous>, transform_indices = @transform_5, window_bounds = array<i64: 1, 32>}, {pipeline_mode = #tpu.pipeline_mode<synchronous>, transform_indices = @transform_6, window_bounds = array<i64: 1, 32>}, {transform_indices = @transform_7, window_bounds = array<i64: 1, 32, 96>}, {transform_indices = @transform_8, window_bounds = array<i64: 1, 1, 96>}, {transform_indices = @transform_9, window_bounds = array<i64: 1, 32, 32>}, {transform_indices = @transform_10, window_bounds = array<i64: 1, 1, 32>}, {transform_indices = @transform_11, window_bounds = array<i64: 1, 32, 128>}, {transform_indices = @transform_12, window_bounds = array<i64: 1, 1, 128>}, {transform_indices = @transform_13, window_bounds = array<i64: 1, 128, 32>}, {transform_indices = @transform_14, window_bounds = array<i64: 1, 1, 32>}, {transform_indices = @transform_15, window_bounds = array<i64: 1, 1, 32>}, {transform_indices = @transform_16, window_bounds = array<i64: 1, 1, 32>}, {transform_indices = @transform_17, window_bounds = array<i64: 1, 1, 32>}, {transform_indices = @transform_18, window_bounds = array<i64: 1, 1, 32>}, {pipeline_mode = #tpu.pipeline_mode<synchronous>, transform_indices = @transform_19, window_bounds = array<i64: 1, 32>}, {pipeline_mode = #tpu.pipeline_mode<synchronous>, transform_indices = @transform_20, window_bounds = array<i64: 1, 32>}, {pipeline_mode = #tpu.pipeline_mode<synchronous>, transform_indices = @transform_21, window_bounds = array<i64: 32, 32>}, {pipeline_mode = #tpu.pipeline_mode<synchronous>, transform_indices = @transform_22, window_bounds = array<i64: 32, 32>}, {pipeline_mode = #tpu.pipeline_mode<synchronous>, transform_indices = @transform_23, window_bounds = array<i64: 1, 32>}, {pipeline_mode = #tpu.pipeline_mode<synchronous>, transform_indices = @transform_24, window_bounds = array<i64: 2, 32>}]} {
    %c0_i32 = arith.constant 0 : i32
    %0 = arith.cmpi eq, %arg0, %c0_i32 : i32
    %1 = arith.extui %0 : i1 to i32
    %c0_i32_0 = arith.constant 0 : i32
    %2 = arith.cmpi ne, %1, %c0_i32_0 : i32
    scf.if %2 {
      %c0_85 = arith.constant 0 : index
      %c0_86 = arith.constant 0 : index
      %171 = vector.load %arg1[%c0_85, %c0_86] : memref<8x192xf32, #tpu.memory_space<vmem>>, vector<8x192xf32>
      %c0_87 = arith.constant 0 : index
      %c0_88 = arith.constant 0 : index
      %172 = vector.load %arg2[%c0_87, %c0_88] : memref<192x32xf32, #tpu.memory_space<vmem>>, vector<192x32xf32>
      %cst_89 = arith.constant dense<0.000000e+00> : vector<8x32xf32>
      %173 = tpu.matmul %171, %172, %cst_89 {dimension_numbers = #tpu.dot_dimension_numbers<[1], [0], [0], [1], [0, 0, 1, 1], [], []>} : vector<8x192xf32>, vector<192x32xf32>, vector<8x32xf32> -> vector<8x32xf32>
      %c0_90 = arith.constant 0 : index
      %c0_91 = arith.constant 0 : index
      %174 = vector.load %arg3[%c0_90, %c0_91] : memref<1x32xf32, #tpu.memory_space<vmem>>, vector<1x32xf32>
      %175 = vector.broadcast %174 : vector<1x32xf32> to vector<8x32xf32>
      %176 = arith.addf %173, %175 : vector<8x32xf32>
      %c0_92 = arith.constant 0 : index
      %c0_93 = arith.constant 0 : index
      %177 = vector.load %arg6[%c0_92, %c0_93] : memref<1x32xf32, #tpu.memory_space<vmem>>, vector<1x32xf32>
      %c0_94 = arith.constant 0 : index
      %c0_95 = arith.constant 0 : index
      %178 = vector.load %arg7[%c0_94, %c0_95] : memref<1x32xf32, #tpu.memory_space<vmem>>, vector<1x32xf32>
      %c0_96 = arith.constant 0 : index
      %c0_97 = arith.constant 0 : index
      %179 = vector.load %arg4[%c0_96, %c0_97] : memref<1x32xf32, #tpu.memory_space<vmem>>, vector<1x32xf32>
      %c0_98 = arith.constant 0 : index
      %c0_99 = arith.constant 0 : index
      %180 = vector.load %arg5[%c0_98, %c0_99] : memref<5x32xf32, #tpu.memory_space<vmem>>, vector<1x32xf32>
      %181 = arith.addf %179, %180 : vector<1x32xf32>
      %cst_100 = arith.constant dense<0.000000e+00> : vector<1xf32>
      %182 = vector.multi_reduction <add>, %181, %cst_100 [1] : vector<1x32xf32> to vector<1xf32>
      %183 = vector.shape_cast %182 : vector<1xf32> to vector<1x1xf32>
      %cst_101 = arith.constant 3.200000e+01 : f32
      %184 = vector.broadcast %cst_101 : f32 to vector<1x1xf32>
      %185 = arith.divf %183, %184 : vector<1x1xf32>
      %186 = vector.broadcast %185 : vector<1x1xf32> to vector<1x32xf32>
      %187 = arith.subf %181, %186 : vector<1x32xf32>
      %188 = arith.mulf %187, %187 : vector<1x32xf32>
      %cst_102 = arith.constant dense<0.000000e+00> : vector<1xf32>
      %189 = vector.multi_reduction <add>, %188, %cst_102 [1] : vector<1x32xf32> to vector<1xf32>
      %190 = vector.shape_cast %189 : vector<1xf32> to vector<1x1xf32>
      %cst_103 = arith.constant 3.200000e+01 : f32
      %191 = vector.broadcast %cst_103 : f32 to vector<1x1xf32>
      %192 = arith.divf %190, %191 : vector<1x1xf32>
      %193 = vector.broadcast %185 : vector<1x1xf32> to vector<1x32xf32>
      %194 = arith.subf %181, %193 : vector<1x32xf32>
      %cst_104 = arith.constant 9.99999974E-6 : f32
      %195 = vector.broadcast %cst_104 : f32 to vector<1x1xf32>
      %196 = arith.addf %192, %195 : vector<1x1xf32>
      %197 = math.rsqrt %196 : vector<1x1xf32>
      %198 = vector.broadcast %197 : vector<1x1xf32> to vector<1x32xf32>
      %199 = arith.mulf %194, %198 : vector<1x32xf32>
      %200 = arith.mulf %199, %177 : vector<1x32xf32>
      %201 = arith.addf %200, %178 : vector<1x32xf32>
      %c1 = arith.constant 1 : index
      %c0_105 = arith.constant 0 : index
      %202 = vector.load %arg5[%c1, %c0_105] : memref<5x32xf32, #tpu.memory_space<vmem>>, vector<4x32xf32>
      %203 = vector.extract_strided_slice %176 {offsets = [0, 0], sizes = [4, 32], strides = [1, 1]} : vector<8x32xf32> to vector<4x32xf32>
      %204 = arith.addf %203, %202 : vector<4x32xf32>
      %cst_106 = arith.constant dense<0.000000e+00> : vector<4xf32>
      %205 = vector.multi_reduction <add>, %204, %cst_106 [1] : vector<4x32xf32> to vector<4xf32>
      %206 = vector.shape_cast %205 : vector<4xf32> to vector<4x1xf32>
      %cst_107 = arith.constant 3.200000e+01 : f32
      %207 = vector.broadcast %cst_107 : f32 to vector<4x1xf32>
      %208 = arith.divf %206, %207 : vector<4x1xf32>
      %209 = vector.broadcast %208 : vector<4x1xf32> to vector<4x32xf32>
      %210 = arith.subf %204, %209 : vector<4x32xf32>
      %211 = arith.mulf %210, %210 : vector<4x32xf32>
      %cst_108 = arith.constant dense<0.000000e+00> : vector<4xf32>
      %212 = vector.multi_reduction <add>, %211, %cst_108 [1] : vector<4x32xf32> to vector<4xf32>
      %213 = vector.shape_cast %212 : vector<4xf32> to vector<4x1xf32>
      %cst_109 = arith.constant 3.200000e+01 : f32
      %214 = vector.broadcast %cst_109 : f32 to vector<4x1xf32>
      %215 = arith.divf %213, %214 : vector<4x1xf32>
      %216 = vector.broadcast %208 : vector<4x1xf32> to vector<4x32xf32>
      %217 = arith.subf %204, %216 : vector<4x32xf32>
      %cst_110 = arith.constant 9.99999974E-6 : f32
      %218 = vector.broadcast %cst_110 : f32 to vector<4x1xf32>
      %219 = arith.addf %215, %218 : vector<4x1xf32>
      %220 = math.rsqrt %219 : vector<4x1xf32>
      %221 = vector.broadcast %220 : vector<4x1xf32> to vector<4x32xf32>
      %222 = arith.mulf %217, %221 : vector<4x32xf32>
      %223 = vector.broadcast %177 : vector<1x32xf32> to vector<4x32xf32>
      %224 = arith.mulf %222, %223 : vector<4x32xf32>
      %225 = vector.broadcast %178 : vector<1x32xf32> to vector<4x32xf32>
      %226 = arith.addf %224, %225 : vector<4x32xf32>
      %c0_111 = arith.constant 0 : index
      %c0_112 = arith.constant 0 : index
      %227 = vector.load %arg26[%c0_111, %c0_112] : memref<10x32xf32, #tpu.memory_space<vmem>>, vector<1x32xf32>
      tpu.vector_store %arg26[%c0_111, %c0_112], %201 {strides = array<i32>} : memref<10x32xf32, #tpu.memory_space<vmem>>, vector<1x32xf32>,
      %c1_113 = arith.constant 1 : index
      %c0_114 = arith.constant 0 : index
      %228 = vector.load %arg26[%c1_113, %c0_114] : memref<10x32xf32, #tpu.memory_space<vmem>>, vector<4x32xf32>
      tpu.vector_store %arg26[%c1_113, %c0_114], %226 {strides = array<i32>} : memref<10x32xf32, #tpu.memory_space<vmem>>, vector<4x32xf32>,
      %229 = vector.extract_strided_slice %176 {offsets = [4, 0], sizes = [4, 32], strides = [1, 1]} : vector<8x32xf32> to vector<4x32xf32>
      %230 = arith.addf %229, %202 : vector<4x32xf32>
      %cst_115 = arith.constant dense<0.000000e+00> : vector<4xf32>
      %231 = vector.multi_reduction <add>, %230, %cst_115 [1] : vector<4x32xf32> to vector<4xf32>
      %232 = vector.shape_cast %231 : vector<4xf32> to vector<4x1xf32>
      %cst_116 = arith.constant 3.200000e+01 : f32
      %233 = vector.broadcast %cst_116 : f32 to vector<4x1xf32>
      %234 = arith.divf %232, %233 : vector<4x1xf32>
      %235 = vector.broadcast %234 : vector<4x1xf32> to vector<4x32xf32>
      %236 = arith.subf %230, %235 : vector<4x32xf32>
      %237 = arith.mulf %236, %236 : vector<4x32xf32>
      %cst_117 = arith.constant dense<0.000000e+00> : vector<4xf32>
      %238 = vector.multi_reduction <add>, %237, %cst_117 [1] : vector<4x32xf32> to vector<4xf32>
      %239 = vector.shape_cast %238 : vector<4xf32> to vector<4x1xf32>
      %cst_118 = arith.constant 3.200000e+01 : f32
      %240 = vector.broadcast %cst_118 : f32 to vector<4x1xf32>
      %241 = arith.divf %239, %240 : vector<4x1xf32>
      %242 = vector.broadcast %234 : vector<4x1xf32> to vector<4x32xf32>
      %243 = arith.subf %230, %242 : vector<4x32xf32>
      %cst_119 = arith.constant 9.99999974E-6 : f32
      %244 = vector.broadcast %cst_119 : f32 to vector<4x1xf32>
      %245 = arith.addf %241, %244 : vector<4x1xf32>
      %246 = math.rsqrt %245 : vector<4x1xf32>
      %247 = vector.broadcast %246 : vector<4x1xf32> to vector<4x32xf32>
      %248 = arith.mulf %243, %247 : vector<4x32xf32>
      %249 = vector.broadcast %177 : vector<1x32xf32> to vector<4x32xf32>
      %250 = arith.mulf %248, %249 : vector<4x32xf32>
      %251 = vector.broadcast %178 : vector<1x32xf32> to vector<4x32xf32>
      %252 = arith.addf %250, %251 : vector<4x32xf32>
      %c5_120 = arith.constant 5 : index
      %c0_121 = arith.constant 0 : index
      %253 = vector.load %arg26[%c5_120, %c0_121] : memref<10x32xf32, #tpu.memory_space<vmem>>, vector<1x32xf32>
      tpu.vector_store %arg26[%c5_120, %c0_121], %201 {strides = array<i32>} : memref<10x32xf32, #tpu.memory_space<vmem>>, vector<1x32xf32>,
      %c6 = arith.constant 6 : index
      %c0_122 = arith.constant 0 : index
      %254 = vector.load %arg26[%c6, %c0_122] : memref<10x32xf32, #tpu.memory_space<vmem>>, vector<4x32xf32>
      tpu.vector_store %arg26[%c6, %c0_122], %252 {strides = array<i32>} : memref<10x32xf32, #tpu.memory_space<vmem>>, vector<4x32xf32>,
    } else {
    }
    %c0 = arith.constant 0 : index
    %c0_1 = arith.constant 0 : index
    %c0_2 = arith.constant 0 : index
    %3 = vector.load %arg8[%c0, %c0_1, %c0_2] : memref<1x32x96xf32, #tpu.memory_space<vmem>>, vector<1x32x96xf32>
    %4 = vector.shape_cast %3 : vector<1x32x96xf32> to vector<32x96xf32>
    %c0_3 = arith.constant 0 : index
    %c0_4 = arith.constant 0 : index
    %c0_5 = arith.constant 0 : index
    %5 = vector.load %arg9[%c0_3, %c0_4, %c0_5] : memref<1x1x96xf32, #tpu.memory_space<vmem>>, vector<1x1x96xf32>
    %6 = vector.shape_cast %5 : vector<1x1x96xf32> to vector<1x96xf32>
    %c0_6 = arith.constant 0 : index
    %c0_7 = arith.constant 0 : index
    %c0_8 = arith.constant 0 : index
    %7 = vector.load %arg10[%c0_6, %c0_7, %c0_8] : memref<1x32x32xf32, #tpu.memory_space<vmem>>, vector<1x32x32xf32>
    %8 = vector.shape_cast %7 : vector<1x32x32xf32> to vector<32x32xf32>
    %c0_9 = arith.constant 0 : index
    %c0_10 = arith.constant 0 : index
    %c0_11 = arith.constant 0 : index
    %9 = vector.load %arg11[%c0_9, %c0_10, %c0_11] : memref<1x1x32xf32, #tpu.memory_space<vmem>>, vector<1x1x32xf32>
    %10 = vector.shape_cast %9 : vector<1x1x32xf32> to vector<1x32xf32>
    %c0_12 = arith.constant 0 : index
    %c0_13 = arith.constant 0 : index
    %c0_14 = arith.constant 0 : index
    %11 = vector.load %arg12[%c0_12, %c0_13, %c0_14] : memref<1x32x128xf32, #tpu.memory_space<vmem>>, vector<1x32x128xf32>
    %12 = vector.shape_cast %11 : vector<1x32x128xf32> to vector<32x128xf32>
    %c0_15 = arith.constant 0 : index
    %c0_16 = arith.constant 0 : index
    %c0_17 = arith.constant 0 : index
    %13 = vector.load %arg13[%c0_15, %c0_16, %c0_17] : memref<1x1x128xf32, #tpu.memory_space<vmem>>, vector<1x1x128xf32>
    %14 = vector.shape_cast %13 : vector<1x1x128xf32> to vector<1x128xf32>
    %c0_18 = arith.constant 0 : index
    %c0_19 = arith.constant 0 : index
    %c0_20 = arith.constant 0 : index
    %15 = vector.load %arg14[%c0_18, %c0_19, %c0_20] : memref<1x128x32xf32, #tpu.memory_space<vmem>>, vector<1x128x32xf32>
    %16 = vector.shape_cast %15 : vector<1x128x32xf32> to vector<128x32xf32>
    %c0_21 = arith.constant 0 : index
    %c0_22 = arith.constant 0 : index
    %c0_23 = arith.constant 0 : index
    %17 = vector.load %arg15[%c0_21, %c0_22, %c0_23] : memref<1x1x32xf32, #tpu.memory_space<vmem>>, vector<1x1x32xf32>
    %18 = vector.shape_cast %17 : vector<1x1x32xf32> to vector<1x32xf32>
    %c0_24 = arith.constant 0 : index
    %c0_25 = arith.constant 0 : index
    %c0_26 = arith.constant 0 : index
    %19 = vector.load %arg16[%c0_24, %c0_25, %c0_26] : memref<1x1x32xf32, #tpu.memory_space<vmem>>, vector<1x1x32xf32>
    %20 = vector.shape_cast %19 : vector<1x1x32xf32> to vector<1x32xf32>
    %c0_27 = arith.constant 0 : index
    %c0_28 = arith.constant 0 : index
    %c0_29 = arith.constant 0 : index
    %21 = vector.load %arg17[%c0_27, %c0_28, %c0_29] : memref<1x1x32xf32, #tpu.memory_space<vmem>>, vector<1x1x32xf32>
    %22 = vector.shape_cast %21 : vector<1x1x32xf32> to vector<1x32xf32>
    %c0_30 = arith.constant 0 : index
    %c0_31 = arith.constant 0 : index
    %c0_32 = arith.constant 0 : index
    %23 = vector.load %arg18[%c0_30, %c0_31, %c0_32] : memref<1x1x32xf32, #tpu.memory_space<vmem>>, vector<1x1x32xf32>
    %24 = vector.shape_cast %23 : vector<1x1x32xf32> to vector<1x32xf32>
    %c0_33 = arith.constant 0 : index
    %c0_34 = arith.constant 0 : index
    %c0_35 = arith.constant 0 : index
    %25 = vector.load %arg19[%c0_33, %c0_34, %c0_35] : memref<1x1x32xf32, #tpu.memory_space<vmem>>, vector<1x1x32xf32>
    %26 = vector.shape_cast %25 : vector<1x1x32xf32> to vector<1x32xf32>
    %c0_36 = arith.constant 0 : index
    %c0_37 = arith.constant 0 : index
    %27 = vector.load %arg26[%c0_36, %c0_37] : memref<10x32xf32, #tpu.memory_space<vmem>>, vector<10x32xf32>
    %cst = arith.constant dense<0.000000e+00> : vector<10xf32>
    %28 = vector.multi_reduction <add>, %27, %cst [1] : vector<10x32xf32> to vector<10xf32>
    %29 = vector.shape_cast %28 : vector<10xf32> to vector<10x1xf32>
    %cst_38 = arith.constant 3.200000e+01 : f32
    %30 = vector.broadcast %cst_38 : f32 to vector<10x1xf32>
    %31 = arith.divf %29, %30 : vector<10x1xf32>
    %32 = vector.broadcast %31 : vector<10x1xf32> to vector<10x32xf32>
    %33 = arith.subf %27, %32 : vector<10x32xf32>
    %34 = arith.mulf %33, %33 : vector<10x32xf32>
    %cst_39 = arith.constant dense<0.000000e+00> : vector<10xf32>
    %35 = vector.multi_reduction <add>, %34, %cst_39 [1] : vector<10x32xf32> to vector<10xf32>
    %36 = vector.shape_cast %35 : vector<10xf32> to vector<10x1xf32>
    %cst_40 = arith.constant 3.200000e+01 : f32
    %37 = vector.broadcast %cst_40 : f32 to vector<10x1xf32>
    %38 = arith.divf %36, %37 : vector<10x1xf32>
    %39 = vector.broadcast %31 : vector<10x1xf32> to vector<10x32xf32>
    %40 = arith.subf %27, %39 : vector<10x32xf32>
    %cst_41 = arith.constant 9.99999974E-6 : f32
    %41 = vector.broadcast %cst_41 : f32 to vector<10x1xf32>
    %42 = arith.addf %38, %41 : vector<10x1xf32>
    %43 = math.rsqrt %42 : vector<10x1xf32>
    %44 = vector.broadcast %43 : vector<10x1xf32> to vector<10x32xf32>
    %45 = arith.mulf %40, %44 : vector<10x32xf32>
    %46 = vector.broadcast %20 : vector<1x32xf32> to vector<10x32xf32>
    %47 = arith.mulf %45, %46 : vector<10x32xf32>
    %48 = vector.broadcast %22 : vector<1x32xf32> to vector<10x32xf32>
    %49 = arith.addf %47, %48 : vector<10x32xf32>
    %cst_42 = arith.constant dense<0.000000e+00> : vector<10x96xf32>
    %50 = tpu.matmul %49, %4, %cst_42 {dimension_numbers = #tpu.dot_dimension_numbers<[1], [0], [0], [1], [0, 0, 1, 1], [], []>} : vector<10x32xf32>, vector<32x96xf32>, vector<10x96xf32> -> vector<10x96xf32>
    %51 = vector.broadcast %6 : vector<1x96xf32> to vector<10x96xf32>
    %52 = arith.addf %50, %51 : vector<10x96xf32>
    %53 = vector.extract_strided_slice %52 {offsets = [0, 0], sizes = [5, 16], strides = [1, 1]} : vector<10x96xf32> to vector<5x16xf32>
    %54 = vector.extract_strided_slice %52 {offsets = [0, 32], sizes = [5, 16], strides = [1, 1]} : vector<10x96xf32> to vector<5x16xf32>
    %55 = vector.extract_strided_slice %52 {offsets = [0, 64], sizes = [5, 16], strides = [1, 1]} : vector<10x96xf32> to vector<5x16xf32>
    %cst_43 = arith.constant dense<0.000000e+00> : vector<5x5xf32>
    %56 = tpu.matmul %53, %54, %cst_43 {dimension_numbers = #tpu.dot_dimension_numbers<[1], [1], [0], [0], [0, 0, 1, 0], [], []>} : vector<5x16xf32>, vector<5x16xf32>, vector<5x5xf32> -> vector<5x5xf32>
    %cst_44 = arith.constant 2.500000e-01 : f32
    %57 = vector.broadcast %cst_44 : f32 to vector<5x5xf32>
    %58 = arith.mulf %56, %57 : vector<5x5xf32>
    %cst_45 = arith.constant dense<0xFF800000> : vector<5xf32>
    %59 = vector.multi_reduction <maximumf>, %58, %cst_45 [1] : vector<5x5xf32> to vector<5xf32>
    %60 = vector.shape_cast %59 : vector<5xf32> to vector<5x1xf32>
    %61 = vector.broadcast %60 : vector<5x1xf32> to vector<5x5xf32>
    %62 = arith.subf %58, %61 : vector<5x5xf32>
    %63 = math.exp %62 : vector<5x5xf32>
    %cst_46 = arith.constant dense<0.000000e+00> : vector<5xf32>
    %64 = vector.multi_reduction <add>, %63, %cst_46 [1] : vector<5x5xf32> to vector<5xf32>
    %65 = vector.shape_cast %64 : vector<5xf32> to vector<5x1xf32>
    %66 = tpu.reciprocal %65 {approx = true} : vector<5x1xf32> -> vector<5x1xf32>
    %67 = vector.broadcast %66 : vector<5x1xf32> to vector<5x5xf32>
    %68 = arith.mulf %63, %67 : vector<5x5xf32>
    %cst_47 = arith.constant dense<0.000000e+00> : vector<5x16xf32>
    %69 = tpu.matmul %68, %55, %cst_47 {dimension_numbers = #tpu.dot_dimension_numbers<[1], [0], [0], [1], [0, 0, 1, 1], [], []>} : vector<5x5xf32>, vector<5x16xf32>, vector<5x16xf32> -> vector<5x16xf32>
    %c0_48 = arith.constant 0 : index
    %c0_49 = arith.constant 0 : index
    %70 = vector.load %arg27[%c0_48, %c0_49] : memref<10x32xf32, #tpu.memory_space<vmem>>, vector<5x16xf32>
    tpu.vector_store %arg27[%c0_48, %c0_49], %69 {strides = array<i32>} : memref<10x32xf32, #tpu.memory_space<vmem>>, vector<5x16xf32>,
    %71 = vector.extract_strided_slice %52 {offsets = [0, 16], sizes = [5, 16], strides = [1, 1]} : vector<10x96xf32> to vector<5x16xf32>
    %72 = vector.extract_strided_slice %52 {offsets = [0, 48], sizes = [5, 16], strides = [1, 1]} : vector<10x96xf32> to vector<5x16xf32>
    %73 = vector.extract_strided_slice %52 {offsets = [0, 80], sizes = [5, 16], strides = [1, 1]} : vector<10x96xf32> to vector<5x16xf32>
    %cst_50 = arith.constant dense<0.000000e+00> : vector<5x5xf32>
    %74 = tpu.matmul %71, %72, %cst_50 {dimension_numbers = #tpu.dot_dimension_numbers<[1], [1], [0], [0], [0, 0, 1, 0], [], []>} : vector<5x16xf32>, vector<5x16xf32>, vector<5x5xf32> -> vector<5x5xf32>
    %cst_51 = arith.constant 2.500000e-01 : f32
    %75 = vector.broadcast %cst_51 : f32 to vector<5x5xf32>
    %76 = arith.mulf %74, %75 : vector<5x5xf32>
    %cst_52 = arith.constant dense<0xFF800000> : vector<5xf32>
    %77 = vector.multi_reduction <maximumf>, %76, %cst_52 [1] : vector<5x5xf32> to vector<5xf32>
    %78 = vector.shape_cast %77 : vector<5xf32> to vector<5x1xf32>
    %79 = vector.broadcast %78 : vector<5x1xf32> to vector<5x5xf32>
    %80 = arith.subf %76, %79 : vector<5x5xf32>
    %81 = math.exp %80 : vector<5x5xf32>
    %cst_53 = arith.constant dense<0.000000e+00> : vector<5xf32>
    %82 = vector.multi_reduction <add>, %81, %cst_53 [1] : vector<5x5xf32> to vector<5xf32>
    %83 = vector.shape_cast %82 : vector<5xf32> to vector<5x1xf32>
    %84 = tpu.reciprocal %83 {approx = true} : vector<5x1xf32> -> vector<5x1xf32>
    %85 = vector.broadcast %84 : vector<5x1xf32> to vector<5x5xf32>
    %86 = arith.mulf %81, %85 : vector<5x5xf32>
    %cst_54 = arith.constant dense<0.000000e+00> : vector<5x16xf32>
    %87 = tpu.matmul %86, %73, %cst_54 {dimension_numbers = #tpu.dot_dimension_numbers<[1], [0], [0], [1], [0, 0, 1, 1], [], []>} : vector<5x5xf32>, vector<5x16xf32>, vector<5x16xf32> -> vector<5x16xf32>
    %c0_55 = arith.constant 0 : index
    %c16 = arith.constant 16 : index
    %88 = vector.load %arg27[%c0_55, %c16] : memref<10x32xf32, #tpu.memory_space<vmem>>, vector<5x16xf32>
    tpu.vector_store %arg27[%c0_55, %c16], %87 {strides = array<i32>} : memref<10x32xf32, #tpu.memory_space<vmem>>, vector<5x16xf32>,
    %89 = vector.extract_strided_slice %52 {offsets = [5, 0], sizes = [5, 16], strides = [1, 1]} : vector<10x96xf32> to vector<5x16xf32>
    %90 = vector.extract_strided_slice %52 {offsets = [5, 32], sizes = [5, 16], strides = [1, 1]} : vector<10x96xf32> to vector<5x16xf32>
    %91 = vector.extract_strided_slice %52 {offsets = [5, 64], sizes = [5, 16], strides = [1, 1]} : vector<10x96xf32> to vector<5x16xf32>
    %cst_56 = arith.constant dense<0.000000e+00> : vector<5x5xf32>
    %92 = tpu.matmul %89, %90, %cst_56 {dimension_numbers = #tpu.dot_dimension_numbers<[1], [1], [0], [0], [0, 0, 1, 0], [], []>} : vector<5x16xf32>, vector<5x16xf32>, vector<5x5xf32> -> vector<5x5xf32>
    %cst_57 = arith.constant 2.500000e-01 : f32
    %93 = vector.broadcast %cst_57 : f32 to vector<5x5xf32>
    %94 = arith.mulf %92, %93 : vector<5x5xf32>
    %cst_58 = arith.constant dense<0xFF800000> : vector<5xf32>
    %95 = vector.multi_reduction <maximumf>, %94, %cst_58 [1] : vector<5x5xf32> to vector<5xf32>
    %96 = vector.shape_cast %95 : vector<5xf32> to vector<5x1xf32>
    %97 = vector.broadcast %96 : vector<5x1xf32> to vector<5x5xf32>
    %98 = arith.subf %94, %97 : vector<5x5xf32>
    %99 = math.exp %98 : vector<5x5xf32>
    %cst_59 = arith.constant dense<0.000000e+00> : vector<5xf32>
    %100 = vector.multi_reduction <add>, %99, %cst_59 [1] : vector<5x5xf32> to vector<5xf32>
    %101 = vector.shape_cast %100 : vector<5xf32> to vector<5x1xf32>
    %102 = tpu.reciprocal %101 {approx = true} : vector<5x1xf32> -> vector<5x1xf32>
    %103 = vector.broadcast %102 : vector<5x1xf32> to vector<5x5xf32>
    %104 = arith.mulf %99, %103 : vector<5x5xf32>
    %cst_60 = arith.constant dense<0.000000e+00> : vector<5x16xf32>
    %105 = tpu.matmul %104, %91, %cst_60 {dimension_numbers = #tpu.dot_dimension_numbers<[1], [0], [0], [1], [0, 0, 1, 1], [], []>} : vector<5x5xf32>, vector<5x16xf32>, vector<5x16xf32> -> vector<5x16xf32>
    %c5 = arith.constant 5 : index
    %c0_61 = arith.constant 0 : index
    %106 = vector.load %arg27[%c5, %c0_61] : memref<10x32xf32, #tpu.memory_space<vmem>>, vector<5x16xf32>
    tpu.vector_store %arg27[%c5, %c0_61], %105 {strides = array<i32>} : memref<10x32xf32, #tpu.memory_space<vmem>>, vector<5x16xf32>,
    %107 = vector.extract_strided_slice %52 {offsets = [5, 16], sizes = [5, 16], strides = [1, 1]} : vector<10x96xf32> to vector<5x16xf32>
    %108 = vector.extract_strided_slice %52 {offsets = [5, 48], sizes = [5, 16], strides = [1, 1]} : vector<10x96xf32> to vector<5x16xf32>
    %109 = vector.extract_strided_slice %52 {offsets = [5, 80], sizes = [5, 16], strides = [1, 1]} : vector<10x96xf32> to vector<5x16xf32>
    %cst_62 = arith.constant dense<0.000000e+00> : vector<5x5xf32>
    %110 = tpu.matmul %107, %108, %cst_62 {dimension_numbers = #tpu.dot_dimension_numbers<[1], [1], [0], [0], [0, 0, 1, 0], [], []>} : vector<5x16xf32>, vector<5x16xf32>, vector<5x5xf32> -> vector<5x5xf32>
    %cst_63 = arith.constant 2.500000e-01 : f32
    %111 = vector.broadcast %cst_63 : f32 to vector<5x5xf32>
    %112 = arith.mulf %110, %111 : vector<5x5xf32>
    %cst_64 = arith.constant dense<0xFF800000> : vector<5xf32>
    %113 = vector.multi_reduction <maximumf>, %112, %cst_64 [1] : vector<5x5xf32> to vector<5xf32>
    %114 = vector.shape_cast %113 : vector<5xf32> to vector<5x1xf32>
    %115 = vector.broadcast %114 : vector<5x1xf32> to vector<5x5xf32>
    %116 = arith.subf %112, %115 : vector<5x5xf32>
    %117 = math.exp %116 : vector<5x5xf32>
    %cst_65 = arith.constant dense<0.000000e+00> : vector<5xf32>
    %118 = vector.multi_reduction <add>, %117, %cst_65 [1] : vector<5x5xf32> to vector<5xf32>
    %119 = vector.shape_cast %118 : vector<5xf32> to vector<5x1xf32>
    %120 = tpu.reciprocal %119 {approx = true} : vector<5x1xf32> -> vector<5x1xf32>
    %121 = vector.broadcast %120 : vector<5x1xf32> to vector<5x5xf32>
    %122 = arith.mulf %117, %121 : vector<5x5xf32>
    %cst_66 = arith.constant dense<0.000000e+00> : vector<5x16xf32>
    %123 = tpu.matmul %122, %109, %cst_66 {dimension_numbers = #tpu.dot_dimension_numbers<[1], [0], [0], [1], [0, 0, 1, 1], [], []>} : vector<5x5xf32>, vector<5x16xf32>, vector<5x16xf32> -> vector<5x16xf32>
    %c5_67 = arith.constant 5 : index
    %c16_68 = arith.constant 16 : index
    %124 = vector.load %arg27[%c5_67, %c16_68] : memref<10x32xf32, #tpu.memory_space<vmem>>, vector<5x16xf32>
    tpu.vector_store %arg27[%c5_67, %c16_68], %123 {strides = array<i32>} : memref<10x32xf32, #tpu.memory_space<vmem>>, vector<5x16xf32>,
    %c0_69 = arith.constant 0 : index
    %c0_70 = arith.constant 0 : index
    %125 = vector.load %arg27[%c0_69, %c0_70] : memref<10x32xf32, #tpu.memory_space<vmem>>, vector<10x32xf32>
    %cst_71 = arith.constant dense<0.000000e+00> : vector<10x32xf32>
    %126 = tpu.matmul %125, %8, %cst_71 {dimension_numbers = #tpu.dot_dimension_numbers<[1], [0], [0], [1], [0, 0, 1, 1], [], []>} : vector<10x32xf32>, vector<32x32xf32>, vector<10x32xf32> -> vector<10x32xf32>
    %127 = vector.broadcast %10 : vector<1x32xf32> to vector<10x32xf32>
    %128 = arith.addf %126, %127 : vector<10x32xf32>
    %129 = arith.addf %27, %128 : vector<10x32xf32>
    %cst_72 = arith.constant dense<0.000000e+00> : vector<10xf32>
    %130 = vector.multi_reduction <add>, %129, %cst_72 [1] : vector<10x32xf32> to vector<10xf32>
    %131 = vector.shape_cast %130 : vector<10xf32> to vector<10x1xf32>
    %cst_73 = arith.constant 3.200000e+01 : f32
    %132 = vector.broadcast %cst_73 : f32 to vector<10x1xf32>
    %133 = arith.divf %131, %132 : vector<10x1xf32>
    %134 = vector.broadcast %133 : vector<10x1xf32> to vector<10x32xf32>
    %135 = arith.subf %129, %134 : vector<10x32xf32>
    %136 = arith.mulf %135, %135 : vector<10x32xf32>
    %cst_74 = arith.constant dense<0.000000e+00> : vector<10xf32>
    %137 = vector.multi_reduction <add>, %136, %cst_74 [1] : vector<10x32xf32> to vector<10xf32>
    %138 = vector.shape_cast %137 : vector<10xf32> to vector<10x1xf32>
    %cst_75 = arith.constant 3.200000e+01 : f32
    %139 = vector.broadcast %cst_75 : f32 to vector<10x1xf32>
    %140 = arith.divf %138, %139 : vector<10x1xf32>
    %141 = vector.broadcast %133 : vector<10x1xf32> to vector<10x32xf32>
    %142 = arith.subf %129, %141 : vector<10x32xf32>
    %cst_76 = arith.constant 9.99999974E-6 : f32
    %143 = vector.broadcast %cst_76 : f32 to vector<10x1xf32>
    %144 = arith.addf %140, %143 : vector<10x1xf32>
    %145 = math.rsqrt %144 : vector<10x1xf32>
    %146 = vector.broadcast %145 : vector<10x1xf32> to vector<10x32xf32>
    %147 = arith.mulf %142, %146 : vector<10x32xf32>
    %148 = vector.broadcast %24 : vector<1x32xf32> to vector<10x32xf32>
    %149 = arith.mulf %147, %148 : vector<10x32xf32>
    %150 = vector.broadcast %26 : vector<1x32xf32> to vector<10x32xf32>
    %151 = arith.addf %149, %150 : vector<10x32xf32>
    %cst_77 = arith.constant dense<0.000000e+00> : vector<10x128xf32>
    %152 = tpu.matmul %151, %12, %cst_77 {dimension_numbers = #tpu.dot_dimension_numbers<[1], [0], [0], [1], [0, 0, 1, 1], [], []>} : vector<10x32xf32>, vector<32x128xf32>, vector<10x128xf32> -> vector<10x128xf32>
    %153 = vector.broadcast %14 : vector<1x128xf32> to vector<10x128xf32>
    %154 = arith.addf %152, %153 : vector<10x128xf32>
    %cst_78 = arith.constant -1.702000e+00 : f32
    %155 = vector.broadcast %cst_78 : f32 to vector<10x128xf32>
    %156 = arith.mulf %155, %154 : vector<10x128xf32>
    %157 = math.exp %156 : vector<10x128xf32>
    %cst_79 = arith.constant 1.000000e+00 : f32
    %158 = vector.broadcast %cst_79 : f32 to vector<10x128xf32>
    %159 = arith.addf %158, %157 : vector<10x128xf32>
    %cst_80 = arith.constant 1.000000e+00 : f32
    %160 = vector.broadcast %cst_80 : f32 to vector<10x128xf32>
    %161 = arith.divf %160, %159 : vector<10x128xf32>
    %162 = arith.mulf %154, %161 : vector<10x128xf32>
    %cst_81 = arith.constant dense<0.000000e+00> : vector<10x32xf32>
    %163 = tpu.matmul %162, %16, %cst_81 {dimension_numbers = #tpu.dot_dimension_numbers<[1], [0], [0], [1], [0, 0, 1, 1], [], []>} : vector<10x128xf32>, vector<128x32xf32>, vector<10x32xf32> -> vector<10x32xf32>
    %164 = vector.broadcast %18 : vector<1x32xf32> to vector<10x32xf32>
    %165 = arith.addf %163, %164 : vector<10x32xf32>
    %166 = arith.addf %129, %165 : vector<10x32xf32>
    %c0_82 = arith.constant 0 : index
    %c0_83 = arith.constant 0 : index
    %167 = vector.load %arg26[%c0_82, %c0_83] : memref<10x32xf32, #tpu.memory_space<vmem>>, vector<10x32xf32>
    tpu.vector_store %arg26[%c0_82, %c0_83], %166 {strides = array<i32>} : memref<10x32xf32, #tpu.memory_space<vmem>>, vector<10x32xf32>,
    %c1_i32 = arith.constant 1 : i32
    %168 = arith.cmpi eq, %arg0, %c1_i32 : i32
    %169 = arith.extui %168 : i1 to i32
    %c0_i32_84 = arith.constant 0 : i32
    %170 = arith.cmpi ne, %169, %c0_i32_84 : i32
    scf.if %170 {
      %c0_85 = arith.constant 0 : index
      %c0_86 = arith.constant 0 : index
      %171 = vector.load %arg20[%c0_85, %c0_86] : memref<1x32xf32, #tpu.memory_space<vmem>>, vector<1x32xf32>
      %c0_87 = arith.constant 0 : index
      %c0_88 = arith.constant 0 : index
      %172 = vector.load %arg21[%c0_87, %c0_88] : memref<1x32xf32, #tpu.memory_space<vmem>>, vector<1x32xf32>
      %c0_89 = arith.constant 0 : index
      %c0_90 = arith.constant 0 : index
      %173 = vector.load %arg26[%c0_89, %c0_90] : memref<10x32xf32, #tpu.memory_space<vmem>>, vector<1x32xf32>
      %cst_91 = arith.constant dense<0.000000e+00> : vector<1xf32>
      %174 = vector.multi_reduction <add>, %173, %cst_91 [1] : vector<1x32xf32> to vector<1xf32>
      %175 = vector.shape_cast %174 : vector<1xf32> to vector<1x1xf32>
      %cst_92 = arith.constant 3.200000e+01 : f32
      %176 = vector.broadcast %cst_92 : f32 to vector<1x1xf32>
      %177 = arith.divf %175, %176 : vector<1x1xf32>
      %178 = vector.broadcast %177 : vector<1x1xf32> to vector<1x32xf32>
      %179 = arith.subf %173, %178 : vector<1x32xf32>
      %180 = arith.mulf %179, %179 : vector<1x32xf32>
      %cst_93 = arith.constant dense<0.000000e+00> : vector<1xf32>
      %181 = vector.multi_reduction <add>, %180, %cst_93 [1] : vector<1x32xf32> to vector<1xf32>
      %182 = vector.shape_cast %181 : vector<1xf32> to vector<1x1xf32>
      %cst_94 = arith.constant 3.200000e+01 : f32
      %183 = vector.broadcast %cst_94 : f32 to vector<1x1xf32>
      %184 = arith.divf %182, %183 : vector<1x1xf32>
      %185 = vector.broadcast %177 : vector<1x1xf32> to vector<1x32xf32>
      %186 = arith.subf %173, %185 : vector<1x32xf32>
      %cst_95 = arith.constant 9.99999974E-6 : f32
      %187 = vector.broadcast %cst_95 : f32 to vector<1x1xf32>
      %188 = arith.addf %184, %187 : vector<1x1xf32>
      %189 = math.rsqrt %188 : vector<1x1xf32>
      %190 = vector.broadcast %189 : vector<1x1xf32> to vector<1x32xf32>
      %191 = arith.mulf %186, %190 : vector<1x32xf32>
      %192 = arith.mulf %191, %171 : vector<1x32xf32>
      %193 = arith.addf %192, %172 : vector<1x32xf32>
      %c0_96 = arith.constant 0 : index
      %c0_97 = arith.constant 0 : index
      %194 = vector.load %arg22[%c0_96, %c0_97] : memref<32x32xf32, #tpu.memory_space<vmem>>, vector<32x32xf32>
      %cst_98 = arith.constant dense<0.000000e+00> : vector<1x32xf32>
      %195 = tpu.matmul %193, %194, %cst_98 {dimension_numbers = #tpu.dot_dimension_numbers<[1], [0], [0], [1], [0, 0, 1, 1], [], []>} : vector<1x32xf32>, vector<32x32xf32>, vector<1x32xf32> -> vector<1x32xf32>
      %c0_99 = arith.constant 0 : index
      %c0_100 = arith.constant 0 : index
      %196 = vector.load %arg23[%c0_99, %c0_100] : memref<32x32xf32, #tpu.memory_space<vmem>>, vector<32x32xf32>
      %cst_101 = arith.constant dense<0.000000e+00> : vector<1x32xf32>
      %197 = tpu.matmul %195, %196, %cst_101 {dimension_numbers = #tpu.dot_dimension_numbers<[1], [0], [0], [1], [0, 0, 1, 1], [], []>} : vector<1x32xf32>, vector<32x32xf32>, vector<1x32xf32> -> vector<1x32xf32>
      %c0_102 = arith.constant 0 : index
      %c0_103 = arith.constant 0 : index
      %198 = vector.load %arg24[%c0_102, %c0_103] : memref<1x32xf32, #tpu.memory_space<vmem>>, vector<1x32xf32>
      %199 = arith.addf %197, %198 : vector<1x32xf32>
      %c0_104 = arith.constant 0 : index
      %c0_105 = arith.constant 0 : index
      %200 = vector.load %arg25[%c0_104, %c0_105] : memref<2x32xf32, #tpu.memory_space<vmem>>, vector<1x32xf32>
      tpu.vector_store %arg25[%c0_104, %c0_105], %199 {strides = array<i32>} : memref<2x32xf32, #tpu.memory_space<vmem>>, vector<1x32xf32>,
      %c5_106 = arith.constant 5 : index
      %c0_107 = arith.constant 0 : index
      %201 = vector.load %arg26[%c5_106, %c0_107] : memref<10x32xf32, #tpu.memory_space<vmem>>, vector<1x32xf32>
      %cst_108 = arith.constant dense<0.000000e+00> : vector<1xf32>
      %202 = vector.multi_reduction <add>, %201, %cst_108 [1] : vector<1x32xf32> to vector<1xf32>
      %203 = vector.shape_cast %202 : vector<1xf32> to vector<1x1xf32>
      %cst_109 = arith.constant 3.200000e+01 : f32
      %204 = vector.broadcast %cst_109 : f32 to vector<1x1xf32>
      %205 = arith.divf %203, %204 : vector<1x1xf32>
      %206 = vector.broadcast %205 : vector<1x1xf32> to vector<1x32xf32>
      %207 = arith.subf %201, %206 : vector<1x32xf32>
      %208 = arith.mulf %207, %207 : vector<1x32xf32>
      %cst_110 = arith.constant dense<0.000000e+00> : vector<1xf32>
      %209 = vector.multi_reduction <add>, %208, %cst_110 [1] : vector<1x32xf32> to vector<1xf32>
      %210 = vector.shape_cast %209 : vector<1xf32> to vector<1x1xf32>
      %cst_111 = arith.constant 3.200000e+01 : f32
      %211 = vector.broadcast %cst_111 : f32 to vector<1x1xf32>
      %212 = arith.divf %210, %211 : vector<1x1xf32>
      %213 = vector.broadcast %205 : vector<1x1xf32> to vector<1x32xf32>
      %214 = arith.subf %201, %213 : vector<1x32xf32>
      %cst_112 = arith.constant 9.99999974E-6 : f32
      %215 = vector.broadcast %cst_112 : f32 to vector<1x1xf32>
      %216 = arith.addf %212, %215 : vector<1x1xf32>
      %217 = math.rsqrt %216 : vector<1x1xf32>
      %218 = vector.broadcast %217 : vector<1x1xf32> to vector<1x32xf32>
      %219 = arith.mulf %214, %218 : vector<1x32xf32>
      %220 = arith.mulf %219, %171 : vector<1x32xf32>
      %221 = arith.addf %220, %172 : vector<1x32xf32>
      %c0_113 = arith.constant 0 : index
      %c0_114 = arith.constant 0 : index
      %222 = vector.load %arg22[%c0_113, %c0_114] : memref<32x32xf32, #tpu.memory_space<vmem>>, vector<32x32xf32>
      %cst_115 = arith.constant dense<0.000000e+00> : vector<1x32xf32>
      %223 = tpu.matmul %221, %222, %cst_115 {dimension_numbers = #tpu.dot_dimension_numbers<[1], [0], [0], [1], [0, 0, 1, 1], [], []>} : vector<1x32xf32>, vector<32x32xf32>, vector<1x32xf32> -> vector<1x32xf32>
      %c0_116 = arith.constant 0 : index
      %c0_117 = arith.constant 0 : index
      %224 = vector.load %arg23[%c0_116, %c0_117] : memref<32x32xf32, #tpu.memory_space<vmem>>, vector<32x32xf32>
      %cst_118 = arith.constant dense<0.000000e+00> : vector<1x32xf32>
      %225 = tpu.matmul %223, %224, %cst_118 {dimension_numbers = #tpu.dot_dimension_numbers<[1], [0], [0], [1], [0, 0, 1, 1], [], []>} : vector<1x32xf32>, vector<32x32xf32>, vector<1x32xf32> -> vector<1x32xf32>
      %c0_119 = arith.constant 0 : index
      %c0_120 = arith.constant 0 : index
      %226 = vector.load %arg24[%c0_119, %c0_120] : memref<1x32xf32, #tpu.memory_space<vmem>>, vector<1x32xf32>
      %227 = arith.addf %225, %226 : vector<1x32xf32>
      %c1 = arith.constant 1 : index
      %c0_121 = arith.constant 0 : index
      %228 = vector.load %arg25[%c1, %c0_121] : memref<2x32xf32, #tpu.memory_space<vmem>>, vector<1x32xf32>
      tpu.vector_store %arg25[%c1, %c0_121], %227 {strides = array<i32>} : memref<2x32xf32, #tpu.memory_space<vmem>>, vector<1x32xf32>,
    } else {
    }
    return
  }
  func.func @transform_0(%arg0: i32) -> (i32, i32) {
    %c0_i32 = arith.constant 0 : i32
    %c0_i32_0 = arith.constant 0 : i32
    %c0_i32_1 = arith.constant 0 : i32
    return %c0_i32, %c0_i32_0 : i32, i32
  }
  func.func @transform_1(%arg0: i32) -> (i32, i32) {
    %c0_i32 = arith.constant 0 : i32
    %c0_i32_0 = arith.constant 0 : i32
    %c0_i32_1 = arith.constant 0 : i32
    return %c0_i32, %c0_i32_0 : i32, i32
  }
  func.func @transform_2(%arg0: i32) -> (i32, i32) {
    %c0_i32 = arith.constant 0 : i32
    %c0_i32_0 = arith.constant 0 : i32
    %c0_i32_1 = arith.constant 0 : i32
    return %c0_i32, %c0_i32_0 : i32, i32
  }
  func.func @transform_3(%arg0: i32) -> (i32, i32) {
    %c0_i32 = arith.constant 0 : i32
    %c0_i32_0 = arith.constant 0 : i32
    %c0_i32_1 = arith.constant 0 : i32
    return %c0_i32, %c0_i32_0 : i32, i32
  }
  func.func @transform_4(%arg0: i32) -> (i32, i32) {
    %c0_i32 = arith.constant 0 : i32
    %c0_i32_0 = arith.constant 0 : i32
    %c0_i32_1 = arith.constant 0 : i32
    return %c0_i32, %c0_i32_0 : i32, i32
  }
  func.func @transform_5(%arg0: i32) -> (i32, i32) {
    %c0_i32 = arith.constant 0 : i32
    %c0_i32_0 = arith.constant 0 : i32
    %c0_i32_1 = arith.constant 0 : i32
    return %c0_i32, %c0_i32_0 : i32, i32
  }
  func.func @transform_6(%arg0: i32) -> (i32, i32) {
    %c0_i32 = arith.constant 0 : i32
    %c0_i32_0 = arith.constant 0 : i32
    %c0_i32_1 = arith.constant 0 : i32
    return %c0_i32, %c0_i32_0 : i32, i32
  }
  func.func @transform_7(%arg0: i32) -> (i32, i32, i32) {
    %c0_i32 = arith.constant 0 : i32
    %c0_i32_0 = arith.constant 0 : i32
    %c0_i32_1 = arith.constant 0 : i32
    return %arg0, %c0_i32, %c0_i32_0 : i32, i32, i32
  }
  func.func @transform_8(%arg0: i32) -> (i32, i32, i32) {
    %c0_i32 = arith.constant 0 : i32
    %c0_i32_0 = arith.constant 0 : i32
    %c0_i32_1 = arith.constant 0 : i32
    return %arg0, %c0_i32, %c0_i32_0 : i32, i32, i32
  }
  func.func @transform_9(%arg0: i32) -> (i32, i32, i32) {
    %c0_i32 = arith.constant 0 : i32
    %c0_i32_0 = arith.constant 0 : i32
    %c0_i32_1 = arith.constant 0 : i32
    return %arg0, %c0_i32, %c0_i32_0 : i32, i32, i32
  }
  func.func @transform_10(%arg0: i32) -> (i32, i32, i32) {
    %c0_i32 = arith.constant 0 : i32
    %c0_i32_0 = arith.constant 0 : i32
    %c0_i32_1 = arith.constant 0 : i32
    return %arg0, %c0_i32, %c0_i32_0 : i32, i32, i32
  }
  func.func @transform_11(%arg0: i32) -> (i32, i32, i32) {
    %c0_i32 = arith.constant 0 : i32
    %c0_i32_0 = arith.constant 0 : i32
    %c0_i32_1 = arith.constant 0 : i32
    return %arg0, %c0_i32, %c0_i32_0 : i32, i32, i32
  }
  func.func @transform_12(%arg0: i32) -> (i32, i32, i32) {
    %c0_i32 = arith.constant 0 : i32
    %c0_i32_0 = arith.constant 0 : i32
    %c0_i32_1 = arith.constant 0 : i32
    return %arg0, %c0_i32, %c0_i32_0 : i32, i32, i32
  }
  func.func @transform_13(%arg0: i32) -> (i32, i32, i32) {
    %c0_i32 = arith.constant 0 : i32
    %c0_i32_0 = arith.constant 0 : i32
    %c0_i32_1 = arith.constant 0 : i32
    return %arg0, %c0_i32, %c0_i32_0 : i32, i32, i32
  }
  func.func @transform_14(%arg0: i32) -> (i32, i32, i32) {
    %c0_i32 = arith.constant 0 : i32
    %c0_i32_0 = arith.constant 0 : i32
    %c0_i32_1 = arith.constant 0 : i32
    return %arg0, %c0_i32, %c0_i32_0 : i32, i32, i32
  }
  func.func @transform_15(%arg0: i32) -> (i32, i32, i32) {
    %c0_i32 = arith.constant 0 : i32
    %c0_i32_0 = arith.constant 0 : i32
    %c0_i32_1 = arith.constant 0 : i32
    return %arg0, %c0_i32, %c0_i32_0 : i32, i32, i32
  }
  func.func @transform_16(%arg0: i32) -> (i32, i32, i32) {
    %c0_i32 = arith.constant 0 : i32
    %c0_i32_0 = arith.constant 0 : i32
    %c0_i32_1 = arith.constant 0 : i32
    return %arg0, %c0_i32, %c0_i32_0 : i32, i32, i32
  }
  func.func @transform_17(%arg0: i32) -> (i32, i32, i32) {
    %c0_i32 = arith.constant 0 : i32
    %c0_i32_0 = arith.constant 0 : i32
    %c0_i32_1 = arith.constant 0 : i32
    return %arg0, %c0_i32, %c0_i32_0 : i32, i32, i32
  }
  func.func @transform_18(%arg0: i32) -> (i32, i32, i32) {
    %c0_i32 = arith.constant 0 : i32
    %c0_i32_0 = arith.constant 0 : i32
    %c0_i32_1 = arith.constant 0 : i32
    return %arg0, %c0_i32, %c0_i32_0 : i32, i32, i32
  }
  func.func @transform_19(%arg0: i32) -> (i32, i32) {
    %c0_i32 = arith.constant 0 : i32
    %c0_i32_0 = arith.constant 0 : i32
    %c0_i32_1 = arith.constant 0 : i32
    return %c0_i32, %c0_i32_0 : i32, i32
  }
  func.func @transform_20(%arg0: i32) -> (i32, i32) {
    %c0_i32 = arith.constant 0 : i32
    %c0_i32_0 = arith.constant 0 : i32
    %c0_i32_1 = arith.constant 0 : i32
    return %c0_i32, %c0_i32_0 : i32, i32
  }
  func.func @transform_21(%arg0: i32) -> (i32, i32) {
    %c0_i32 = arith.constant 0 : i32
    %c0_i32_0 = arith.constant 0 : i32
    %c0_i32_1 = arith.constant 0 : i32
    return %c0_i32, %c0_i32_0 : i32, i32
  }
  func.func @transform_22(%arg0: i32) -> (i32, i32) {
    %c0_i32 = arith.constant 0 : i32
    %c0_i32_0 = arith.constant 0 : i32
    %c0_i32_1 = arith.constant 0 : i32
    return %c0_i32, %c0_i32_0 : i32, i32
  }
  func.func @transform_23(%arg0: i32) -> (i32, i32) {
    %c0_i32 = arith.constant 0 : i32
    %c0_i32_0 = arith.constant 0 : i32
    %c0_i32_1 = arith.constant 0 : i32
    return %c0_i32, %c0_i32_0 : i32, i32
  }
  func.func @transform_24(%arg0: i32) -> (i32, i32) {
    %c0_i32 = arith.constant 0 : i32
    %c0_i32_0 = arith.constant 0 : i32
    %c0_i32_1 = arith.constant 0 : i32
    return %c0_i32, %c0_i32_0 : i32, i32
  }
}

module attributes {stable_mosaic.version = 11 : i64} {
  func.func @_gpt_lm_kernel(%arg0: i32, %arg1: memref<18x32xf32, #tpu.memory_space<vmem>>, %arg2: memref<1x32x96xf32, #tpu.memory_space<vmem>>, %arg3: memref<1x1x96xf32, #tpu.memory_space<vmem>>, %arg4: memref<1x32x32xf32, #tpu.memory_space<vmem>>, %arg5: memref<1x1x32xf32, #tpu.memory_space<vmem>>, %arg6: memref<1x32x128xf32, #tpu.memory_space<vmem>>, %arg7: memref<1x1x128xf32, #tpu.memory_space<vmem>>, %arg8: memref<1x128x32xf32, #tpu.memory_space<vmem>>, %arg9: memref<1x1x32xf32, #tpu.memory_space<vmem>>, %arg10: memref<1x1x32xf32, #tpu.memory_space<vmem>>, %arg11: memref<1x1x32xf32, #tpu.memory_space<vmem>>, %arg12: memref<1x1x32xf32, #tpu.memory_space<vmem>>, %arg13: memref<1x1x32xf32, #tpu.memory_space<vmem>>, %arg14: memref<1x32xf32, #tpu.memory_space<vmem>>, %arg15: memref<1x32xf32, #tpu.memory_space<vmem>>, %arg16: memref<128x32xf32, #tpu.memory_space<vmem>>, %arg17: memref<18x128xf32, #tpu.memory_space<vmem>>, %arg18: memref<18x32xf32, #tpu.memory_space<vmem>>, %arg19: memref<18x32xf32, #tpu.memory_space<vmem>>) attributes {dimension_semantics = [#tpu.dimension_semantics<arbitrary>], iteration_bounds = array<i64: 2>, scalar_prefetch = 0 : i64, scratch_operands = 2 : i64, tpu.core_type = #tpu.core_type<tc>, window_params = [{pipeline_mode = #tpu.pipeline_mode<synchronous>, transform_indices = @transform_0, window_bounds = array<i64: 18, 32>}, {transform_indices = @transform_1, window_bounds = array<i64: 1, 32, 96>}, {transform_indices = @transform_2, window_bounds = array<i64: 1, 1, 96>}, {transform_indices = @transform_3, window_bounds = array<i64: 1, 32, 32>}, {transform_indices = @transform_4, window_bounds = array<i64: 1, 1, 32>}, {transform_indices = @transform_5, window_bounds = array<i64: 1, 32, 128>}, {transform_indices = @transform_6, window_bounds = array<i64: 1, 1, 128>}, {transform_indices = @transform_7, window_bounds = array<i64: 1, 128, 32>}, {transform_indices = @transform_8, window_bounds = array<i64: 1, 1, 32>}, {transform_indices = @transform_9, window_bounds = array<i64: 1, 1, 32>}, {transform_indices = @transform_10, window_bounds = array<i64: 1, 1, 32>}, {transform_indices = @transform_11, window_bounds = array<i64: 1, 1, 32>}, {transform_indices = @transform_12, window_bounds = array<i64: 1, 1, 32>}, {pipeline_mode = #tpu.pipeline_mode<synchronous>, transform_indices = @transform_13, window_bounds = array<i64: 1, 32>}, {pipeline_mode = #tpu.pipeline_mode<synchronous>, transform_indices = @transform_14, window_bounds = array<i64: 1, 32>}, {pipeline_mode = #tpu.pipeline_mode<synchronous>, transform_indices = @transform_15, window_bounds = array<i64: 128, 32>}, {pipeline_mode = #tpu.pipeline_mode<synchronous>, transform_indices = @transform_16, window_bounds = array<i64: 18, 128>}]} {
    %c0_i32 = arith.constant 0 : i32
    %0 = arith.cmpi eq, %arg0, %c0_i32 : i32
    %1 = arith.extui %0 : i1 to i32
    %c0_i32_0 = arith.constant 0 : i32
    %2 = arith.cmpi ne, %1, %c0_i32_0 : i32
    scf.if %2 {
      %c0_114 = arith.constant 0 : index
      %c0_115 = arith.constant 0 : index
      %263 = vector.load %arg1[%c0_114, %c0_115] : memref<18x32xf32, #tpu.memory_space<vmem>>, vector<18x32xf32>
      %c0_116 = arith.constant 0 : index
      %c0_117 = arith.constant 0 : index
      %264 = vector.load %arg18[%c0_116, %c0_117] : memref<18x32xf32, #tpu.memory_space<vmem>>, vector<18x32xf32>
      tpu.vector_store %arg18[%c0_116, %c0_117], %263 {strides = array<i32>} : memref<18x32xf32, #tpu.memory_space<vmem>>, vector<18x32xf32>,
    } else {
    }
    %c0 = arith.constant 0 : index
    %c0_1 = arith.constant 0 : index
    %c0_2 = arith.constant 0 : index
    %3 = vector.load %arg2[%c0, %c0_1, %c0_2] : memref<1x32x96xf32, #tpu.memory_space<vmem>>, vector<1x32x96xf32>
    %4 = vector.shape_cast %3 : vector<1x32x96xf32> to vector<32x96xf32>
    %c0_3 = arith.constant 0 : index
    %c0_4 = arith.constant 0 : index
    %c0_5 = arith.constant 0 : index
    %5 = vector.load %arg3[%c0_3, %c0_4, %c0_5] : memref<1x1x96xf32, #tpu.memory_space<vmem>>, vector<1x1x96xf32>
    %6 = vector.shape_cast %5 : vector<1x1x96xf32> to vector<1x96xf32>
    %c0_6 = arith.constant 0 : index
    %c0_7 = arith.constant 0 : index
    %c0_8 = arith.constant 0 : index
    %7 = vector.load %arg4[%c0_6, %c0_7, %c0_8] : memref<1x32x32xf32, #tpu.memory_space<vmem>>, vector<1x32x32xf32>
    %8 = vector.shape_cast %7 : vector<1x32x32xf32> to vector<32x32xf32>
    %c0_9 = arith.constant 0 : index
    %c0_10 = arith.constant 0 : index
    %c0_11 = arith.constant 0 : index
    %9 = vector.load %arg5[%c0_9, %c0_10, %c0_11] : memref<1x1x32xf32, #tpu.memory_space<vmem>>, vector<1x1x32xf32>
    %10 = vector.shape_cast %9 : vector<1x1x32xf32> to vector<1x32xf32>
    %c0_12 = arith.constant 0 : index
    %c0_13 = arith.constant 0 : index
    %c0_14 = arith.constant 0 : index
    %11 = vector.load %arg6[%c0_12, %c0_13, %c0_14] : memref<1x32x128xf32, #tpu.memory_space<vmem>>, vector<1x32x128xf32>
    %12 = vector.shape_cast %11 : vector<1x32x128xf32> to vector<32x128xf32>
    %c0_15 = arith.constant 0 : index
    %c0_16 = arith.constant 0 : index
    %c0_17 = arith.constant 0 : index
    %13 = vector.load %arg7[%c0_15, %c0_16, %c0_17] : memref<1x1x128xf32, #tpu.memory_space<vmem>>, vector<1x1x128xf32>
    %14 = vector.shape_cast %13 : vector<1x1x128xf32> to vector<1x128xf32>
    %c0_18 = arith.constant 0 : index
    %c0_19 = arith.constant 0 : index
    %c0_20 = arith.constant 0 : index
    %15 = vector.load %arg8[%c0_18, %c0_19, %c0_20] : memref<1x128x32xf32, #tpu.memory_space<vmem>>, vector<1x128x32xf32>
    %16 = vector.shape_cast %15 : vector<1x128x32xf32> to vector<128x32xf32>
    %c0_21 = arith.constant 0 : index
    %c0_22 = arith.constant 0 : index
    %c0_23 = arith.constant 0 : index
    %17 = vector.load %arg9[%c0_21, %c0_22, %c0_23] : memref<1x1x32xf32, #tpu.memory_space<vmem>>, vector<1x1x32xf32>
    %18 = vector.shape_cast %17 : vector<1x1x32xf32> to vector<1x32xf32>
    %c0_24 = arith.constant 0 : index
    %c0_25 = arith.constant 0 : index
    %c0_26 = arith.constant 0 : index
    %19 = vector.load %arg10[%c0_24, %c0_25, %c0_26] : memref<1x1x32xf32, #tpu.memory_space<vmem>>, vector<1x1x32xf32>
    %20 = vector.shape_cast %19 : vector<1x1x32xf32> to vector<1x32xf32>
    %c0_27 = arith.constant 0 : index
    %c0_28 = arith.constant 0 : index
    %c0_29 = arith.constant 0 : index
    %21 = vector.load %arg11[%c0_27, %c0_28, %c0_29] : memref<1x1x32xf32, #tpu.memory_space<vmem>>, vector<1x1x32xf32>
    %22 = vector.shape_cast %21 : vector<1x1x32xf32> to vector<1x32xf32>
    %c0_30 = arith.constant 0 : index
    %c0_31 = arith.constant 0 : index
    %c0_32 = arith.constant 0 : index
    %23 = vector.load %arg12[%c0_30, %c0_31, %c0_32] : memref<1x1x32xf32, #tpu.memory_space<vmem>>, vector<1x1x32xf32>
    %24 = vector.shape_cast %23 : vector<1x1x32xf32> to vector<1x32xf32>
    %c0_33 = arith.constant 0 : index
    %c0_34 = arith.constant 0 : index
    %c0_35 = arith.constant 0 : index
    %25 = vector.load %arg13[%c0_33, %c0_34, %c0_35] : memref<1x1x32xf32, #tpu.memory_space<vmem>>, vector<1x1x32xf32>
    %26 = vector.shape_cast %25 : vector<1x1x32xf32> to vector<1x32xf32>
    %c0_36 = arith.constant 0 : index
    %c0_37 = arith.constant 0 : index
    %27 = vector.load %arg18[%c0_36, %c0_37] : memref<18x32xf32, #tpu.memory_space<vmem>>, vector<18x32xf32>
    %cst = arith.constant dense<0.000000e+00> : vector<18xf32>
    %28 = vector.multi_reduction <add>, %27, %cst [1] : vector<18x32xf32> to vector<18xf32>
    %29 = vector.shape_cast %28 : vector<18xf32> to vector<18x1xf32>
    %cst_38 = arith.constant 3.200000e+01 : f32
    %30 = vector.broadcast %cst_38 : f32 to vector<18x1xf32>
    %31 = arith.divf %29, %30 : vector<18x1xf32>
    %32 = vector.broadcast %31 : vector<18x1xf32> to vector<18x32xf32>
    %33 = arith.subf %27, %32 : vector<18x32xf32>
    %34 = arith.mulf %33, %33 : vector<18x32xf32>
    %cst_39 = arith.constant dense<0.000000e+00> : vector<18xf32>
    %35 = vector.multi_reduction <add>, %34, %cst_39 [1] : vector<18x32xf32> to vector<18xf32>
    %36 = vector.shape_cast %35 : vector<18xf32> to vector<18x1xf32>
    %cst_40 = arith.constant 3.200000e+01 : f32
    %37 = vector.broadcast %cst_40 : f32 to vector<18x1xf32>
    %38 = arith.divf %36, %37 : vector<18x1xf32>
    %39 = vector.broadcast %31 : vector<18x1xf32> to vector<18x32xf32>
    %40 = arith.subf %27, %39 : vector<18x32xf32>
    %cst_41 = arith.constant 9.99999974E-6 : f32
    %41 = vector.broadcast %cst_41 : f32 to vector<18x1xf32>
    %42 = arith.addf %38, %41 : vector<18x1xf32>
    %43 = math.rsqrt %42 : vector<18x1xf32>
    %44 = vector.broadcast %43 : vector<18x1xf32> to vector<18x32xf32>
    %45 = arith.mulf %40, %44 : vector<18x32xf32>
    %46 = vector.broadcast %20 : vector<1x32xf32> to vector<18x32xf32>
    %47 = arith.mulf %45, %46 : vector<18x32xf32>
    %48 = vector.broadcast %22 : vector<1x32xf32> to vector<18x32xf32>
    %49 = arith.addf %47, %48 : vector<18x32xf32>
    %cst_42 = arith.constant dense<0.000000e+00> : vector<18x96xf32>
    %50 = tpu.matmul %49, %4, %cst_42 {dimension_numbers = #tpu.dot_dimension_numbers<[1], [0], [0], [1], [0, 0, 1, 1], [], []>} : vector<18x32xf32>, vector<32x96xf32>, vector<18x96xf32> -> vector<18x96xf32>
    %51 = vector.broadcast %6 : vector<1x96xf32> to vector<18x96xf32>
    %52 = arith.addf %50, %51 : vector<18x96xf32>
    %53 = tpu.iota {dimensions = array<i32: 0>} : vector<9x9xi32>
    %54 = tpu.iota {dimensions = array<i32: 1>} : vector<9x9xi32>
    %55 = arith.cmpi sle, %54, %53 : vector<9x9xi32>
    %cst_43 = arith.constant 0.000000e+00 : f32
    %cst_44 = arith.constant -1.000000e+09 : f32
    %56 = vector.broadcast %cst_43 : f32 to vector<9x9xf32>
    %57 = vector.broadcast %cst_44 : f32 to vector<9x9xf32>
    %58 = arith.select %55, %56, %57 : vector<9x9xi1>, vector<9x9xf32>
    %59 = vector.extract_strided_slice %52 {offsets = [0, 0], sizes = [9, 8], strides = [1, 1]} : vector<18x96xf32> to vector<9x8xf32>
    %60 = vector.extract_strided_slice %52 {offsets = [0, 32], sizes = [9, 8], strides = [1, 1]} : vector<18x96xf32> to vector<9x8xf32>
    %61 = vector.extract_strided_slice %52 {offsets = [0, 64], sizes = [9, 8], strides = [1, 1]} : vector<18x96xf32> to vector<9x8xf32>
    %cst_45 = arith.constant dense<0.000000e+00> : vector<9x9xf32>
    %62 = tpu.matmul %59, %60, %cst_45 {dimension_numbers = #tpu.dot_dimension_numbers<[1], [1], [0], [0], [0, 0, 1, 0], [], []>} : vector<9x8xf32>, vector<9x8xf32>, vector<9x9xf32> -> vector<9x9xf32>
    %cst_46 = arith.constant 0.353553385 : f32
    %63 = vector.broadcast %cst_46 : f32 to vector<9x9xf32>
    %64 = arith.mulf %62, %63 : vector<9x9xf32>
    %65 = arith.addf %64, %58 : vector<9x9xf32>
    %cst_47 = arith.constant dense<0xFF800000> : vector<9xf32>
    %66 = vector.multi_reduction <maximumf>, %65, %cst_47 [1] : vector<9x9xf32> to vector<9xf32>
    %67 = vector.shape_cast %66 : vector<9xf32> to vector<9x1xf32>
    %68 = vector.broadcast %67 : vector<9x1xf32> to vector<9x9xf32>
    %69 = arith.subf %65, %68 : vector<9x9xf32>
    %70 = math.exp %69 : vector<9x9xf32>
    %cst_48 = arith.constant dense<0.000000e+00> : vector<9xf32>
    %71 = vector.multi_reduction <add>, %70, %cst_48 [1] : vector<9x9xf32> to vector<9xf32>
    %72 = vector.shape_cast %71 : vector<9xf32> to vector<9x1xf32>
    %73 = tpu.reciprocal %72 {approx = true} : vector<9x1xf32> -> vector<9x1xf32>
    %74 = vector.broadcast %73 : vector<9x1xf32> to vector<9x9xf32>
    %75 = arith.mulf %70, %74 : vector<9x9xf32>
    %cst_49 = arith.constant dense<0.000000e+00> : vector<9x8xf32>
    %76 = tpu.matmul %75, %61, %cst_49 {dimension_numbers = #tpu.dot_dimension_numbers<[1], [0], [0], [1], [0, 0, 1, 1], [], []>} : vector<9x9xf32>, vector<9x8xf32>, vector<9x8xf32> -> vector<9x8xf32>
    %c0_50 = arith.constant 0 : index
    %c0_51 = arith.constant 0 : index
    %77 = vector.load %arg19[%c0_50, %c0_51] : memref<18x32xf32, #tpu.memory_space<vmem>>, vector<9x8xf32>
    tpu.vector_store %arg19[%c0_50, %c0_51], %76 {strides = array<i32>} : memref<18x32xf32, #tpu.memory_space<vmem>>, vector<9x8xf32>,
    %78 = vector.extract_strided_slice %52 {offsets = [0, 8], sizes = [9, 8], strides = [1, 1]} : vector<18x96xf32> to vector<9x8xf32>
    %79 = vector.extract_strided_slice %52 {offsets = [0, 40], sizes = [9, 8], strides = [1, 1]} : vector<18x96xf32> to vector<9x8xf32>
    %80 = vector.extract_strided_slice %52 {offsets = [0, 72], sizes = [9, 8], strides = [1, 1]} : vector<18x96xf32> to vector<9x8xf32>
    %cst_52 = arith.constant dense<0.000000e+00> : vector<9x9xf32>
    %81 = tpu.matmul %78, %79, %cst_52 {dimension_numbers = #tpu.dot_dimension_numbers<[1], [1], [0], [0], [0, 0, 1, 0], [], []>} : vector<9x8xf32>, vector<9x8xf32>, vector<9x9xf32> -> vector<9x9xf32>
    %cst_53 = arith.constant 0.353553385 : f32
    %82 = vector.broadcast %cst_53 : f32 to vector<9x9xf32>
    %83 = arith.mulf %81, %82 : vector<9x9xf32>
    %84 = arith.addf %83, %58 : vector<9x9xf32>
    %cst_54 = arith.constant dense<0xFF800000> : vector<9xf32>
    %85 = vector.multi_reduction <maximumf>, %84, %cst_54 [1] : vector<9x9xf32> to vector<9xf32>
    %86 = vector.shape_cast %85 : vector<9xf32> to vector<9x1xf32>
    %87 = vector.broadcast %86 : vector<9x1xf32> to vector<9x9xf32>
    %88 = arith.subf %84, %87 : vector<9x9xf32>
    %89 = math.exp %88 : vector<9x9xf32>
    %cst_55 = arith.constant dense<0.000000e+00> : vector<9xf32>
    %90 = vector.multi_reduction <add>, %89, %cst_55 [1] : vector<9x9xf32> to vector<9xf32>
    %91 = vector.shape_cast %90 : vector<9xf32> to vector<9x1xf32>
    %92 = tpu.reciprocal %91 {approx = true} : vector<9x1xf32> -> vector<9x1xf32>
    %93 = vector.broadcast %92 : vector<9x1xf32> to vector<9x9xf32>
    %94 = arith.mulf %89, %93 : vector<9x9xf32>
    %cst_56 = arith.constant dense<0.000000e+00> : vector<9x8xf32>
    %95 = tpu.matmul %94, %80, %cst_56 {dimension_numbers = #tpu.dot_dimension_numbers<[1], [0], [0], [1], [0, 0, 1, 1], [], []>} : vector<9x9xf32>, vector<9x8xf32>, vector<9x8xf32> -> vector<9x8xf32>
    %c0_57 = arith.constant 0 : index
    %c8 = arith.constant 8 : index
    %96 = vector.load %arg19[%c0_57, %c8] : memref<18x32xf32, #tpu.memory_space<vmem>>, vector<9x8xf32>
    tpu.vector_store %arg19[%c0_57, %c8], %95 {strides = array<i32>} : memref<18x32xf32, #tpu.memory_space<vmem>>, vector<9x8xf32>,
    %97 = vector.extract_strided_slice %52 {offsets = [0, 16], sizes = [9, 8], strides = [1, 1]} : vector<18x96xf32> to vector<9x8xf32>
    %98 = vector.extract_strided_slice %52 {offsets = [0, 48], sizes = [9, 8], strides = [1, 1]} : vector<18x96xf32> to vector<9x8xf32>
    %99 = vector.extract_strided_slice %52 {offsets = [0, 80], sizes = [9, 8], strides = [1, 1]} : vector<18x96xf32> to vector<9x8xf32>
    %cst_58 = arith.constant dense<0.000000e+00> : vector<9x9xf32>
    %100 = tpu.matmul %97, %98, %cst_58 {dimension_numbers = #tpu.dot_dimension_numbers<[1], [1], [0], [0], [0, 0, 1, 0], [], []>} : vector<9x8xf32>, vector<9x8xf32>, vector<9x9xf32> -> vector<9x9xf32>
    %cst_59 = arith.constant 0.353553385 : f32
    %101 = vector.broadcast %cst_59 : f32 to vector<9x9xf32>
    %102 = arith.mulf %100, %101 : vector<9x9xf32>
    %103 = arith.addf %102, %58 : vector<9x9xf32>
    %cst_60 = arith.constant dense<0xFF800000> : vector<9xf32>
    %104 = vector.multi_reduction <maximumf>, %103, %cst_60 [1] : vector<9x9xf32> to vector<9xf32>
    %105 = vector.shape_cast %104 : vector<9xf32> to vector<9x1xf32>
    %106 = vector.broadcast %105 : vector<9x1xf32> to vector<9x9xf32>
    %107 = arith.subf %103, %106 : vector<9x9xf32>
    %108 = math.exp %107 : vector<9x9xf32>
    %cst_61 = arith.constant dense<0.000000e+00> : vector<9xf32>
    %109 = vector.multi_reduction <add>, %108, %cst_61 [1] : vector<9x9xf32> to vector<9xf32>
    %110 = vector.shape_cast %109 : vector<9xf32> to vector<9x1xf32>
    %111 = tpu.reciprocal %110 {approx = true} : vector<9x1xf32> -> vector<9x1xf32>
    %112 = vector.broadcast %111 : vector<9x1xf32> to vector<9x9xf32>
    %113 = arith.mulf %108, %112 : vector<9x9xf32>
    %cst_62 = arith.constant dense<0.000000e+00> : vector<9x8xf32>
    %114 = tpu.matmul %113, %99, %cst_62 {dimension_numbers = #tpu.dot_dimension_numbers<[1], [0], [0], [1], [0, 0, 1, 1], [], []>} : vector<9x9xf32>, vector<9x8xf32>, vector<9x8xf32> -> vector<9x8xf32>
    %c0_63 = arith.constant 0 : index
    %c16 = arith.constant 16 : index
    %115 = vector.load %arg19[%c0_63, %c16] : memref<18x32xf32, #tpu.memory_space<vmem>>, vector<9x8xf32>
    tpu.vector_store %arg19[%c0_63, %c16], %114 {strides = array<i32>} : memref<18x32xf32, #tpu.memory_space<vmem>>, vector<9x8xf32>,
    %116 = vector.extract_strided_slice %52 {offsets = [0, 24], sizes = [9, 8], strides = [1, 1]} : vector<18x96xf32> to vector<9x8xf32>
    %117 = vector.extract_strided_slice %52 {offsets = [0, 56], sizes = [9, 8], strides = [1, 1]} : vector<18x96xf32> to vector<9x8xf32>
    %118 = vector.extract_strided_slice %52 {offsets = [0, 88], sizes = [9, 8], strides = [1, 1]} : vector<18x96xf32> to vector<9x8xf32>
    %cst_64 = arith.constant dense<0.000000e+00> : vector<9x9xf32>
    %119 = tpu.matmul %116, %117, %cst_64 {dimension_numbers = #tpu.dot_dimension_numbers<[1], [1], [0], [0], [0, 0, 1, 0], [], []>} : vector<9x8xf32>, vector<9x8xf32>, vector<9x9xf32> -> vector<9x9xf32>
    %cst_65 = arith.constant 0.353553385 : f32
    %120 = vector.broadcast %cst_65 : f32 to vector<9x9xf32>
    %121 = arith.mulf %119, %120 : vector<9x9xf32>
    %122 = arith.addf %121, %58 : vector<9x9xf32>
    %cst_66 = arith.constant dense<0xFF800000> : vector<9xf32>
    %123 = vector.multi_reduction <maximumf>, %122, %cst_66 [1] : vector<9x9xf32> to vector<9xf32>
    %124 = vector.shape_cast %123 : vector<9xf32> to vector<9x1xf32>
    %125 = vector.broadcast %124 : vector<9x1xf32> to vector<9x9xf32>
    %126 = arith.subf %122, %125 : vector<9x9xf32>
    %127 = math.exp %126 : vector<9x9xf32>
    %cst_67 = arith.constant dense<0.000000e+00> : vector<9xf32>
    %128 = vector.multi_reduction <add>, %127, %cst_67 [1] : vector<9x9xf32> to vector<9xf32>
    %129 = vector.shape_cast %128 : vector<9xf32> to vector<9x1xf32>
    %130 = tpu.reciprocal %129 {approx = true} : vector<9x1xf32> -> vector<9x1xf32>
    %131 = vector.broadcast %130 : vector<9x1xf32> to vector<9x9xf32>
    %132 = arith.mulf %127, %131 : vector<9x9xf32>
    %cst_68 = arith.constant dense<0.000000e+00> : vector<9x8xf32>
    %133 = tpu.matmul %132, %118, %cst_68 {dimension_numbers = #tpu.dot_dimension_numbers<[1], [0], [0], [1], [0, 0, 1, 1], [], []>} : vector<9x9xf32>, vector<9x8xf32>, vector<9x8xf32> -> vector<9x8xf32>
    %c0_69 = arith.constant 0 : index
    %c24 = arith.constant 24 : index
    %134 = vector.load %arg19[%c0_69, %c24] : memref<18x32xf32, #tpu.memory_space<vmem>>, vector<9x8xf32>
    tpu.vector_store %arg19[%c0_69, %c24], %133 {strides = array<i32>} : memref<18x32xf32, #tpu.memory_space<vmem>>, vector<9x8xf32>,
    %135 = vector.extract_strided_slice %52 {offsets = [9, 0], sizes = [9, 8], strides = [1, 1]} : vector<18x96xf32> to vector<9x8xf32>
    %136 = vector.extract_strided_slice %52 {offsets = [9, 32], sizes = [9, 8], strides = [1, 1]} : vector<18x96xf32> to vector<9x8xf32>
    %137 = vector.extract_strided_slice %52 {offsets = [9, 64], sizes = [9, 8], strides = [1, 1]} : vector<18x96xf32> to vector<9x8xf32>
    %cst_70 = arith.constant dense<0.000000e+00> : vector<9x9xf32>
    %138 = tpu.matmul %135, %136, %cst_70 {dimension_numbers = #tpu.dot_dimension_numbers<[1], [1], [0], [0], [0, 0, 1, 0], [], []>} : vector<9x8xf32>, vector<9x8xf32>, vector<9x9xf32> -> vector<9x9xf32>
    %cst_71 = arith.constant 0.353553385 : f32
    %139 = vector.broadcast %cst_71 : f32 to vector<9x9xf32>
    %140 = arith.mulf %138, %139 : vector<9x9xf32>
    %141 = arith.addf %140, %58 : vector<9x9xf32>
    %cst_72 = arith.constant dense<0xFF800000> : vector<9xf32>
    %142 = vector.multi_reduction <maximumf>, %141, %cst_72 [1] : vector<9x9xf32> to vector<9xf32>
    %143 = vector.shape_cast %142 : vector<9xf32> to vector<9x1xf32>
    %144 = vector.broadcast %143 : vector<9x1xf32> to vector<9x9xf32>
    %145 = arith.subf %141, %144 : vector<9x9xf32>
    %146 = math.exp %145 : vector<9x9xf32>
    %cst_73 = arith.constant dense<0.000000e+00> : vector<9xf32>
    %147 = vector.multi_reduction <add>, %146, %cst_73 [1] : vector<9x9xf32> to vector<9xf32>
    %148 = vector.shape_cast %147 : vector<9xf32> to vector<9x1xf32>
    %149 = tpu.reciprocal %148 {approx = true} : vector<9x1xf32> -> vector<9x1xf32>
    %150 = vector.broadcast %149 : vector<9x1xf32> to vector<9x9xf32>
    %151 = arith.mulf %146, %150 : vector<9x9xf32>
    %cst_74 = arith.constant dense<0.000000e+00> : vector<9x8xf32>
    %152 = tpu.matmul %151, %137, %cst_74 {dimension_numbers = #tpu.dot_dimension_numbers<[1], [0], [0], [1], [0, 0, 1, 1], [], []>} : vector<9x9xf32>, vector<9x8xf32>, vector<9x8xf32> -> vector<9x8xf32>
    %c9 = arith.constant 9 : index
    %c0_75 = arith.constant 0 : index
    %153 = vector.load %arg19[%c9, %c0_75] : memref<18x32xf32, #tpu.memory_space<vmem>>, vector<9x8xf32>
    tpu.vector_store %arg19[%c9, %c0_75], %152 {strides = array<i32>} : memref<18x32xf32, #tpu.memory_space<vmem>>, vector<9x8xf32>,
    %154 = vector.extract_strided_slice %52 {offsets = [9, 8], sizes = [9, 8], strides = [1, 1]} : vector<18x96xf32> to vector<9x8xf32>
    %155 = vector.extract_strided_slice %52 {offsets = [9, 40], sizes = [9, 8], strides = [1, 1]} : vector<18x96xf32> to vector<9x8xf32>
    %156 = vector.extract_strided_slice %52 {offsets = [9, 72], sizes = [9, 8], strides = [1, 1]} : vector<18x96xf32> to vector<9x8xf32>
    %cst_76 = arith.constant dense<0.000000e+00> : vector<9x9xf32>
    %157 = tpu.matmul %154, %155, %cst_76 {dimension_numbers = #tpu.dot_dimension_numbers<[1], [1], [0], [0], [0, 0, 1, 0], [], []>} : vector<9x8xf32>, vector<9x8xf32>, vector<9x9xf32> -> vector<9x9xf32>
    %cst_77 = arith.constant 0.353553385 : f32
    %158 = vector.broadcast %cst_77 : f32 to vector<9x9xf32>
    %159 = arith.mulf %157, %158 : vector<9x9xf32>
    %160 = arith.addf %159, %58 : vector<9x9xf32>
    %cst_78 = arith.constant dense<0xFF800000> : vector<9xf32>
    %161 = vector.multi_reduction <maximumf>, %160, %cst_78 [1] : vector<9x9xf32> to vector<9xf32>
    %162 = vector.shape_cast %161 : vector<9xf32> to vector<9x1xf32>
    %163 = vector.broadcast %162 : vector<9x1xf32> to vector<9x9xf32>
    %164 = arith.subf %160, %163 : vector<9x9xf32>
    %165 = math.exp %164 : vector<9x9xf32>
    %cst_79 = arith.constant dense<0.000000e+00> : vector<9xf32>
    %166 = vector.multi_reduction <add>, %165, %cst_79 [1] : vector<9x9xf32> to vector<9xf32>
    %167 = vector.shape_cast %166 : vector<9xf32> to vector<9x1xf32>
    %168 = tpu.reciprocal %167 {approx = true} : vector<9x1xf32> -> vector<9x1xf32>
    %169 = vector.broadcast %168 : vector<9x1xf32> to vector<9x9xf32>
    %170 = arith.mulf %165, %169 : vector<9x9xf32>
    %cst_80 = arith.constant dense<0.000000e+00> : vector<9x8xf32>
    %171 = tpu.matmul %170, %156, %cst_80 {dimension_numbers = #tpu.dot_dimension_numbers<[1], [0], [0], [1], [0, 0, 1, 1], [], []>} : vector<9x9xf32>, vector<9x8xf32>, vector<9x8xf32> -> vector<9x8xf32>
    %c9_81 = arith.constant 9 : index
    %c8_82 = arith.constant 8 : index
    %172 = vector.load %arg19[%c9_81, %c8_82] : memref<18x32xf32, #tpu.memory_space<vmem>>, vector<9x8xf32>
    tpu.vector_store %arg19[%c9_81, %c8_82], %171 {strides = array<i32>} : memref<18x32xf32, #tpu.memory_space<vmem>>, vector<9x8xf32>,
    %173 = vector.extract_strided_slice %52 {offsets = [9, 16], sizes = [9, 8], strides = [1, 1]} : vector<18x96xf32> to vector<9x8xf32>
    %174 = vector.extract_strided_slice %52 {offsets = [9, 48], sizes = [9, 8], strides = [1, 1]} : vector<18x96xf32> to vector<9x8xf32>
    %175 = vector.extract_strided_slice %52 {offsets = [9, 80], sizes = [9, 8], strides = [1, 1]} : vector<18x96xf32> to vector<9x8xf32>
    %cst_83 = arith.constant dense<0.000000e+00> : vector<9x9xf32>
    %176 = tpu.matmul %173, %174, %cst_83 {dimension_numbers = #tpu.dot_dimension_numbers<[1], [1], [0], [0], [0, 0, 1, 0], [], []>} : vector<9x8xf32>, vector<9x8xf32>, vector<9x9xf32> -> vector<9x9xf32>
    %cst_84 = arith.constant 0.353553385 : f32
    %177 = vector.broadcast %cst_84 : f32 to vector<9x9xf32>
    %178 = arith.mulf %176, %177 : vector<9x9xf32>
    %179 = arith.addf %178, %58 : vector<9x9xf32>
    %cst_85 = arith.constant dense<0xFF800000> : vector<9xf32>
    %180 = vector.multi_reduction <maximumf>, %179, %cst_85 [1] : vector<9x9xf32> to vector<9xf32>
    %181 = vector.shape_cast %180 : vector<9xf32> to vector<9x1xf32>
    %182 = vector.broadcast %181 : vector<9x1xf32> to vector<9x9xf32>
    %183 = arith.subf %179, %182 : vector<9x9xf32>
    %184 = math.exp %183 : vector<9x9xf32>
    %cst_86 = arith.constant dense<0.000000e+00> : vector<9xf32>
    %185 = vector.multi_reduction <add>, %184, %cst_86 [1] : vector<9x9xf32> to vector<9xf32>
    %186 = vector.shape_cast %185 : vector<9xf32> to vector<9x1xf32>
    %187 = tpu.reciprocal %186 {approx = true} : vector<9x1xf32> -> vector<9x1xf32>
    %188 = vector.broadcast %187 : vector<9x1xf32> to vector<9x9xf32>
    %189 = arith.mulf %184, %188 : vector<9x9xf32>
    %cst_87 = arith.constant dense<0.000000e+00> : vector<9x8xf32>
    %190 = tpu.matmul %189, %175, %cst_87 {dimension_numbers = #tpu.dot_dimension_numbers<[1], [0], [0], [1], [0, 0, 1, 1], [], []>} : vector<9x9xf32>, vector<9x8xf32>, vector<9x8xf32> -> vector<9x8xf32>
    %c9_88 = arith.constant 9 : index
    %c16_89 = arith.constant 16 : index
    %191 = vector.load %arg19[%c9_88, %c16_89] : memref<18x32xf32, #tpu.memory_space<vmem>>, vector<9x8xf32>
    tpu.vector_store %arg19[%c9_88, %c16_89], %190 {strides = array<i32>} : memref<18x32xf32, #tpu.memory_space<vmem>>, vector<9x8xf32>,
    %192 = vector.extract_strided_slice %52 {offsets = [9, 24], sizes = [9, 8], strides = [1, 1]} : vector<18x96xf32> to vector<9x8xf32>
    %193 = vector.extract_strided_slice %52 {offsets = [9, 56], sizes = [9, 8], strides = [1, 1]} : vector<18x96xf32> to vector<9x8xf32>
    %194 = vector.extract_strided_slice %52 {offsets = [9, 88], sizes = [9, 8], strides = [1, 1]} : vector<18x96xf32> to vector<9x8xf32>
    %cst_90 = arith.constant dense<0.000000e+00> : vector<9x9xf32>
    %195 = tpu.matmul %192, %193, %cst_90 {dimension_numbers = #tpu.dot_dimension_numbers<[1], [1], [0], [0], [0, 0, 1, 0], [], []>} : vector<9x8xf32>, vector<9x8xf32>, vector<9x9xf32> -> vector<9x9xf32>
    %cst_91 = arith.constant 0.353553385 : f32
    %196 = vector.broadcast %cst_91 : f32 to vector<9x9xf32>
    %197 = arith.mulf %195, %196 : vector<9x9xf32>
    %198 = arith.addf %197, %58 : vector<9x9xf32>
    %cst_92 = arith.constant dense<0xFF800000> : vector<9xf32>
    %199 = vector.multi_reduction <maximumf>, %198, %cst_92 [1] : vector<9x9xf32> to vector<9xf32>
    %200 = vector.shape_cast %199 : vector<9xf32> to vector<9x1xf32>
    %201 = vector.broadcast %200 : vector<9x1xf32> to vector<9x9xf32>
    %202 = arith.subf %198, %201 : vector<9x9xf32>
    %203 = math.exp %202 : vector<9x9xf32>
    %cst_93 = arith.constant dense<0.000000e+00> : vector<9xf32>
    %204 = vector.multi_reduction <add>, %203, %cst_93 [1] : vector<9x9xf32> to vector<9xf32>
    %205 = vector.shape_cast %204 : vector<9xf32> to vector<9x1xf32>
    %206 = tpu.reciprocal %205 {approx = true} : vector<9x1xf32> -> vector<9x1xf32>
    %207 = vector.broadcast %206 : vector<9x1xf32> to vector<9x9xf32>
    %208 = arith.mulf %203, %207 : vector<9x9xf32>
    %cst_94 = arith.constant dense<0.000000e+00> : vector<9x8xf32>
    %209 = tpu.matmul %208, %194, %cst_94 {dimension_numbers = #tpu.dot_dimension_numbers<[1], [0], [0], [1], [0, 0, 1, 1], [], []>} : vector<9x9xf32>, vector<9x8xf32>, vector<9x8xf32> -> vector<9x8xf32>
    %c9_95 = arith.constant 9 : index
    %c24_96 = arith.constant 24 : index
    %210 = vector.load %arg19[%c9_95, %c24_96] : memref<18x32xf32, #tpu.memory_space<vmem>>, vector<9x8xf32>
    tpu.vector_store %arg19[%c9_95, %c24_96], %209 {strides = array<i32>} : memref<18x32xf32, #tpu.memory_space<vmem>>, vector<9x8xf32>,
    %c0_97 = arith.constant 0 : index
    %c0_98 = arith.constant 0 : index
    %211 = vector.load %arg19[%c0_97, %c0_98] : memref<18x32xf32, #tpu.memory_space<vmem>>, vector<18x32xf32>
    %cst_99 = arith.constant dense<0.000000e+00> : vector<18x32xf32>
    %212 = tpu.matmul %211, %8, %cst_99 {dimension_numbers = #tpu.dot_dimension_numbers<[1], [0], [0], [1], [0, 0, 1, 1], [], []>} : vector<18x32xf32>, vector<32x32xf32>, vector<18x32xf32> -> vector<18x32xf32>
    %213 = vector.broadcast %10 : vector<1x32xf32> to vector<18x32xf32>
    %214 = arith.addf %212, %213 : vector<18x32xf32>
    %215 = arith.addf %27, %214 : vector<18x32xf32>
    %cst_100 = arith.constant dense<0.000000e+00> : vector<18xf32>
    %216 = vector.multi_reduction <add>, %215, %cst_100 [1] : vector<18x32xf32> to vector<18xf32>
    %217 = vector.shape_cast %216 : vector<18xf32> to vector<18x1xf32>
    %cst_101 = arith.constant 3.200000e+01 : f32
    %218 = vector.broadcast %cst_101 : f32 to vector<18x1xf32>
    %219 = arith.divf %217, %218 : vector<18x1xf32>
    %220 = vector.broadcast %219 : vector<18x1xf32> to vector<18x32xf32>
    %221 = arith.subf %215, %220 : vector<18x32xf32>
    %222 = arith.mulf %221, %221 : vector<18x32xf32>
    %cst_102 = arith.constant dense<0.000000e+00> : vector<18xf32>
    %223 = vector.multi_reduction <add>, %222, %cst_102 [1] : vector<18x32xf32> to vector<18xf32>
    %224 = vector.shape_cast %223 : vector<18xf32> to vector<18x1xf32>
    %cst_103 = arith.constant 3.200000e+01 : f32
    %225 = vector.broadcast %cst_103 : f32 to vector<18x1xf32>
    %226 = arith.divf %224, %225 : vector<18x1xf32>
    %227 = vector.broadcast %219 : vector<18x1xf32> to vector<18x32xf32>
    %228 = arith.subf %215, %227 : vector<18x32xf32>
    %cst_104 = arith.constant 9.99999974E-6 : f32
    %229 = vector.broadcast %cst_104 : f32 to vector<18x1xf32>
    %230 = arith.addf %226, %229 : vector<18x1xf32>
    %231 = math.rsqrt %230 : vector<18x1xf32>
    %232 = vector.broadcast %231 : vector<18x1xf32> to vector<18x32xf32>
    %233 = arith.mulf %228, %232 : vector<18x32xf32>
    %234 = vector.broadcast %24 : vector<1x32xf32> to vector<18x32xf32>
    %235 = arith.mulf %233, %234 : vector<18x32xf32>
    %236 = vector.broadcast %26 : vector<1x32xf32> to vector<18x32xf32>
    %237 = arith.addf %235, %236 : vector<18x32xf32>
    %cst_105 = arith.constant dense<0.000000e+00> : vector<18x128xf32>
    %238 = tpu.matmul %237, %12, %cst_105 {dimension_numbers = #tpu.dot_dimension_numbers<[1], [0], [0], [1], [0, 0, 1, 1], [], []>} : vector<18x32xf32>, vector<32x128xf32>, vector<18x128xf32> -> vector<18x128xf32>
    %239 = vector.broadcast %14 : vector<1x128xf32> to vector<18x128xf32>
    %240 = arith.addf %238, %239 : vector<18x128xf32>
    %cst_106 = arith.constant 5.000000e-01 : f32
    %241 = vector.broadcast %cst_106 : f32 to vector<18x128xf32>
    %242 = arith.mulf %241, %240 : vector<18x128xf32>
    %cst_107 = arith.constant 0.636619746 : f32
    %243 = math.sqrt %cst_107 : f32
    %cst_108 = arith.constant 4.471500e-02 : f32
    %244 = vector.broadcast %cst_108 : f32 to vector<18x128xf32>
    %245 = arith.mulf %244, %240 : vector<18x128xf32>
    %246 = arith.mulf %245, %240 : vector<18x128xf32>
    %247 = arith.mulf %246, %240 : vector<18x128xf32>
    %248 = arith.addf %240, %247 : vector<18x128xf32>
    %249 = vector.broadcast %243 : f32 to vector<18x128xf32>
    %250 = arith.mulf %249, %248 : vector<18x128xf32>
    %251 = math.tanh %250 : vector<18x128xf32>
    %cst_109 = arith.constant 1.000000e+00 : f32
    %252 = vector.broadcast %cst_109 : f32 to vector<18x128xf32>
    %253 = arith.addf %252, %251 : vector<18x128xf32>
    %254 = arith.mulf %242, %253 : vector<18x128xf32>
    %cst_110 = arith.constant dense<0.000000e+00> : vector<18x32xf32>
    %255 = tpu.matmul %254, %16, %cst_110 {dimension_numbers = #tpu.dot_dimension_numbers<[1], [0], [0], [1], [0, 0, 1, 1], [], []>} : vector<18x128xf32>, vector<128x32xf32>, vector<18x32xf32> -> vector<18x32xf32>
    %256 = vector.broadcast %18 : vector<1x32xf32> to vector<18x32xf32>
    %257 = arith.addf %255, %256 : vector<18x32xf32>
    %258 = arith.addf %215, %257 : vector<18x32xf32>
    %c0_111 = arith.constant 0 : index
    %c0_112 = arith.constant 0 : index
    %259 = vector.load %arg18[%c0_111, %c0_112] : memref<18x32xf32, #tpu.memory_space<vmem>>, vector<18x32xf32>
    tpu.vector_store %arg18[%c0_111, %c0_112], %258 {strides = array<i32>} : memref<18x32xf32, #tpu.memory_space<vmem>>, vector<18x32xf32>,
    %c1_i32 = arith.constant 1 : i32
    %260 = arith.cmpi eq, %arg0, %c1_i32 : i32
    %261 = arith.extui %260 : i1 to i32
    %c0_i32_113 = arith.constant 0 : i32
    %262 = arith.cmpi ne, %261, %c0_i32_113 : i32
    scf.if %262 {
      %c0_114 = arith.constant 0 : index
      %c0_115 = arith.constant 0 : index
      %263 = vector.load %arg18[%c0_114, %c0_115] : memref<18x32xf32, #tpu.memory_space<vmem>>, vector<18x32xf32>
      %c0_116 = arith.constant 0 : index
      %c0_117 = arith.constant 0 : index
      %264 = vector.load %arg14[%c0_116, %c0_117] : memref<1x32xf32, #tpu.memory_space<vmem>>, vector<1x32xf32>
      %c0_118 = arith.constant 0 : index
      %c0_119 = arith.constant 0 : index
      %265 = vector.load %arg15[%c0_118, %c0_119] : memref<1x32xf32, #tpu.memory_space<vmem>>, vector<1x32xf32>
      %cst_120 = arith.constant dense<0.000000e+00> : vector<18xf32>
      %266 = vector.multi_reduction <add>, %263, %cst_120 [1] : vector<18x32xf32> to vector<18xf32>
      %267 = vector.shape_cast %266 : vector<18xf32> to vector<18x1xf32>
      %cst_121 = arith.constant 3.200000e+01 : f32
      %268 = vector.broadcast %cst_121 : f32 to vector<18x1xf32>
      %269 = arith.divf %267, %268 : vector<18x1xf32>
      %270 = vector.broadcast %269 : vector<18x1xf32> to vector<18x32xf32>
      %271 = arith.subf %263, %270 : vector<18x32xf32>
      %272 = arith.mulf %271, %271 : vector<18x32xf32>
      %cst_122 = arith.constant dense<0.000000e+00> : vector<18xf32>
      %273 = vector.multi_reduction <add>, %272, %cst_122 [1] : vector<18x32xf32> to vector<18xf32>
      %274 = vector.shape_cast %273 : vector<18xf32> to vector<18x1xf32>
      %cst_123 = arith.constant 3.200000e+01 : f32
      %275 = vector.broadcast %cst_123 : f32 to vector<18x1xf32>
      %276 = arith.divf %274, %275 : vector<18x1xf32>
      %277 = vector.broadcast %269 : vector<18x1xf32> to vector<18x32xf32>
      %278 = arith.subf %263, %277 : vector<18x32xf32>
      %cst_124 = arith.constant 9.99999974E-6 : f32
      %279 = vector.broadcast %cst_124 : f32 to vector<18x1xf32>
      %280 = arith.addf %276, %279 : vector<18x1xf32>
      %281 = math.rsqrt %280 : vector<18x1xf32>
      %282 = vector.broadcast %281 : vector<18x1xf32> to vector<18x32xf32>
      %283 = arith.mulf %278, %282 : vector<18x32xf32>
      %284 = vector.broadcast %264 : vector<1x32xf32> to vector<18x32xf32>
      %285 = arith.mulf %283, %284 : vector<18x32xf32>
      %286 = vector.broadcast %265 : vector<1x32xf32> to vector<18x32xf32>
      %287 = arith.addf %285, %286 : vector<18x32xf32>
      %c0_125 = arith.constant 0 : index
      %c0_126 = arith.constant 0 : index
      %288 = vector.load %arg16[%c0_125, %c0_126] : memref<128x32xf32, #tpu.memory_space<vmem>>, vector<128x32xf32>
      %cst_127 = arith.constant dense<0.000000e+00> : vector<18x128xf32>
      %289 = tpu.matmul %287, %288, %cst_127 {dimension_numbers = #tpu.dot_dimension_numbers<[1], [1], [0], [0], [0, 0, 1, 0], [], []>} : vector<18x32xf32>, vector<128x32xf32>, vector<18x128xf32> -> vector<18x128xf32>
      %c0_128 = arith.constant 0 : index
      %c0_129 = arith.constant 0 : index
      %290 = vector.load %arg17[%c0_128, %c0_129] : memref<18x128xf32, #tpu.memory_space<vmem>>, vector<18x128xf32>
      tpu.vector_store %arg17[%c0_128, %c0_129], %289 {strides = array<i32>} : memref<18x128xf32, #tpu.memory_space<vmem>>, vector<18x128xf32>,
    } else {
    }
    return
  }
  func.func @transform_0(%arg0: i32) -> (i32, i32) {
    %c0_i32 = arith.constant 0 : i32
    %c0_i32_0 = arith.constant 0 : i32
    %c0_i32_1 = arith.constant 0 : i32
    return %c0_i32, %c0_i32_0 : i32, i32
  }
  func.func @transform_1(%arg0: i32) -> (i32, i32, i32) {
    %c0_i32 = arith.constant 0 : i32
    %c0_i32_0 = arith.constant 0 : i32
    %c0_i32_1 = arith.constant 0 : i32
    return %arg0, %c0_i32, %c0_i32_0 : i32, i32, i32
  }
  func.func @transform_2(%arg0: i32) -> (i32, i32, i32) {
    %c0_i32 = arith.constant 0 : i32
    %c0_i32_0 = arith.constant 0 : i32
    %c0_i32_1 = arith.constant 0 : i32
    return %arg0, %c0_i32, %c0_i32_0 : i32, i32, i32
  }
  func.func @transform_3(%arg0: i32) -> (i32, i32, i32) {
    %c0_i32 = arith.constant 0 : i32
    %c0_i32_0 = arith.constant 0 : i32
    %c0_i32_1 = arith.constant 0 : i32
    return %arg0, %c0_i32, %c0_i32_0 : i32, i32, i32
  }
  func.func @transform_4(%arg0: i32) -> (i32, i32, i32) {
    %c0_i32 = arith.constant 0 : i32
    %c0_i32_0 = arith.constant 0 : i32
    %c0_i32_1 = arith.constant 0 : i32
    return %arg0, %c0_i32, %c0_i32_0 : i32, i32, i32
  }
  func.func @transform_5(%arg0: i32) -> (i32, i32, i32) {
    %c0_i32 = arith.constant 0 : i32
    %c0_i32_0 = arith.constant 0 : i32
    %c0_i32_1 = arith.constant 0 : i32
    return %arg0, %c0_i32, %c0_i32_0 : i32, i32, i32
  }
  func.func @transform_6(%arg0: i32) -> (i32, i32, i32) {
    %c0_i32 = arith.constant 0 : i32
    %c0_i32_0 = arith.constant 0 : i32
    %c0_i32_1 = arith.constant 0 : i32
    return %arg0, %c0_i32, %c0_i32_0 : i32, i32, i32
  }
  func.func @transform_7(%arg0: i32) -> (i32, i32, i32) {
    %c0_i32 = arith.constant 0 : i32
    %c0_i32_0 = arith.constant 0 : i32
    %c0_i32_1 = arith.constant 0 : i32
    return %arg0, %c0_i32, %c0_i32_0 : i32, i32, i32
  }
  func.func @transform_8(%arg0: i32) -> (i32, i32, i32) {
    %c0_i32 = arith.constant 0 : i32
    %c0_i32_0 = arith.constant 0 : i32
    %c0_i32_1 = arith.constant 0 : i32
    return %arg0, %c0_i32, %c0_i32_0 : i32, i32, i32
  }
  func.func @transform_9(%arg0: i32) -> (i32, i32, i32) {
    %c0_i32 = arith.constant 0 : i32
    %c0_i32_0 = arith.constant 0 : i32
    %c0_i32_1 = arith.constant 0 : i32
    return %arg0, %c0_i32, %c0_i32_0 : i32, i32, i32
  }
  func.func @transform_10(%arg0: i32) -> (i32, i32, i32) {
    %c0_i32 = arith.constant 0 : i32
    %c0_i32_0 = arith.constant 0 : i32
    %c0_i32_1 = arith.constant 0 : i32
    return %arg0, %c0_i32, %c0_i32_0 : i32, i32, i32
  }
  func.func @transform_11(%arg0: i32) -> (i32, i32, i32) {
    %c0_i32 = arith.constant 0 : i32
    %c0_i32_0 = arith.constant 0 : i32
    %c0_i32_1 = arith.constant 0 : i32
    return %arg0, %c0_i32, %c0_i32_0 : i32, i32, i32
  }
  func.func @transform_12(%arg0: i32) -> (i32, i32, i32) {
    %c0_i32 = arith.constant 0 : i32
    %c0_i32_0 = arith.constant 0 : i32
    %c0_i32_1 = arith.constant 0 : i32
    return %arg0, %c0_i32, %c0_i32_0 : i32, i32, i32
  }
  func.func @transform_13(%arg0: i32) -> (i32, i32) {
    %c0_i32 = arith.constant 0 : i32
    %c0_i32_0 = arith.constant 0 : i32
    %c0_i32_1 = arith.constant 0 : i32
    return %c0_i32, %c0_i32_0 : i32, i32
  }
  func.func @transform_14(%arg0: i32) -> (i32, i32) {
    %c0_i32 = arith.constant 0 : i32
    %c0_i32_0 = arith.constant 0 : i32
    %c0_i32_1 = arith.constant 0 : i32
    return %c0_i32, %c0_i32_0 : i32, i32
  }
  func.func @transform_15(%arg0: i32) -> (i32, i32) {
    %c0_i32 = arith.constant 0 : i32
    %c0_i32_0 = arith.constant 0 : i32
    %c0_i32_1 = arith.constant 0 : i32
    return %c0_i32, %c0_i32_0 : i32, i32
  }
  func.func @transform_16(%arg0: i32) -> (i32, i32) {
    %c0_i32 = arith.constant 0 : i32
    %c0_i32_0 = arith.constant 0 : i32
    %c0_i32_1 = arith.constant 0 : i32
    return %c0_i32, %c0_i32_0 : i32, i32
  }
}

</mosaic_0001>

<bundles_post_ra>
// kernel: combined_model.2
= control target key start
LH: loop header
LB: loop body
LE: loop exit
PB: predicated region body
PF: predicated region fallthrough
CT: control target
= control target key end

     0   :  { %s3683_s0 = inlined_call_operand.vmem [shape: f32[8,192], index: 0, kind: input, shape index: {}]   ;;  %s3684_s1 = inlined_call_operand.vmem [shape: f32[192,32], index: 1, kind: input, shape index: {}]   ;;  %s3685_s2 = inlined_call_operand.vmem [shape: f32[1,32], index: 2, kind: input, shape index: {}]   ;;  %s3686_s3 = inlined_call_operand.vmem [shape: f32[1,32], index: 3, kind: input, shape index: {}]   ;;  %s3687_s4 = inlined_call_operand.vmem [shape: f32[5,32], index: 4, kind: input, shape index: {}]   ;;  %s3688_s5 = inlined_call_operand.vmem [shape: f32[1,32], index: 5, kind: input, shape index: {}]   ;;  %s3689_s6 = inlined_call_operand.vmem [shape: f32[1,32], index: 6, kind: input, shape index: {}]   ;;  %s3690_s7 = inlined_call_operand.vmem [shape: f32[2,32,96], index: 7, kind: input, shape index: {}]   ;;  %s3691_s8 = inlined_call_operand.vmem [shape: f32[2,1,96], index: 8, kind: input, shape index: {}]   ;;  %s3692_s9 = inlined_call_operand.vmem [shape: f32[2,32,32], index: 9, kind: input, shape index: {}]   ;;  %s3693_s10 = inlined_call_operand.vmem [shape: f32[2,1,32], index: 10, kind: input, shape index: {}]   ;;  %s3694_s11 = inlined_call_operand.vmem [shape: f32[2,32,128], index: 11, kind: input, shape index: {}]   ;;  %s3695_s12 = inlined_call_operand.vmem [shape: f32[2,1,128], index: 12, kind: input, shape index: {}]   ;;  %s3696_s13 = inlined_call_operand.vmem [shape: f32[2,128,32], index: 13, kind: input, shape index: {}]   ;;  %s3697_s14 = inlined_call_operand.vmem [shape: f32[2,1,32], index: 14, kind: input, shape index: {}]   ;;  %s3698_s15 = inlined_call_operand.vmem [shape: f32[2,1,32], index: 15, kind: input, shape index: {}]   ;;  %s3699_s16 = inlined_call_operand.vmem [shape: f32[2,1,32], index: 16, kind: input, shape index: {}]   ;;  %s3700_s17 = inlined_call_operand.vmem [shape: f32[2,1,32], index: 17, kind: input, shape index: {}]   ;;  %s3701_s18 = inlined_call_operand.vmem [shape: f32[2,1,32], index: 18, kind: input, shape index: {}]   ;;  %s3702_s19 = inlined_call_operand.vmem [shape: f32[1,32], index: 19, kind: input, shape index: {}]   ;;  %s3703_s20 = inlined_call_operand.vmem [shape: f32[1,32], index: 20, kind: input, shape index: {}]   ;;  %s3704_s21 = inlined_call_operand.vmem [shape: f32[32,32], index: 21, kind: input, shape index: {}]   ;;  %s3705_s22 = inlined_call_operand.vmem [shape: f32[32,32], index: 22, kind: input, shape index: {}]   ;;  %s3706_s23 = inlined_call_operand.vmem [shape: f32[1,32], index: 23, kind: input, shape index: {}]   ;;  %s3707_s24 = inlined_call_operand.vmem [shape: f32[2,32], index: 24, kind: output, shape index: {}]  }
   0x1   :  { %3715 = sst [smem:[#allocation5_spill]] %s3683_s0 }
   0x2   :  { %3716 = sst [smem:[#allocation6_spill]] %s3684_s1 }
   0x3   :  { %3717 = sst [smem:[#allocation7_spill]] %s3685_s2 }
   0x4   :  { %3718 = sst [smem:[#allocation8_spill]] %s3686_s3 }
   0x5   :  { %3719 = sst [smem:[#allocation9_spill]] %s3687_s4 }
   0x6   :  { %3720 = sst [smem:[#allocation10_spill]] %s3688_s5  ;;  %s3231_s5 = smov 0  }
   0x7   :  { %3721 = sst [smem:[#allocation11_spill]] %s3689_s6 }
   0x8   :  { %3722 = sst [smem:[#allocation12_spill]] %s3690_s7 }
   0x9   :  { %3723 = sst [smem:[#allocation13_spill]] %s3691_s8 }
   0xa   :  { %3724 = sst [smem:[#allocation14_spill]] %s3692_s9 }
   0xb   :  { %3725 = sst [smem:[#allocation15_spill]] %s3694_s11 }
   0xc   :  { %3726 = sst [smem:[#allocation16_spill]] %s3702_s19 }
   0xd   :  { %3727 = sst [smem:[#allocation17_spill]] %s3703_s20 }
   0xe   :  { %3728 = sst [smem:[#allocation18_spill]] %s3705_s22 }
   0xf   :  { %3729 = sst [smem:[#allocation19_spill]] %s3706_s23 }
  0x10   :  { %3730 = sst [smem:[#allocation20_spill]] %s3707_s24 }
  0x11 LB: > { %3731 = sst [smem:[#allocation4_spill]] %s3093_s5  ;;  %s3237_s26 = sadd.s32 4294967295, %s3093_s5   ;;  %s3093_s5 = sphi %s3231_s5, %s34_s5  }
  0x12   : > { %p2749_p0 = scmp.ge.s32.totalorder %s3093_s5, 1  ;;  %p751_p1 = scmp.lt.s32.totalorder %s3093_s5, 3 }
  0x14   : > { %p752_p2 = pnand %p2749_p0, %p751_p1 }
  0x15   : > { %p851_p3 = scmp.lt.s32.totalorder (!%p752_p2), %s3237_s26, 1  ;;  %s3733_s3 = sld [smem:[#allocation12_spill]] (!%p752_p2) }
  0x16   : > { %755 = sbr.rel (%p752_p2) target bundleno = 3767 (0xeb7), region = 116  ;;  %s3734_s9 = sld [smem:[#allocation14_spill]] (!%p752_p2) }
  0x17   : > { %s3735_s11 = sld [smem:[#allocation15_spill]] (!%p752_p2)  ;;  %p2758_p4 = scmp.ne.s32.totalorder (!%p752_p2), %s3237_s26, 0 }
  0x1b   : > { %s3243_s27 = scalar_select %p851_p3, %s3237_s26, 1 }
  0x1c   : > { %s3736_s4 = sld [smem:[#allocation6_spill]] (!%p2758_p4) }
  0x1d   : > { %s2798_s28 = sshll.u32 %s3243_s27, 5  ;;  %s2801_s7 = sshll.u32 %s3243_s27, 7 }
  0x1e   : > { %s3253_s25 = scalar_lea.vmem %s3733_s3, %s2798_s28  ;;  %s3258_s1 = scalar_lea.vmem %s3734_s9, %s2798_s28 }
  0x1f   : > { %s3267_s22 = scalar_lea.vmem %s3735_s11, %s2798_s28  ;;  %s3277_s8 = scalar_lea.vmem %s3696_s13, %s2801_s7 }
  0x20   : > { %s885_s19 = scalar_lea.vmem %s3698_s15, %s3243_s27  ;;  %s888_s9 = scalar_lea.vmem %s3699_s16, %s3243_s27 }
  0x21   : > { %s891_s29 = scalar_lea.vmem %s3700_s17, %s3243_s27  ;;  %898 = sbr.rel (%p2758_p4) target bundleno = 594 (0x252), region = 120 }
  0x22   : > { %s3737_s23 = sld [smem:[#allocation5_spill]] (!%p2758_p4) }
  0x23   : > { %s3738_s11 = sld [smem:[#allocation8_spill]] (!%p2758_p4) }
  0x24   : > { %s3739_s2 = sld [smem:[#allocation9_spill]] (!%p2758_p4) }
  0x25   : > { %s3740_s3 = sld [smem:[#allocation7_spill]] (!%p2758_p4) }
  0x26   : > { %v916_v0 = vld [vmem:[%s3736_s4 + $0x78] sm:$0xff]  ;;  %v3095_v1 = vmov 0.0   ;;  %v915_v2 = vld [vmem:[%s3736_s4 + $0x70] sm:$0xff]  ;;  %v914_v3 = vld [vmem:[%s3736_s4 + $0x68] sm:$0xff]  ;;  %vm932_vm0 = vcmask 523264   ;;  %vm1011_vm1 = vcmask 253952  }
  0x27   : > { %936 = vmatprep.subr.mxu0 %v3095_v1  ;;  %v913_v4 = vld [vmem:[%s3736_s4 + $0x60] sm:$0xff]  ;;  %v912_v5 = vld [vmem:[%s3736_s4 + $0x58] sm:$0xff]  ;;  %v911_v8 = vld [vmem:[%s3736_s4 + $0x50] sm:$0xff]  ;;  %vm1064_vm2 = vcmask 261124   ;;  %vm1030_vm3 = vcmask 257024   ;;  %s3741_s7 = sld [smem:[#allocation10_spill]] }
  0x28   : > { %937 = vmatpush1.msra.mxu0 %v916_v0  ;;  %v900_v6 = vld [vmem:[%s3737_s23 + $0x8] sm:$0xff]  ;;  %v909_v13 = vld [vmem:[%s3736_s4 + $0x40] sm:$0xff]  ;;  %v908_v14 = vld [vmem:[%s3736_s4 + $0x38] sm:$0xff]  ;;  %s3742_s28 = sld [smem:[#allocation11_spill]] }
  0x29   : > { %938 = vmatprep.subr.mxu0 %v3095_v1  ;;  %v1008_v7 = vld [vmem:[%s3738_s11] sm:$0x1]  ;;  %2760 = vmatprep.mubr.msk.f32.mxu0 %vm932_vm0, %v900_v6  ;;  %v910_v11 = vld [vmem:[%s3736_s4 + $0x48] sm:$0xff]  ;;  %v907_v15 = vld [vmem:[%s3736_s4 + $0x30] sm:$0xff] }
  0x2a   : > { %939 = vmatpush1.msra.mxu0 %v915_v2  ;;  %v1009_v9 = vld [vmem:[%s3739_s2] sm:$0x1]  ;;  %v906_v16 = vld [vmem:[%s3736_s4 + $0x28] sm:$0xff]  ;;  %v904_v18 = vld [vmem:[%s3736_s4 + $0x18] sm:$0xff] }
  0x2b   : > { %940 = vmatprep.subr.mxu0 %v3095_v1  ;;  %v3332_v10 = vadd.f32 %v1009_v9, %v1008_v7  ;;  %v905_v17 = vld [vmem:[%s3736_s4 + $0x20] sm:$0xff]  ;;  %v903_v19 = vld [vmem:[%s3736_s4 + $0x10] sm:$0xff]  ;;  %v902_v20 = vld [vmem:[%s3736_s4 + $0x8] sm:$0xff]  ;;  %v1045_v7 = vlaneseq }
  0x2c   : > { %941 = vmatpush1.msra.mxu0 %v914_v3  ;;  %v901_v21 = vld [vmem:[%s3736_s4] sm:$0xff]  ;;  %v924_v22 = vld [vmem:[%s3736_s4 + $0xb8] sm:$0xff]  ;;  %v923_v23 = vld [vmem:[%s3736_s4 + $0xb0] sm:$0xff] }
  0x2d   : > { %942 = vmatprep.subr.mxu0 %v3095_v1  ;;  %v1012_v12 = vsel %vm1011_vm1, %v3332_v10, 0.0  ;;  %v922_v24 = vld [vmem:[%s3736_s4 + $0xa8] sm:$0xff]  ;;  %v921_v25 = vld [vmem:[%s3736_s4 + $0xa0] sm:$0xff]  ;;  %v920_v26 = vld [vmem:[%s3736_s4 + $0x98] sm:$0xff] }
  0x2e   : > { %943 = vmatpush1.msra.mxu0 %v913_v4  ;;  %1013 = vadd.xlane.f32.xlu0 %v1012_v12  ;;  %v919_v27 = vld [vmem:[%s3736_s4 + $0x90] sm:$0xff]  ;;  %v918_v28 = vld [vmem:[%s3736_s4 + $0x88] sm:$0xff]  ;;  %v917_v29 = vld [vmem:[%s3736_s4 + $0x80] sm:$0xff] }
  0x2f   : > { %944 = vmatprep.subr.mxu0 %v3095_v1  ;;  %v899_v30 = vld [vmem:[%s3737_s23] sm:$0xff] }
  0x30   : > { %945 = vmatpush1.msra.mxu0 %v912_v5  ;;  %v1028_v33 = vld [vmem:[%s3739_s2 + $0x1] sm:$0xf]  ;;  %v2759_v34 = vld [vmem:[%s3740_s3] ss:$0 sm:$0xff] }
  0x31   : > { %946 = vmatprep.subr.mxu0 %v3095_v1  ;;  %v1061_v36 = vrot.slane %v1028_v33, 4  ;;  %v1006_v60 = vld [vmem:[%s3741_s7] sm:$0x1] }
  0x32   : > { %947 = vmatpush1.msra.mxu0 %v911_v8  ;;  %v1007_v62 = vld [vmem:[%s3742_s28] sm:$0x1]  ;;  %v1046_v8 = vshrl.u32 %v1045_v7, 7 }
  0x33   : > { %948 = vmatprep.subr.mxu0 %v3095_v1 }
  0x34   : > { %949 = vmatpush1.msra.mxu0 %v910_v11  ;;  %v1047_v9 = vsub.s32 0, %v1046_v8 }
  0x35   : > { %950 = vmatprep.subr.mxu0 %v3095_v1 }
  0x36   : > { %951 = vmatpush1.msra.mxu0 %v909_v13  ;;  %v1055_v13 = vrot.slane %v1007_v62, %v1047_v9 }
  0x37   : > { %952 = vmatprep.subr.mxu0 %v3095_v1 }
  0x38   : > { %953 = vmatpush1.msra.mxu0 %v908_v14 }
  0x39   : > { %954 = vmatprep.subr.mxu0 %v3095_v1 }
  0x3a   : > { %955 = vmatpush1.msra.mxu0 %v907_v15 }
  0x3b   : > { %956 = vmatprep.subr.mxu0 %v3095_v1 }
  0x3c   : > { %957 = vmatpush1.msra.mxu0 %v906_v16 }
  0x3d   : > { %958 = vmatprep.subr.mxu0 %v3095_v1 }
  0x3e   : > { %959 = vmatpush1.msra.mxu0 %v905_v17 }
  0x3f   : > { %960 = vmatprep.subr.mxu0 %v3095_v1 }
  0x40   : > { %961 = vmatpush1.msra.mxu0 %v904_v18 }
  0x41   : > { %962 = vmatprep.subr.mxu0 %v3095_v1 }
  0x42   : > { %963 = vmatpush1.msra.mxu0 %v903_v19 }
  0x43   : > { %964 = vmatprep.subr.mxu0 %v3095_v1 }
  0x44   : > { %965 = vmatpush1.msra.mxu0 %v902_v20 }
  0x45   : > { %966 = vmatprep.subr.mxu0 %v3095_v1 }
  0x46   : > { %967 = vmatpush1.msra.mxu0 %v901_v21 }
  0x47   : > { %984 = vmatprep.subr.mxu0 %v3095_v1 }
  0x48   : > { %985 = vmatpush2.msra.mxu0 %v924_v22 }
  0x49   : > { %986 = vmatprep.subr.mxu0 %v3095_v1 }
  0x4a   : > { %987 = vmatpush2.msra.mxu0 %v923_v23 }
  0x4b   : > { %988 = vmatprep.subr.mxu0 %v3095_v1 }
  0x4c   : > { %989 = vmatpush2.msra.mxu0 %v922_v24 }
  0x4d   : > { %990 = vmatprep.subr.mxu0 %v3095_v1 }
  0x4e   : > { %991 = vmatpush2.msra.mxu0 %v921_v25 }
  0x4f   : > { %992 = vmatprep.subr.mxu0 %v3095_v1 }
  0x50   : > { %993 = vmatpush2.msra.mxu0 %v920_v26 }
  0x51   : > { %994 = vmatprep.subr.mxu0 %v3095_v1 }
  0x52   : > { %995 = vmatpush2.msra.mxu0 %v919_v27 }
  0x53   : > { %996 = vmatprep.subr.mxu0 %v3095_v1 }
  0x54   : > { %997 = vmatpush2.msra.mxu0 %v918_v28 }
  0x55   : > { %998 = vmatprep.subr.mxu0 %v3095_v1 }
  0x56   : > { %999 = vmatpush2.msra.mxu0 %v917_v29 }
  0x57   : > { %1001 = vmatmul.mubr.f32.vlgmr.msra.gmra.mxu0 %v899_v30 }
  0xb7   : > { %v1014_v31 = vpop.xlane.xlu0 %1013 }
  0xb8   : > { %v1016_v32 = vmul.f32 0.03125, %v1014_v31 }
  0xba   : > { %v1017_v35 = vsub.f32 %v3332_v10, %v1016_v32  ;;  %v1048_v10 = vrot.slane %v1006_v60, %v1047_v9 }
  0xbc   : > { %v1018_v42 = vmul.f32 %v1017_v35, %v1017_v35 }
  0xbe   : > { %v1019_v45 = vsel %vm1011_vm1, %v1018_v42, 0.0 }
 0x117   : > { %v1002_v37 = vpop.f32.mrf.mxu0 }
 0x118   : > { %v1003_v38 = vadd.f32 %v2759_v34, %v1002_v37 }
 0x119   : > { %v1004_v39 = vpop.f32.mrf.mxu0 }
 0x11a   : > { %v1063_v40 = vadd.f32 %v1061_v36, %v1003_v38  ;;  %v1029_v41 = vadd.f32 %v1028_v33, %v1003_v38 }
 0x11c   : > { %v1065_v43 = vsel %vm1064_vm2, %v1063_v40, 0.0  ;;  %v1031_v44 = vsel %vm1030_vm3, %v1029_v41, 0.0 }
 0x11d   : > { %1066 = vadd.xlane.f32.xlu1 %v1065_v43  ;;  %1032 = vadd.xlane.f32.xlu0 %v1031_v44 }
 0x121   : > { %1020 = vadd.xlane.f32.xlu1 %v1019_v45 }
 0x1a6   : > { %v1067_v46 = vpop.xlane.xlu1 %1066  ;;  %v1033_v47 = vpop.xlane.xlu0 %1032 }
 0x1a7   : > { %v1068_v48 = vmul.f32 0.03125, %v1067_v46  ;;  %v1034_v49 = vmul.f32 0.03125, %v1033_v47 }
 0x1a9   : > { %v1069_v50 = vsub.f32 %v1063_v40, %v1068_v48  ;;  %v1035_v51 = vsub.f32 %v1029_v41, %v1034_v49 }
 0x1aa   : > { %v1021_v52 = vpop.xlane.xlu1 %1020 }
 0x1ab   : > { %v1022_v53 = vmul.f32 0.03125, %v1021_v52  ;;  %v1070_v54 = vmul.f32 %v1069_v50, %v1069_v50  ;;  %v1036_v55 = vmul.f32 %v1035_v51, %v1035_v51 }
 0x1ad   : > { %v1023_v56 = vadd.f32 1e-05, %v1022_v53  ;;  %v1071_v57 = vsel %vm1064_vm2, %v1070_v54, 0.0  ;;  %v1037_v58 = vsel %vm1030_vm3, %v1036_v55, 0.0 }
 0x1ae   : > { %1072 = vadd.xlane.f32.xlu1 %v1071_v57  ;;  %1038 = vadd.xlane.f32.xlu0 %v1037_v58 }
 0x1af   : > { %3045 = vrsqrt.f32 %v1023_v56 }
 0x1bc   : > { %v3046_v59 = vpop.eup %3045 }
 0x1bd   : > { %v1025_v61 = vmul.f32 %v3046_v59, %v1017_v35 }
 0x1bf   : > { %v1026_v63 = vmul.f32 %v1025_v61, %v1006_v60 }
 0x1c1   : > { %v1027_v0 = vadd.f32 %v1026_v63, %v1007_v62 }
 0x1c3   : > { %1058 = vst.msk [vmem:[#allocation2] sm:$0x1] %vm1011_vm1, %v1027_v0  ;;  %1080 = vst.msk [vmem:[#allocation2 + $0x5] sm:$0x1] %vm1011_vm1, %v1027_v0 }
 0x237   : > { %v1073_v1 = vpop.xlane.xlu1 %1072  ;;  %v1039_v2 = vpop.xlane.xlu0 %1038 }
 0x238   : > { %v1074_v3 = vmul.f32 0.03125, %v1073_v1  ;;  %v1040_v4 = vmul.f32 0.03125, %v1039_v2 }
 0x23a   : > { %v1075_v5 = vadd.f32 1e-05, %v1074_v3  ;;  %v1041_v6 = vadd.f32 1e-05, %v1040_v4 }
 0x23c   : > { %3047 = vrsqrt.f32 %v1075_v5 }
 0x23d   : > { %3049 = vrsqrt.f32 %v1041_v6 }
 0x249   : > { %v3048_v11 = vpop.eup %3047 }
 0x24a   : > { %v3050_v12 = vpop.eup %3049  ;;  %v1077_v14 = vmul.f32 %v3048_v11, %v1069_v50 }
 0x24b   : > { %v1043_v15 = vmul.f32 %v3050_v12, %v1035_v51 }
 0x24c   : > { %v1078_v16 = vmul.f32 %v1077_v14, %v1048_v10 }
 0x24d   : > { %v1050_v17 = vmul.f32 %v1048_v10, %v1043_v15 }
 0x24e   : > { %v1079_v18 = vadd.f32 %v1078_v16, %v1055_v13 }
 0x24f   : > { %v1057_v19 = vadd.f32 %v1055_v13, %v1050_v17 }
 0x250   : > { %1081 = vst.msk [vmem:[#allocation2 + $0x2] sm:$0xf0] %vm1064_vm2, %v1079_v18 }
 0x251   : > { %1059 = vst.msk [vmem:[#allocation2 + $0x1] sm:$0xf] %vm1030_vm3, %v1057_v19 }
 0x252 PF: > { %vm1120_vm4 = vcmask 261120   ;;  %vm1124_vm5 = vcmask 254976   ;;  %v1085_v34 = vld [vmem:[%s3253_s25 + $0x18] sm:$0xff]  ;;  %v1084_v35 = vld [vmem:[%s3253_s25 + $0x10] sm:$0xff]  ;;  %v1083_v36 = vld [vmem:[%s3253_s25 + $0x8] sm:$0xff]  ;;  %v3096_v54 = vmov 0.0   ;;  %s3745_s0 = scalar_lea.vmem %s3693_s10, %s3243_s27 }
 0x253   : > { %2874 = vmatprep.subr.mxu1 %v1085_v34  ;;  %v1082_v37 = vld [vmem:[%s3253_s25] sm:$0xff]  ;;  %2895 = vmatprep.subr.mxu0 %v3096_v54  ;;  %vm3097_vm6 = vmmov 0   ;;  %vm1598_vm7 = vcmask 1042432   ;;  %s3098_s24 = smov 80   ;;  %s3099_s7 = smov 96   ;;  %vm1255_vm8 = vcmask 130048  }
 0x254   : > { %2875 = vmatpush3.msra.mxu1 %v1085_v34  ;;  %v2761_v45 = vld [vmem:[%s885_s19] ss:$0 sm:$0xff]  ;;  %2897 = vmatprep.mubr.msk.f32.mxu0 %vm3097_vm6, %v3096_v54  ;;  %s3743_s19 = sld [smem:[#allocation13_spill]]  ;;  %s3100_s20 = smov 112   ;;  %vm1331_vm9 = vcmask 36864   ;;  %vm1349_vm10 = vcmask 1044480  }
 0x255   : > { %2876 = vmatprep.subr.mxu1 %v1084_v35  ;;  %v2762_v47 = vld [vmem:[%s888_s9] ss:$0 sm:$0xff]  ;;  %s3101_s11 = smov 48   ;;  %s3102_s28 = smov 64   ;;  %vm1345_vm11 = vcmask 39936   ;;  %vm1422_vm12 = vcmask 126976  }
 0x256   : > { %2877 = vmatpush3.msra.mxu1 %v1084_v35  ;;  %s3103_s6 = smov 16   ;;  %vm1595_vm13 = vcmask 258176   ;;  %p2791_p5 = scmp.ne.s32.totalorder %s3237_s26, 1 }
 0x257   : > { %v3436_v21 = vld [vmem:[#allocation2 + $0x8] sm:$0x3]  ;;  %2878 = vmatprep.subr.mxu1 %v1083_v36  ;;  %s3750_s26 = sld [smem:[#allocation16_spill]] (!%p2791_p5) }
 0x258   : > { %v3434_v20 = vld [vmem:[#allocation2] sm:$0xff]  ;;  %v1125_v23 = vsel %vm1124_vm5, %v3436_v21, 0.0  ;;  %2879 = vmatpush3.msra.mxu1 %v1083_v36  ;;  %s3752_s30 = sld [smem:[#allocation19_spill]] (!%p2791_p5) }
 0x259   : > { %v1121_v22 = vsel %vm1120_vm4, %v3434_v20, 0.0  ;;  %2880 = vmatprep.subr.mxu1 %v1082_v37  ;;  %s3753_s9 = sld [smem:[#allocation20_spill]] (!%p2791_p5) }
 0x25a   : > { %1122 = vadd.xlane.f32.xlu0 %v1121_v22  ;;  %2881 = vmatpush3.msra.mxu1 %v1082_v37  ;;  %s3744_s5 = scalar_lea.vmem %s3743_s19, %s3243_s27  ;;  %s3746_s19 = scalar_lea.vmem %s3701_s18, %s3243_s27 }
 0x25b   : > { %2885 = vmatprep.subr.mxu1 %v3096_v54  ;;  %v2763_v55 = vld [vmem:[%s3744_s5] ss:$0 sm:$0xff] }
 0x25e   : > { %1126 = vadd.xlane.f32.xlu0 %v1125_v23 }
 0x2e3   : > { %v1123_v24 = vpop.xlane.xlu0 %1122 }
 0x2e4   : > { %v1129_v25 = vmul.f32 0.03125, %v1123_v24 }
 0x2e6   : > { %v1131_v26 = vsub.f32 %v3434_v20, %v1129_v25 }
 0x2e7   : > { %v1127_v27 = vpop.xlane.xlu0 %1126 }
 0x2e8   : > { %v1130_v28 = vmul.f32 0.03125, %v1127_v27  ;;  %v1133_v29 = vmul.f32 %v1131_v26, %v1131_v26 }
 0x2ea   : > { %v1132_v30 = vsub.f32 %v3436_v21, %v1130_v28  ;;  %v1135_v31 = vsel %vm1120_vm4, %v1133_v29, 0.0 }
 0x2eb   : > { %1136 = vadd.xlane.f32.xlu1 %v1135_v31 }
 0x2ec   : > { %v1134_v32 = vmul.f32 %v1132_v30, %v1132_v30 }
 0x2ee   : > { %v1138_v33 = vsel %vm1124_vm5, %v1134_v32, 0.0 }
 0x2ef   : > { %1139 = vadd.xlane.f32.xlu1 %v1138_v33 }
 0x374   : > { %v1137_v38 = vpop.xlane.xlu1 %1136 }
 0x375   : > { %v1141_v39 = vmul.f32 0.03125, %v1137_v38 }
 0x377   : > { %v1143_v40 = vadd.f32 1e-05, %v1141_v39 }
 0x378   : > { %v1140_v41 = vpop.xlane.xlu1 %1139 }
 0x379   : > { %3051 = vrsqrt.f32 %v1143_v40  ;;  %v1142_v42 = vmul.f32 0.03125, %v1140_v41 }
 0x37b   : > { %v1144_v43 = vadd.f32 1e-05, %v1142_v42 }
 0x37d   : > { %3053 = vrsqrt.f32 %v1144_v43 }
 0x386   : > { %v3052_v44 = vpop.eup %3051 }
 0x387   : > { %v1147_v46 = vmul.f32 %v3052_v44, %v1131_v26 }
 0x389   : > { %v1155_v48 = vmul.f32 %v2761_v45, %v1147_v46 }
 0x38a   : > { %v3054_v49 = vpop.eup %3053 }
 0x38b   : > { %v1148_v50 = vmul.f32 %v3054_v49, %v1132_v30  ;;  %v1163_v51 = vadd.f32 %v2762_v47, %v1155_v48 }
 0x38d   : > { %v1156_v52 = vmul.f32 %v2761_v45, %v1148_v50  ;;  %2882 = vmatprep.mubr.msk.f32.mxu1 %vm1120_vm4, %v1163_v51 }
 0x38f   : > { %v1164_v53 = vadd.f32 %v2762_v47, %v1156_v52 }
 0x391   : > { %2883 = vmatmul.mubr.msk.f32.vlgmr.msra.gmra.mxu1 %vm1120_vm4, %v1164_v53 }
 0x392   : > { %2887 = vmatprep.mubr.msk.f32.mxu1 %vm3097_vm6, %v3096_v54 }
 0x451   : > { %v2884_v56 = vpop.f32.mrf.mxu1 }
 0x452   : > { %v1249_v57 = vadd.f32 %v2884_v56, %v2763_v55 }
 0x453   : > { %v1243_v58 = vpop.f32.mrf.mxu1 }
 0x454   : > { %v3473_v59 = vadd.f32 %v2763_v55, %v1243_v58  ;;  %v1600_v60 = vrot.slane %v1249_v57, 5 }
 0x456   : > { %1426 = vrot.lane.b32.xlu1 %v3473_v59, %s3098_s24  ;;  %1253 = vrot.lane.b32.xlu0 %v3473_v59, %s3099_s7  ;;  %v1599_v61 = vrot.slane %v3473_v59, 5 }
 0x458   : > { %v3478_v62 = vsel %vm1598_vm7, %v1599_v61, %v1600_v60 }
 0x45a   : > { %1424 = vrot.lane.b32.xlu1 %v3473_v59, %s3100_s20  ;;  %1770 = vrot.lane.b32.xlu0 %v3478_v62, %s3098_s24  ;;  %s3747_s24 = scalar_lea.vmem %s3695_s12, %s3243_s27 }
 0x45e   : > { %1602 = vrot.lane.b32.xlu1 %v3478_v62, %s3099_s7 }
 0x462   : > { %1768 = vrot.lane.b32.xlu1 %v3478_v62, %s3100_s20  ;;  %s3748_s20 = scalar_lea.vmem %s3697_s14, %s3243_s27 }
 0x4c8   : > { %v1427_v63 = vpop.permute.xlu1 %1426  ;;  %v1254_v0 = vpop.permute.xlu0 %1253 }
 0x4c9   : > { %2886 = vmatpush3.xpose.msk.msra.mxu1 %vm1255_vm8, %v1254_v0  ;;  %2896 = vmatpush3.xpose.msk.msra.mxu0 %vm1255_vm8, %v1427_v63 }
 0x4ca   : > { %2905 = vmatprep.subr.mxu0 %v3096_v54  ;;  %2890 = vmatprep.subr.mxu1 %v3096_v54 }
 0x4cc   : > { %v1425_v1 = vpop.permute.xlu1 %1424  ;;  %2888 = vmatmul.mubr.msk.f32.vlgmr.msra.gmra.mxu1 %vm1255_vm8, %v3473_v59  ;;  %v1771_v3 = vpop.permute.xlu0 %1770 }
 0x4cd   : > { %2898 = vmatmul.mubr.msk.f32.vlgmr.msra.gmra.mxu0 %vm1255_vm8, %v1425_v1  ;;  %2892 = vmatprep.mubr.msk.f32.mxu1 %vm3097_vm6, %v3096_v54  ;;  %v1090_v1 = vld [vmem:[%s3258_s1 + $0x18] sm:$0xff] }
 0x4ce   : > { %2907 = vmatprep.mubr.msk.f32.mxu0 %vm3097_vm6, %v3096_v54 }
 0x4d0   : > { %v1603_v2 = vpop.permute.xlu1 %1602 }
 0x4d1   : > { %2906 = vmatpush3.xpose.msk.msra.mxu0 %vm1255_vm8, %v1603_v2  ;;  %v1089_v2 = vld [vmem:[%s3258_s1 + $0x10] sm:$0xff] }
 0x4d2   : > { %2915 = vmatprep.subr.mxu0 %v3096_v54 }
 0x4d4   : > { %2908 = vmatmul.mubr.msk.f32.vlgmr.msra.gmra.mxu0 %vm1255_vm8, %v3478_v62  ;;  %v1769_v4 = vpop.permute.xlu1 %1768 }
 0x4d5   : > { %2916 = vmatpush3.xpose.msk.msra.mxu0 %vm1255_vm8, %v1771_v3  ;;  %2917 = vmatprep.mubr.msk.f32.mxu0 %vm3097_vm6, %v3096_v54  ;;  %v1088_v3 = vld [vmem:[%s3258_s1 + $0x8] sm:$0xff] }
 0x4d8   : > { %2918 = vmatmul.mubr.msk.f32.vlgmr.msra.gmra.mxu0 %vm1255_vm8, %v1769_v4  ;;  %v1087_v4 = vld [vmem:[%s3258_s1] sm:$0xff] }
 0x58c   : > { %v1326_v5 = vpop.f32.mrf.mxu1 }
 0x58d   : > { %v1330_v6 = vmul.f32 0.25, %v1326_v5  ;;  %v1498_v7 = vpop.f32.mrf.mxu0 }
 0x58e   : > { %v1502_v8 = vmul.f32 0.25, %v1498_v7  ;;  %v2889_v9 = vpop.f32.mrf.mxu1 }
 0x58f   : > { %v2899_v10 = vpop.f32.mrf.mxu0  ;;  %v1332_v11 = vsel %vm1331_vm9, %v1330_v6, -inf }
 0x590   : > { %1333 = vmax.xlane.f32.xlu0 %v1332_v11  ;;  %v1503_v12 = vsel %vm1331_vm9, %v1502_v8, -inf  ;;  %v2782_v11 = vld [vmem:[%s3745_s0] ss:$0 sm:$0xff] }
 0x591   : > { %1504 = vmax.xlane.f32.xlu1 %v1503_v12 }
 0x594   : > { %v1674_v13 = vpop.f32.mrf.mxu0 }
 0x595   : > { %v1678_v14 = vmul.f32 0.25, %v1674_v13 }
 0x596   : > { %v2909_v15 = vpop.f32.mrf.mxu0 }
 0x597   : > { %v1679_v16 = vsel %vm1331_vm9, %v1678_v14, -inf }
 0x598   : > { %1680 = vmax.xlane.f32.xlu0 %v1679_v16  ;;  %v1842_v17 = vpop.f32.mrf.mxu0 }
 0x599   : > { %v1846_v18 = vmul.f32 0.25, %v1842_v17 }
 0x59a   : > { %v2919_v19 = vpop.f32.mrf.mxu0 }
 0x59b   : > { %v1847_v22 = vsel %vm1331_vm9, %v1846_v18, -inf }
 0x59c   : > { %1848 = vmax.xlane.f32.xlu0 %v1847_v22 }
 0x619   : > { %v1334_v23 = vpop.xlane.xlu0 %1333 }
 0x61a   : > { %v1335_v24 = vsub.f32 %v1330_v6, %v1334_v23  ;;  %v1505_v25 = vpop.xlane.xlu1 %1504 }
 0x61b   : > { %v1506_v26 = vsub.f32 %v1502_v8, %v1505_v25 }
 0x61c   : > { %v1336_v27 = vmul.f32 1.442695, %v1335_v24 }
 0x61d   : > { %v1507_v28 = vmul.f32 1.442695, %v1506_v26 }
 0x61e   : > { %3055 = vpow2.f32 %v1336_v27 }
 0x61f   : > { %3057 = vpow2.f32 %v1507_v28 }
 0x621   : > { %v1681_v29 = vpop.xlane.xlu0 %1680 }
 0x622   : > { %v1682_v30 = vsub.f32 %v1678_v14, %v1681_v29 }
 0x624   : > { %v1683_v31 = vmul.f32 1.442695, %v1682_v30  ;;  %v1095_v30 = vld [vmem:[%s3267_s22 + $0x18] sm:$0xff] }
 0x625   : > { %v1849_v38 = vpop.xlane.xlu0 %1848 }
 0x626   : > { %3059 = vpow2.f32 %v1683_v31  ;;  %v1850_v39 = vsub.f32 %v1846_v18, %v1849_v38  ;;  %v1094_v31 = vld [vmem:[%s3267_s22 + $0x10] sm:$0xff] }
 0x628   : > { %v1851_v40 = vmul.f32 1.442695, %v1850_v39 }
 0x62a   : > { %3061 = vpow2.f32 %v1851_v40 }
 0x62b   : > { %v3056_v32 = vpop.eup %3055 }
 0x62c   : > { %v3058_v33 = vpop.eup %3057  ;;  %v1338_v34 = vsel %vm1331_vm9, %v3056_v32, 0.0 }
 0x62d   : > { %1339 = vadd.xlane.f32.xlu0 %v1338_v34  ;;  %v1509_v35 = vsel %vm1331_vm9, %v3058_v33, 0.0 }
 0x62e   : > { %1510 = vadd.xlane.f32.xlu1 %v1509_v35 }
 0x633   : > { %v3060_v36 = vpop.eup %3059 }
 0x634   : > { %v1685_v37 = vsel %vm1331_vm9, %v3060_v36, 0.0 }
 0x635   : > { %1686 = vadd.xlane.f32.xlu0 %v1685_v37 }
 0x637   : > { %v3062_v41 = vpop.eup %3061 }
 0x638   : > { %v1853_v42 = vsel %vm1331_vm9, %v3062_v41, 0.0 }
 0x63f   : > { %1514 = vrot.lane.b32.xlu1 %v3473_v59, %s3101_s11 }
 0x643   : > { %1690 = vrot.lane.b32.xlu1 %v3478_v62, %s3102_s28 }
 0x64b   : > { %1343 = vrot.lane.b32.xlu0 %v3473_v59, %s3102_s28  ;;  %s3751_s28 = sld [smem:[#allocation17_spill]] (!%p2791_p5) }
 0x667   : > { %1854 = vadd.xlane.f32.xlu1 %v1853_v42 }
 0x678   : > { %1858 = vrot.lane.b32.xlu1 %v3478_v62, %s3101_s11 }
 0x6b6   : > { %v1340_v43 = vpop.xlane.xlu0 %1339 }
 0x6b7   : > { %3063 = vrcp.f32 %v1340_v43  ;;  %v1511_v44 = vpop.xlane.xlu1 %1510  ;;  %v2786_v43 = vld [vmem:[%s3746_s19] ss:$0 sm:$0xff] }
 0x6b8   : > { %3065 = vrcp.f32 %v1511_v44 }
 0x6bb   : > { %v1515_v48 = vpop.permute.xlu1 %1514 }
 0x6be   : > { %v1687_v45 = vpop.xlane.xlu0 %1686 }
 0x6bf   : > { %3067 = vrcp.f32 %v1687_v45  ;;  %v1691_v52 = vpop.permute.xlu1 %1690 }
 0x6c2   : > { %v1344_v46 = vpop.permute.xlu0 %1343 }
 0x6c3   : > { %2891 = vmatpush3.msk.msra.mxu1 %vm1349_vm10, %v1344_v46 }
 0x6c4   : > { %v3064_v47 = vpop.eup %3063  ;;  %2900 = vmatprep.subr.mxu1 %v3096_v54 }
 0x6c5   : > { %v1342_v49 = vmul.f32 %v3064_v47, %v3056_v32  ;;  %v3066_v50 = vpop.eup %3065  ;;  %v1093_v32 = vld [vmem:[%s3267_s22 + $0x8] sm:$0xff] }
 0x6c6   : > { %v1513_v51 = vmul.f32 %v3066_v50, %v3058_v33  ;;  %v1092_v33 = vld [vmem:[%s3267_s22] sm:$0xff]  ;;  %v1112_v50 = vld [vmem:[%s3277_s8 + $0x78] sm:$0xff]  ;;  %s3749_s22 = sld [smem:[#allocation18_spill]] (!%p2791_p5) }
 0x6c7   : > { %2893 = vmatmul.mubr.msk.f32.vlgmr.msra.gmra.mxu1 %vm1345_vm11, %v1342_v49  ;;  %2947 = vmatprep.subr.mxu0 %v1112_v50 }
 0x6c8   : > { %2901 = vmatpush3.msk.msra.mxu1 %vm1349_vm10, %v1515_v48  ;;  %2902 = vmatprep.mubr.msk.f32.mxu1 %vm3097_vm6, %v3096_v54 }
 0x6c9   : > { %2910 = vmatprep.subr.mxu1 %v3096_v54  ;;  %2948 = vmatpush3.msra.mxu0 %v1112_v50 }
 0x6cb   : > { %2903 = vmatmul.mubr.msk.f32.vlgmr.msra.gmra.mxu1 %vm1345_vm11, %v1513_v51  ;;  %v1111_v51 = vld [vmem:[%s3277_s8 + $0x70] sm:$0xff] }
 0x6cc   : > { %v3068_v53 = vpop.eup %3067  ;;  %2911 = vmatpush3.msk.msra.mxu1 %vm1349_vm10, %v1691_v52  ;;  %2912 = vmatprep.mubr.msk.f32.mxu1 %vm3097_vm6, %v3096_v54  ;;  %v1110_v52 = vld [vmem:[%s3277_s8 + $0x68] sm:$0xff] }
 0x6cd   : > { %v1689_v55 = vmul.f32 %v3068_v53, %v3060_v36  ;;  %2920 = vmatprep.subr.mxu1 %v3096_v54  ;;  %2949 = vmatprep.subr.mxu0 %v1111_v51  ;;  %v1109_v53 = vld [vmem:[%s3277_s8 + $0x60] sm:$0xff] }
 0x6ce   : > { %2950 = vmatpush3.msra.mxu0 %v1111_v51 }
 0x6cf   : > { %2913 = vmatmul.mubr.msk.f32.vlgmr.msra.gmra.mxu1 %vm1345_vm11, %v1689_v55  ;;  %2951 = vmatprep.subr.mxu0 %v1110_v52  ;;  %v1108_v55 = vld [vmem:[%s3277_s8 + $0x58] sm:$0xff] }
 0x6d0   : > { %2922 = vmatprep.mubr.msk.f32.mxu1 %vm3097_vm6, %v3096_v54  ;;  %2952 = vmatpush3.msra.mxu0 %v1110_v52 }
 0x6d1   : > { %2953 = vmatprep.subr.mxu0 %v1109_v53 }
 0x6d2   : > { %2954 = vmatpush3.msra.mxu0 %v1109_v53 }
 0x6d3   : > { %2955 = vmatprep.subr.mxu0 %v1108_v55 }
 0x6d4   : > { %2956 = vmatpush3.msra.mxu0 %v1108_v55 }
 0x6f0   : > { %v1855_v56 = vpop.xlane.xlu1 %1854 }
 0x6f1   : > { %3069 = vrcp.f32 %v1855_v56  ;;  %v1107_v56 = vld [vmem:[%s3277_s8 + $0x50] sm:$0xff] }
 0x6f2   : > { %2957 = vmatprep.subr.mxu0 %v1107_v56 }
 0x6f3   : > { %2958 = vmatpush3.msra.mxu0 %v1107_v56 }
 0x6f4   : > { %v1859_v57 = vpop.permute.xlu1 %1858 }
 0x6f5   : > { %2921 = vmatpush3.msk.msra.mxu1 %vm1349_vm10, %v1859_v57  ;;  %v1106_v57 = vld [vmem:[%s3277_s8 + $0x48] sm:$0xff] }
 0x6f6   : > { %2925 = vmatprep.subr.mxu1 %v1090_v1  ;;  %2959 = vmatprep.subr.mxu0 %v1106_v57 }
 0x6f7   : > { %2960 = vmatpush3.msra.mxu0 %v1106_v57 }
 0x6fe   : > { %v3070_v58 = vpop.eup %3069 }
 0x6ff   : > { %v1857_v59 = vmul.f32 %v3070_v58, %v3062_v41  ;;  %v2785_v41 = vld [vmem:[%s891_s29] ss:$0 sm:$0xff] }
 0x700   : > { %v1105_v58 = vld [vmem:[%s3277_s8 + $0x40] sm:$0xff] }
 0x701   : > { %2923 = vmatmul.mubr.msk.f32.vlgmr.msra.gmra.mxu1 %vm1345_vm11, %v1857_v59  ;;  %2961 = vmatprep.subr.mxu0 %v1105_v58  ;;  %v1104_v59 = vld [vmem:[%s3277_s8 + $0x38] sm:$0xff] }
 0x702   : > { %2926 = vmatpush3.msra.mxu1 %v1090_v1  ;;  %2962 = vmatpush3.msra.mxu0 %v1105_v58  ;;  %v1097_v1 = vld [vmem:[%s3277_s8] sm:$0xff] }
 0x703   : > { %2927 = vmatprep.subr.mxu1 %v1089_v2  ;;  %2963 = vmatprep.subr.mxu0 %v1104_v59 }
 0x704   : > { %2928 = vmatpush3.msra.mxu1 %v1089_v2  ;;  %2964 = vmatpush3.msra.mxu0 %v1104_v59  ;;  %v2787_v2 = vld [vmem:[%s3747_s24] ss:$0 sm:$0xff] }
 0x705   : > { %2929 = vmatprep.subr.mxu1 %v1088_v3 }
 0x706   : > { %2930 = vmatpush3.msra.mxu1 %v1088_v3 }
 0x707   : > { %2931 = vmatprep.subr.mxu1 %v1087_v4 }
 0x708   : > { %2932 = vmatpush3.msra.mxu1 %v1087_v4 }
 0x709   : > { %2936 = vmatprep.subr.mxu1 %v1095_v30 }
 0x787   : > { %v1418_v60 = vpop.f32.mrf.mxu1 }
 0x788   : > { %1423 = vst.msk [vmem:[#allocation3] sm:$0x1f] %vm1422_vm12, %v1418_v60  ;;  %v1103_v60 = vld [vmem:[%s3277_s8 + $0x30] sm:$0xff] }
 0x789   : > { %v2894_v61 = vpop.f32.mrf.mxu1  ;;  %2965 = vmatprep.subr.mxu0 %v1103_v60 }
 0x78a   : > { %2966 = vmatpush3.msra.mxu0 %v1103_v60  ;;  %v1102_v61 = vld [vmem:[%s3277_s8 + $0x28] sm:$0xff] }
 0x78b   : > { %v1587_v62 = vpop.f32.mrf.mxu1  ;;  %2967 = vmatprep.subr.mxu0 %v1102_v61 }
 0x78c   : > { %1592 = vrot.lane.b32.xlu0 %v1587_v62, %s3103_s6  ;;  %2968 = vmatpush3.msra.mxu0 %v1102_v61  ;;  %v1101_v62 = vld [vmem:[%s3277_s8 + $0x20] sm:$0xff] }
 0x78d   : > { %v2904_v54 = vpop.f32.mrf.mxu1  ;;  %2969 = vmatprep.subr.mxu0 %v1101_v62 }
 0x78e   : > { %2970 = vmatpush3.msra.mxu0 %v1101_v62  ;;  %v1100_v54 = vld [vmem:[%s3277_s8 + $0x18] sm:$0xff] }
 0x78f   : > { %v1763_v63 = vpop.f32.mrf.mxu1  ;;  %2971 = vmatprep.subr.mxu0 %v1100_v54 }
 0x790   : > { %1767 = vst.msk [vmem:[#allocation3 + $0x5] sm:$0x1f] %vm1422_vm12, %v1763_v63  ;;  %2972 = vmatpush3.msra.mxu0 %v1100_v54  ;;  %v1099_v63 = vld [vmem:[%s3277_s8 + $0x10] sm:$0xff] }
 0x791   : > { %v2914_v0 = vpop.f32.mrf.mxu1  ;;  %2973 = vmatprep.subr.mxu0 %v1099_v63 }
 0x792   : > { %2974 = vmatpush3.msra.mxu0 %v1099_v63  ;;  %v1098_v0 = vld [vmem:[%s3277_s8 + $0x8] sm:$0xff] }
 0x793   : > { %2975 = vmatprep.subr.mxu0 %v1098_v0 }
 0x794   : > { %2976 = vmatpush3.msra.mxu0 %v1098_v0 }
 0x795   : > { %2977 = vmatprep.subr.mxu0 %v1097_v1 }
 0x796   : > { %2978 = vmatpush3.msra.mxu0 %v1097_v1 }
 0x7c1   : > { %v1931_v5 = vpop.f32.mrf.mxu1 }
 0x7c2   : > { %1936 = vrot.lane.b32.xlu1 %v1931_v5, %s3103_s6 }
 0x7c3   : > { %v2924_v6 = vpop.f32.mrf.mxu1 }
 0x7fe   : > { %v1593_v7 = vpop.permute.xlu0 %1592 }
 0x7ff   : > { %1596 = vst.msk [vmem:[#allocation3] sm:$0x1f] %vm1595_vm13, %v1593_v7 }
 0x834   : > { %v1937_v8 = vpop.permute.xlu1 %1936 }
 0x835   : > { %1939 = vst.msk [vmem:[#allocation3 + $0x5] sm:$0x1f] %vm1595_vm13, %v1937_v8 }
 0x83c   : > { %v1940_v9 = vld [vmem:[#allocation3] sm:$0xff]  ;;  %v1941_v10 = vld [vmem:[#allocation3 + $0x8] sm:$0x3] }
 0x83d   : > { %2933 = vmatprep.mubr.msk.f32.mxu1 %vm1120_vm4, %v1940_v9 }
 0x83e   : > { %2934 = vmatmul.mubr.msk.f32.vlgmr.msra.gmra.mxu1 %vm1120_vm4, %v1941_v10 }
 0x83f   : > { %2937 = vmatpush3.msra.mxu1 %v1095_v30 }
 0x840   : > { %2938 = vmatprep.subr.mxu1 %v1094_v31 }
 0x841   : > { %2939 = vmatpush3.msra.mxu1 %v1094_v31 }
 0x842   : > { %2940 = vmatprep.subr.mxu1 %v1093_v32 }
 0x843   : > { %2941 = vmatpush3.msra.mxu1 %v1093_v32 }
 0x844   : > { %2942 = vmatprep.subr.mxu1 %v1092_v33 }
 0x845   : > { %2943 = vmatpush3.msra.mxu1 %v1092_v33 }
 0x8fe   : > { %v2935_v12 = vpop.f32.mrf.mxu1 }
 0x8ff   : > { %v2026_v13 = vadd.f32 %v2935_v12, %v2782_v11 }
 0x900   : > { %v2020_v14 = vpop.f32.mrf.mxu1 }
 0x901   : > { %v3544_v15 = vadd.f32 %v2026_v13, %v3436_v21  ;;  %v2021_v16 = vadd.f32 %v2782_v11, %v2020_v14 }
 0x903   : > { %v3547_v17 = vadd.f32 %v2021_v16, %v3434_v20  ;;  %v2034_v18 = vsel %vm1124_vm5, %v3544_v15, 0.0 }
 0x904   : > { %2035 = vadd.xlane.f32.xlu1 %v2034_v18 }
 0x905   : > { %v2031_v19 = vsel %vm1120_vm4, %v3547_v17, 0.0 }
 0x906   : > { %2032 = vadd.xlane.f32.xlu0 %v2031_v19 }
 0x98d   : > { %v2036_v22 = vpop.xlane.xlu1 %2035 }
 0x98e   : > { %v2038_v23 = vmul.f32 0.03125, %v2036_v22 }
 0x98f   : > { %v2033_v24 = vpop.xlane.xlu0 %2032 }
 0x990   : > { %v2037_v21 = vmul.f32 0.03125, %v2033_v24  ;;  %v2040_v25 = vsub.f32 %v3544_v15, %v2038_v23  ;;  %v2790_v23 = vld [vmem:[%s3748_s20] ss:$0 sm:$0xff] }
 0x992   : > { %v2039_v20 = vsub.f32 %v3547_v17, %v2037_v21  ;;  %v2042_v28 = vmul.f32 %v2040_v25, %v2040_v25 }
 0x994   : > { %v2041_v26 = vmul.f32 %v2039_v20, %v2039_v20  ;;  %v2046_v29 = vsel %vm1124_vm5, %v2042_v28, 0.0 }
 0x996   : > { %v2043_v27 = vsel %vm1120_vm4, %v2041_v26, 0.0 }
 0x997   : > { %2044 = vadd.xlane.f32.xlu0 %v2043_v27 }
 0x99b   : > { %2047 = vadd.xlane.f32.xlu0 %v2046_v29 }
 0xa20   : > { %v2045_v34 = vpop.xlane.xlu0 %2044 }
 0xa21   : > { %v2049_v35 = vmul.f32 0.03125, %v2045_v34 }
 0xa23   : > { %v2051_v36 = vadd.f32 1e-05, %v2049_v35 }
 0xa24   : > { %v2048_v37 = vpop.xlane.xlu0 %2047 }
 0xa25   : > { %3071 = vrsqrt.f32 %v2051_v36  ;;  %v2050_v38 = vmul.f32 0.03125, %v2048_v37 }
 0xa27   : > { %v2052_v39 = vadd.f32 1e-05, %v2050_v38 }
 0xa29   : > { %3073 = vrsqrt.f32 %v2052_v39 }
 0xa32   : > { %v3072_v40 = vpop.eup %3071 }
 0xa33   : > { %v2055_v42 = vmul.f32 %v3072_v40, %v2039_v20 }
 0xa35   : > { %v2063_v44 = vmul.f32 %v2785_v41, %v2055_v42 }
 0xa36   : > { %v3074_v45 = vpop.eup %3073 }
 0xa37   : > { %v2056_v46 = vmul.f32 %v3074_v45, %v2040_v25  ;;  %v2071_v47 = vadd.f32 %v2786_v43, %v2063_v44 }
 0xa39   : > { %v2064_v48 = vmul.f32 %v2785_v41, %v2056_v46  ;;  %2944 = vmatprep.mubr.msk.f32.mxu1 %vm1120_vm4, %v2071_v47 }
 0xa3b   : > { %v2072_v49 = vadd.f32 %v2786_v43, %v2064_v48 }
 0xa3d   : > { %2945 = vmatmul.mubr.msk.f32.vlgmr.msra.gmra.mxu1 %vm1120_vm4, %v2072_v49 }
 0xafd   : > { %v2946_v3 = vpop.f32.mrf.mxu1 }
 0xafe   : > { %v2157_v4 = vadd.f32 %v2946_v3, %v2787_v2 }
 0xaff   : > { %v2151_v5 = vpop.f32.mrf.mxu1 }
 0xb00   : > { %v2161_v6 = vmul.f32 -1.702, %v2157_v4  ;;  %v2152_v7 = vadd.f32 %v2787_v2, %v2151_v5 }
 0xb02   : > { %v2164_v8 = vmul.f32 1.442695, %v2161_v6  ;;  %v2160_v9 = vmul.f32 -1.702, %v2152_v7 }
 0xb04   : > { %3075 = vpow2.f32 %v2164_v8  ;;  %v2162_v10 = vmul.f32 1.442695, %v2160_v9 }
 0xb06   : > { %3077 = vpow2.f32 %v2162_v10 }
 0xb11   : > { %v3076_v11 = vpop.eup %3075 }
 0xb12   : > { %v2167_v12 = vadd.f32 1.0, %v3076_v11 }
 0xb13   : > { %v3078_v13 = vpop.eup %3077 }
 0xb14   : > { %v2166_v14 = vadd.f32 1.0, %v3078_v13  ;;  %3079 = vrcp.f32 %v2167_v12 }
 0xb16   : > { %3081 = vrcp.f32 %v2166_v14 }
 0xb21   : > { %v3080_v16 = vpop.eup %3079 }
 0xb22   : > { %v2173_v22 = vmul.f32 %v3080_v16, %v2157_v4 }
 0xb23   : > { %v3082_v18 = vpop.eup %3081 }
 0xb24   : > { %v2172_v19 = vmul.f32 %v3082_v18, %v2152_v7 }
 0xb26   : > { %2979 = vmatprep.mubr.f32.mxu0 %v2172_v19 }
 0xb27   : > { %2980 = vmatmul.mubr.f32.vlgmr.msra.gmra.mxu0 %v2173_v22 }
 0xbe7   : > { %v2981_v24 = vpop.f32.mrf.mxu0 }
 0xbe8   : > { %v2252_v21 = vadd.f32 %v2981_v24, %v2790_v23 }
 0xbe9   : > { %v2246_v25 = vpop.f32.mrf.mxu0 }
 0xbea   : > { %v2256_v20 = vadd.f32 %v2252_v21, %v3544_v15  ;;  %v2247_v26 = vadd.f32 %v2790_v23, %v2246_v25  ;;  %2262 = sbr.rel (%p2791_p5) target bundleno = 3767 (0xeb7), region = 124 }
 0xbec   : > { %2258 = vst.msk [vmem:[#allocation2 + $0x8] sm:$0x3] %vm1124_vm5, %v2256_v20  ;;  %v2255_v27 = vadd.f32 %v2247_v26, %v3547_v17 }
 0xbee   : > { %2257 = vst.msk [vmem:[#allocation2] sm:$0xff] %vm1120_vm4, %v2255_v27 }
 0xbef   : > { %vm2266_vm14 = vcmask 253952   ;;  %v2285_v40 = vld [vmem:[%s3704_s21 + $0x18] sm:$0xff]  ;;  %v3104_v41 = vmov 0.0   ;;  %v2284_v42 = vld [vmem:[%s3704_s21 + $0x10] sm:$0xff]  ;;  %vm3105_vm15 = vmmov 0   ;;  %v2283_v43 = vld [vmem:[%s3704_s21 + $0x8] sm:$0xff] }
 0xbf0   : > { %2982 = vmatprep.subr.mxu0 %v3104_v41  ;;  %2990 = vmatprep.mubr.msk.f32.mxu0 %vm3105_vm15, %v3104_v41  ;;  %v2282_v44 = vld [vmem:[%s3704_s21] sm:$0xff]  ;;  %v2362_v45 = vld [vmem:[%s3749_s22 + $0x18] sm:$0xff]  ;;  %v2361_v46 = vld [vmem:[%s3749_s22 + $0x10] sm:$0xff] }
 0xbf1   : > { %2983 = vmatpush3.msra.mxu0 %v2285_v40  ;;  %2993 = vmatprep.subr.mxu1 %v3104_v41  ;;  %v2360_v47 = vld [vmem:[%s3749_s22 + $0x8] sm:$0xff]  ;;  %v2359_v48 = vld [vmem:[%s3749_s22] sm:$0xff] }
 0xbf2   : > { %2984 = vmatprep.subr.mxu0 %v3104_v41  ;;  %3001 = vmatprep.mubr.msk.f32.mxu1 %vm3105_vm15, %v3104_v41  ;;  %v2263_v57 = vld [vmem:[%s3750_s26] sm:$0x1] }
 0xbf3   : > { %2985 = vmatpush3.msra.mxu0 %v2284_v42  ;;  %2994 = vmatpush3.msra.mxu1 %v2362_v45  ;;  %v2264_v59 = vld [vmem:[%s3751_s28] sm:$0x1] }
 0xbf4   : > { %2986 = vmatprep.subr.mxu0 %v3104_v41  ;;  %2995 = vmatprep.subr.mxu1 %v3104_v41  ;;  %v2363_v5 = vld [vmem:[%s3752_s30] sm:$0x1] }
 0xbf5   : > { %v2265_v28 = vld [vmem:[#allocation2] sm:$0x1]  ;;  %v2438_v29 = vld [vmem:[#allocation2 + $0x5] sm:$0x1]  ;;  %2987 = vmatpush3.msra.mxu0 %v2283_v43  ;;  %2996 = vmatpush3.msra.mxu1 %v2361_v46 }
 0xbf6   : > { %v2267_v30 = vsel %vm2266_vm14, %v2265_v28, 0.0  ;;  %v2439_v31 = vsel %vm2266_vm14, %v2438_v29, 0.0  ;;  %2988 = vmatprep.subr.mxu0 %v3104_v41  ;;  %2997 = vmatprep.subr.mxu1 %v3104_v41  ;;  %v2535_v9 = vld [vmem:[%s3752_s30] sm:$0x1] }
 0xbf7   : > { %2268 = vadd.xlane.f32.xlu0 %v2267_v30  ;;  %2989 = vmatpush3.msra.mxu0 %v2282_v44 }
 0xbf8   : > { %3004 = vmatprep.subr.mxu0 %v3104_v41  ;;  %2998 = vmatpush3.msra.mxu1 %v2360_v47 }
 0xbf9   : > { %2999 = vmatprep.subr.mxu1 %v3104_v41 }
 0xbfa   : > { %3000 = vmatpush3.msra.mxu1 %v2359_v48 }
 0xbfb   : > { %2440 = vadd.xlane.f32.xlu0 %v2439_v31  ;;  %3015 = vmatprep.subr.mxu1 %v3104_v41 }
 0xc80   : > { %v2269_v15 = vpop.xlane.xlu0 %2268 }
 0xc81   : > { %v2270_v32 = vmul.f32 0.03125, %v2269_v15 }
 0xc83   : > { %v2271_v33 = vsub.f32 %v2265_v28, %v2270_v32 }
 0xc84   : > { %v2441_v34 = vpop.xlane.xlu0 %2440 }
 0xc85   : > { %v2442_v35 = vmul.f32 0.03125, %v2441_v34  ;;  %v2272_v17 = vmul.f32 %v2271_v33, %v2271_v33 }
 0xc87   : > { %v2443_v36 = vsub.f32 %v2438_v29, %v2442_v35  ;;  %v2273_v37 = vsel %vm2266_vm14, %v2272_v17, 0.0 }
 0xc88   : > { %2274 = vadd.xlane.f32.xlu1 %v2273_v37 }
 0xc89   : > { %v2444_v38 = vmul.f32 %v2443_v36, %v2443_v36 }
 0xc8b   : > { %v2445_v39 = vsel %vm2266_vm14, %v2444_v38, 0.0 }
 0xc8c   : > { %2446 = vadd.xlane.f32.xlu1 %v2445_v39 }
 0xd11   : > { %v2275_v49 = vpop.xlane.xlu1 %2274 }
 0xd12   : > { %v2276_v50 = vmul.f32 0.03125, %v2275_v49 }
 0xd14   : > { %v2277_v51 = vadd.f32 1e-05, %v2276_v50 }
 0xd15   : > { %v2447_v52 = vpop.xlane.xlu1 %2446 }
 0xd16   : > { %3083 = vrsqrt.f32 %v2277_v51  ;;  %v2448_v53 = vmul.f32 0.03125, %v2447_v52 }
 0xd18   : > { %v2449_v55 = vadd.f32 1e-05, %v2448_v53 }
 0xd1a   : > { %3085 = vrsqrt.f32 %v2449_v55 }
 0xd23   : > { %v3084_v56 = vpop.eup %3083 }
 0xd24   : > { %v2279_v58 = vmul.f32 %v3084_v56, %v2271_v33 }
 0xd26   : > { %v2280_v60 = vmul.f32 %v2279_v58, %v2263_v57 }
 0xd27   : > { %v3086_v61 = vpop.eup %3085 }
 0xd28   : > { %v2281_v62 = vadd.f32 %v2280_v60, %v2264_v59  ;;  %v2451_v54 = vmul.f32 %v3086_v61, %v2443_v36 }
 0xd2a   : > { %2991 = vmatmul.mubr.msk.f32.vlgmr.msra.gmra.mxu0 %vm1120_vm4, %v2281_v62  ;;  %v2452_v63 = vmul.f32 %v2451_v54, %v2263_v57 }
 0xd2b   : > { %3005 = vmatpush3.msra.mxu0 %v2285_v40  ;;  %3012 = vmatprep.mubr.msk.f32.mxu0 %vm3105_vm15, %v3104_v41 }
 0xd2c   : > { %3006 = vmatprep.subr.mxu0 %v3104_v41  ;;  %v2453_v0 = vadd.f32 %v2452_v63, %v2264_v59 }
 0xd2d   : > { %3007 = vmatpush3.msra.mxu0 %v2284_v42 }
 0xd2e   : > { %3008 = vmatprep.subr.mxu0 %v3104_v41 }
 0xd2f   : > { %3009 = vmatpush3.msra.mxu0 %v2283_v43 }
 0xd30   : > { %3010 = vmatprep.subr.mxu0 %v3104_v41 }
 0xd31   : > { %3011 = vmatpush3.msra.mxu0 %v2282_v44 }
 0xd32   : > { %3013 = vmatmul.mubr.msk.f32.vlgmr.msra.gmra.mxu0 %vm1120_vm4, %v2453_v0 }
 0xdea   : > { %v2355_v1 = vpop.f32.mrf.mxu0 }
 0xdeb   : > { %3002 = vmatmul.mubr.msk.f32.vlgmr.msra.gmra.mxu1 %vm1120_vm4, %v2355_v1 }
 0xdec   : > { %3016 = vmatpush3.msra.mxu1 %v2362_v45  ;;  %v2992_v2 = vpop.f32.mrf.mxu0  ;;  %3023 = vmatprep.mubr.msk.f32.mxu1 %vm3105_vm15, %v3104_v41 }
 0xded   : > { %3017 = vmatprep.subr.mxu1 %v3104_v41 }
 0xdee   : > { %3018 = vmatpush3.msra.mxu1 %v2361_v46 }
 0xdef   : > { %3019 = vmatprep.subr.mxu1 %v3104_v41 }
 0xdf0   : > { %3020 = vmatpush3.msra.mxu1 %v2360_v47 }
 0xdf1   : > { %3021 = vmatprep.subr.mxu1 %v3104_v41 }
 0xdf2   : > { %v2527_v3 = vpop.f32.mrf.mxu0  ;;  %3022 = vmatpush3.msra.mxu1 %v2359_v48 }
 0xdf3   : > { %3024 = vmatmul.mubr.msk.f32.vlgmr.msra.gmra.mxu1 %vm1120_vm4, %v2527_v3 }
 0xdf4   : > { %v3014_v4 = vpop.f32.mrf.mxu0 }
 0xeab   : > { %v2433_v6 = vpop.f32.mrf.mxu1 }
 0xeac   : > { %v2434_v7 = vadd.f32 %v2433_v6, %v2363_v5 }
 0xead   : > { %v3003_v8 = vpop.f32.mrf.mxu1 }
 0xeae   : > { %2437 = vst.msk [vmem:[%s3753_s9] sm:$0x1] %vm2266_vm14, %v2434_v7 }
 0xeb3   : > { %v2605_v10 = vpop.f32.mrf.mxu1 }
 0xeb4   : > { %v2606_v11 = vadd.f32 %v2605_v10, %v2535_v9 }
 0xeb5   : > { %v3025_v12 = vpop.f32.mrf.mxu1 }
 0xeb6   : > { %2609 = vst.msk [vmem:[%s3753_s9 + $0x1] sm:$0x1] %vm2266_vm14, %v2606_v11 }
 0xeb7 PF: > { %s3754_s24 = sld [smem:[#allocation4_spill]] }
 0xebd   : > { %s34_s5 = sadd.s32 1, %s3754_s24  }
 0xebe   : > { %p31_p6 = scmp.ge.s32.totalorder %s34_s5, 4  }
 0xec0   :  { %33 = sbr.rel (!%p31_p6) target bundleno = 17 (0x11), region = 183 }

// kernel: combined_model.3
= control target key start
LH: loop header
LB: loop body
LE: loop exit
PB: predicated region body
PF: predicated region fallthrough
CT: control target
= control target key end

     0   :  { %s4082_s21 = smov 0   ;;  %s4794_s0 = inlined_call_operand.vmem [shape: f32[18,32], index: 0, kind: input, shape index: {}]   ;;  %s4795_s1 = inlined_call_operand.vmem [shape: f32[2,32,96], index: 1, kind: input, shape index: {}]   ;;  %s4796_s2 = inlined_call_operand.vmem [shape: f32[2,1,96], index: 2, kind: input, shape index: {}]   ;;  %s4797_s3 = inlined_call_operand.vmem [shape: f32[2,32,32], index: 3, kind: input, shape index: {}]   ;;  %s4798_s4 = inlined_call_operand.vmem [shape: f32[2,1,32], index: 4, kind: input, shape index: {}]   ;;  %s4799_s5 = inlined_call_operand.vmem [shape: f32[2,32,128], index: 5, kind: input, shape index: {}]   ;;  %s4800_s6 = inlined_call_operand.vmem [shape: f32[2,1,128], index: 6, kind: input, shape index: {}]   ;;  %s4801_s7 = inlined_call_operand.vmem [shape: f32[2,128,32], index: 7, kind: input, shape index: {}]   ;;  %s4802_s8 = inlined_call_operand.vmem [shape: f32[2,1,32], index: 8, kind: input, shape index: {}]   ;;  %s4803_s9 = inlined_call_operand.vmem [shape: f32[2,1,32], index: 9, kind: input, shape index: {}]   ;;  %s4804_s10 = inlined_call_operand.vmem [shape: f32[2,1,32], index: 10, kind: input, shape index: {}]   ;;  %s4805_s11 = inlined_call_operand.vmem [shape: f32[2,1,32], index: 11, kind: input, shape index: {}]   ;;  %s4806_s12 = inlined_call_operand.vmem [shape: f32[2,1,32], index: 12, kind: input, shape index: {}]   ;;  %s4807_s13 = inlined_call_operand.vmem [shape: f32[1,32], index: 13, kind: input, shape index: {}]   ;;  %s4808_s14 = inlined_call_operand.vmem [shape: f32[1,32], index: 14, kind: input, shape index: {}]   ;;  %s4809_s15 = inlined_call_operand.vmem [shape: f32[128,32], index: 15, kind: input, shape index: {}]   ;;  %s4810_s16 = inlined_call_operand.vmem [shape: f32[18,128], index: 16, kind: output, shape index: {}]  }
   0x1   :  { %4815 = sst [smem:[#allocation5_spill]] %s4794_s0 }
   0x2   :  { %4816 = sst [smem:[#allocation6_spill]] %s4795_s1 }
   0x3   :  { %4817 = sst [smem:[#allocation7_spill]] %s4797_s3 }
   0x4   :  { %4818 = sst [smem:[#allocation8_spill]] %s4799_s5 }
   0x5   :  { %4819 = sst [smem:[#allocation9_spill]] %s4807_s13 }
   0x6   :  { %4820 = sst [smem:[#allocation10_spill]] %s4808_s14 }
   0x7   :  { %4821 = sst [smem:[#allocation11_spill]] %s4809_s15 }
   0x8   :  { %4822 = sst [smem:[#allocation12_spill]] %s4810_s16 }
   0x9 LB: > { %4823 = sst [smem:[#allocation4_spill]] %s3976_s21  ;;  %s4088_s22 = sadd.s32 4294967295, %s3976_s21   ;;  %s3976_s21 = sphi %s4082_s21, %s26_s21  }
   0xa   : > { %p3341_p0 = scmp.ge.s32.totalorder %s3976_s21, 1  ;;  %p551_p1 = scmp.lt.s32.totalorder %s3976_s21, 3 }
   0xc   : > { %p552_p2 = pnand %p3341_p0, %p551_p1 }
   0xd   : > { %p635_p3 = scmp.lt.s32.totalorder (!%p552_p2), %s4088_s22, 1  ;;  %s4824_s1 = sld [smem:[#allocation6_spill]] (!%p552_p2) }
   0xe   : > { %555 = sbr.rel (%p552_p2) target bundleno = 6596 (0x19c4), region = 84  ;;  %s4825_s3 = sld [smem:[#allocation7_spill]] (!%p552_p2) }
   0xf   : > { %s4826_s5 = sld [smem:[#allocation8_spill]] (!%p552_p2)  ;;  %p3350_p4 = scmp.ne.s32.totalorder (!%p552_p2), %s4088_s22, 0 }
  0x13   : > { %s4094_s23 = scalar_select %p635_p3, %s4088_s22, 1 }
  0x14   : > { %s4827_s17 = sld [smem:[#allocation5_spill]] (!%p3350_p4) }
  0x15   : > { %s3448_s24 = sshll.u32 %s4094_s23, 5  ;;  %s3451_s29 = sshll.u32 %s4094_s23, 7 }
  0x16   : > { %s4104_s30 = scalar_lea.vmem %s4824_s1, %s3448_s24  ;;  %s4109_s18 = scalar_lea.vmem %s4825_s3, %s3448_s24 }
  0x17   : > { %s4118_s13 = scalar_lea.vmem %s4826_s5, %s3448_s24  ;;  %s4128_s0 = scalar_lea.vmem %s4801_s7, %s3451_s29 }
  0x18   : > { %s666_s19 = scalar_lea.vmem %s4802_s8, %s4094_s23  ;;  %s669_s14 = scalar_lea.vmem %s4803_s9, %s4094_s23 }
  0x19   : > { %s672_s5 = scalar_lea.vmem %s4804_s10, %s4094_s23  ;;  %s675_s28 = scalar_lea.vmem %s4805_s11, %s4094_s23 }
  0x1a   : > { %s678_s27 = scalar_lea.vmem %s4806_s12, %s4094_s23  ;;  %682 = sbr.rel (%p3350_p4) target bundleno = 34 (0x22), region = 88 }
  0x1f   : > { %v683_v0 = vld [vmem:[%s4827_s17] sm:$0xff]  ;;  %vm686_vm0 = vcmask 261120   ;;  %v684_v1 = vld [vmem:[%s4827_s17 + $0x8] sm:$0xff]  ;;  %v685_v2 = vld [vmem:[%s4827_s17 + $0x10] sm:$0x3]  ;;  %vm689_vm1 = vcmask 254976  }
  0x20   : > { %687 = vst.msk [vmem:[#allocation2] sm:$0xff] %vm686_vm0, %v683_v0  ;;  %688 = vst.msk [vmem:[#allocation2 + $0x8] sm:$0xff] %vm686_vm0, %v684_v1 }
  0x21   : > { %690 = vst.msk [vmem:[#allocation2 + $0x10] sm:$0x3] %vm689_vm1, %v685_v2 }
  0x22 PF: > { %vm730_vm2 = vcmask 261120   ;;  %vm737_vm3 = vcmask 254976   ;;  %v694_v24 = vld [vmem:[%s4104_s30 + $0x18] sm:$0xff]  ;;  %v3978_v25 = vmov 0.0   ;;  %v693_v26 = vld [vmem:[%s4104_s30 + $0x10] sm:$0xff]  ;;  %vm3979_vm4 = vmmov 0   ;;  %s4828_s1 = scalar_lea.vmem %s4796_s2, %s4094_s23 }
  0x23   : > { %3575 = vmatprep.subr.mxu0 %v3978_v25  ;;  %3583 = vmatprep.mubr.msk.f32.mxu0 %vm3979_vm4, %v3978_v25  ;;  %v692_v27 = vld [vmem:[%s4104_s30 + $0x8] sm:$0xff]  ;;  %v691_v28 = vld [vmem:[%s4104_s30] sm:$0xff]  ;;  %vm900_vm5 = vcmask 64512   ;;  %s3980_s3 = smov 96   ;;  %v885_v0 = vlaneseq  ;;  %vm992_vm8 = vcmask 65536   ;;  %vm988_vm9 = vcmask 72704  }
  0x24   : > { %3576 = vmatpush3.msra.mxu0 %v694_v24  ;;  %v3351_v39 = vld [vmem:[%s669_s14] ss:$0 sm:$0xff]  ;;  %s3982_s29 = smov 64   ;;  %s3983_s21 = smov 88   ;;  %vm1023_vm10 = vcmask 1040384   ;;  %vm1102_vm11 = vcmask 57344  }
  0x25   : > { %3577 = vmatprep.subr.mxu0 %v3978_v25  ;;  %v3352_v41 = vld [vmem:[%s672_s5] ss:$0 sm:$0xff]  ;;  %v886_v1 = vshrl.u32 %v885_v0, 7  ;;  %s3984_s20 = smov 120   ;;  %s3985_s16 = smov 56   ;;  %vm1756_vm12 = vcmask 1046528  }
  0x26   : > { %3578 = vmatpush3.msra.mxu0 %v693_v26  ;;  %v3353_v52 = vld [vmem:[%s4828_s1] ss:$0 sm:$0xff]  ;;  %s3986_s24 = smov 80   ;;  %s3987_s15 = smov 112   ;;  %vm1317_vm13 = vcmask 130112   ;;  %vm1534_vm14 = vcmask 195712  }
  0x27   : > { %v727_v3 = vld [vmem:[#allocation2] sm:$0xff]  ;;  %v728_v4 = vld [vmem:[#allocation2 + $0x8] sm:$0xff]  ;;  %3579 = vmatprep.subr.mxu0 %v3978_v25  ;;  %v887_v2 = vadd.s32 8, %v886_v1  ;;  %s3988_s30 = smov 48   ;;  %s3989_s25 = smov 72   ;;  %vm1319_vm15 = vcmask 122944  }
  0x28   : > { %v731_v5 = vsel %vm730_vm2, %v727_v3, 0.0  ;;  %v734_v6 = vsel %vm730_vm2, %v728_v4, 0.0  ;;  %v729_v7 = vld [vmem:[#allocation2 + $0x10] sm:$0x3]  ;;  %3580 = vmatpush3.msra.mxu0 %v692_v27  ;;  %s3990_s26 = smov 104   ;;  %s3991_s5 = smov 40  }
  0x29   : > { %732 = vadd.xlane.f32.xlu0 %v731_v5  ;;  %v738_v8 = vsel %vm737_vm3, %v729_v7, 0.0  ;;  %3581 = vmatprep.subr.mxu0 %v3978_v25  ;;  %v3981_v5 = vmov -1e+09   ;;  %s3992_s14 = smov 8   ;;  %s3993_s1 = smov 16   ;;  %vm1536_vm0 = vcmask 188544  }
  0x2a   : > { %3582 = vmatpush3.msra.mxu0 %v691_v28  ;;  %vm1753_vm1 = vcmask 254144   ;;  %p3424_p5 = scmp.ne.s32.totalorder %s4088_s22, 1 }
  0x2b   : > { %s4834_s22 = sld [smem:[#allocation12_spill]] (!%p3424_p5) }
  0x2d   : > { %735 = vadd.xlane.f32.xlu0 %v734_v6 }
  0x31   : > { %739 = vadd.xlane.f32.xlu0 %v738_v8 }
  0xb2   : > { %v733_v9 = vpop.xlane.xlu0 %732 }
  0xb3   : > { %v742_v10 = vmul.f32 0.03125, %v733_v9 }
  0xb5   : > { %v745_v11 = vsub.f32 %v727_v3, %v742_v10  ;;  %v889_v3 = vand.u32 127, %v885_v0 }
  0xb6   : > { %v736_v12 = vpop.xlane.xlu0 %735 }
  0xb7   : > { %v743_v13 = vmul.f32 0.03125, %v736_v12  ;;  %v748_v14 = vmul.f32 %v745_v11, %v745_v11  ;;  %vm891_vm6 = vcmp.le.s32.totalorder %v889_v3, %v887_v2  ;;  %vm890_vm7 = vcmp.le.s32.totalorder %v889_v3, %v886_v1 }
  0xb8   : > { %v4216_v6 = vsel %vm891_vm6, 0.0, %v3981_v5  ;;  %v4218_v9 = vsel %vm890_vm7, 0.0, %v3981_v5 }
  0xb9   : > { %v746_v15 = vsub.f32 %v728_v4, %v743_v13  ;;  %v751_v16 = vsel %vm730_vm2, %v748_v14, 0.0 }
  0xba   : > { %752 = vadd.xlane.f32.xlu1 %v751_v16  ;;  %v740_v17 = vpop.xlane.xlu0 %739 }
  0xbb   : > { %v744_v18 = vmul.f32 0.03125, %v740_v17  ;;  %v749_v19 = vmul.f32 %v746_v15, %v746_v15 }
  0xbd   : > { %v747_v20 = vsub.f32 %v729_v7, %v744_v18  ;;  %v754_v21 = vsel %vm730_vm2, %v749_v19, 0.0 }
  0xbe   : > { %755 = vadd.xlane.f32.xlu1 %v754_v21 }
  0xbf   : > { %v750_v22 = vmul.f32 %v747_v20, %v747_v20 }
  0xc1   : > { %v757_v23 = vsel %vm737_vm3, %v750_v22, 0.0 }
  0xc2   : > { %758 = vadd.xlane.f32.xlu1 %v757_v23 }
 0x143   : > { %v753_v29 = vpop.xlane.xlu1 %752 }
 0x144   : > { %v760_v30 = vmul.f32 0.03125, %v753_v29 }
 0x146   : > { %v763_v31 = vadd.f32 1e-05, %v760_v30 }
 0x147   : > { %v756_v32 = vpop.xlane.xlu1 %755 }
 0x148   : > { %3879 = vrsqrt.f32 %v763_v31  ;;  %v761_v33 = vmul.f32 0.03125, %v756_v32 }
 0x14a   : > { %v764_v34 = vadd.f32 1e-05, %v761_v33 }
 0x14b   : > { %v759_v35 = vpop.xlane.xlu1 %758 }
 0x14c   : > { %3881 = vrsqrt.f32 %v764_v34  ;;  %v762_v36 = vmul.f32 0.03125, %v759_v35 }
 0x14e   : > { %v765_v37 = vadd.f32 1e-05, %v762_v36 }
 0x150   : > { %3883 = vrsqrt.f32 %v765_v37 }
 0x155   : > { %v3880_v38 = vpop.eup %3879 }
 0x156   : > { %v769_v40 = vmul.f32 %v3880_v38, %v745_v11 }
 0x158   : > { %v778_v42 = vmul.f32 %v3351_v39, %v769_v40 }
 0x159   : > { %v3882_v43 = vpop.eup %3881 }
 0x15a   : > { %v787_v44 = vadd.f32 %v3352_v41, %v778_v42  ;;  %v770_v45 = vmul.f32 %v3882_v43, %v746_v15 }
 0x15c   : > { %3584 = vmatmul.mubr.msk.f32.vlgmr.msra.gmra.mxu0 %vm730_vm2, %v787_v44  ;;  %v779_v46 = vmul.f32 %v3351_v39, %v770_v45 }
 0x15d   : > { %v3884_v47 = vpop.eup %3883  ;;  %3586 = vmatprep.mubr.msk.f32.mxu0 %vm3979_vm4, %v3978_v25 }
 0x15e   : > { %v788_v48 = vadd.f32 %v3352_v41, %v779_v46  ;;  %v771_v49 = vmul.f32 %v3884_v47, %v747_v20 }
 0x160   : > { %3587 = vmatmul.mubr.msk.f32.gmra.mxu0 %vm730_vm2, %v788_v48  ;;  %v780_v50 = vmul.f32 %v3351_v39, %v771_v49 }
 0x161   : > { %3589 = vmatprep.mubr.msk.f32.mxu0 %vm3979_vm4, %v3978_v25 }
 0x162   : > { %v789_v51 = vadd.f32 %v3352_v41, %v780_v50 }
 0x164   : > { %3590 = vmatmul.mubr.msk.f32.gmra.mxu0 %vm730_vm2, %v789_v51 }
 0x21c   : > { %v871_v53 = vpop.f32.mrf.mxu0 }
 0x21d   : > { %v4198_v54 = vadd.f32 %v3353_v52, %v871_v53 }
 0x21e   : > { %v3585_v55 = vpop.f32.mrf.mxu0 }
 0x21f   : > { %896 = vrot.lane.b32.xlu1 %v4198_v54, %s3980_s3  ;;  %3596 = vmatprep.mubr.msk.f32.mxu0 %vm900_vm5, %v4198_v54 }
 0x220   : > { %v876_v56 = vpop.f32.mrf.mxu0 }
 0x221   : > { %v4204_v57 = vadd.f32 %v3353_v52, %v876_v56 }
 0x222   : > { %v3588_v58 = vpop.f32.mrf.mxu0 }
 0x223   : > { %898 = vrot.lane.b32.xlu0 %v4204_v57, %s3980_s3 }
 0x224   : > { %v881_v59 = vpop.f32.mrf.mxu0 }
 0x225   : > { %v4208_v60 = vadd.f32 %v3353_v52, %v881_v59 }
 0x226   : > { %v3591_v61 = vpop.f32.mrf.mxu0 }
 0x291   : > { %v897_v63 = vpop.permute.xlu1 %896 }
 0x295   : > { %v899_v62 = vpop.permute.xlu0 %898 }
 0x296   : > { %3592 = vmatprep.subr.msk.mxu0 %vm900_vm5, %v899_v62 }
 0x297   : > { %3593 = vmatpush3.xpose.msk.msra.mxu0 %vm900_vm5, %v899_v62 }
 0x298   : > { %3594 = vmatprep.subr.msk.mxu0 %vm900_vm5, %v897_v63 }
 0x29b   : > { %3595 = vmatpush3.xpose.msk.msra.mxu0 %vm900_vm5, %v897_v63 }
 0x29e   : > { %3597 = vmatmul.mubr.msk.f32.vlgmr.msra.gmra.mxu0 %vm900_vm5, %v4204_v57 }
 0x35e   : > { %v3598_v4 = vpop.f32.mrf.mxu0 }
 0x35f   : > { %v985_v7 = vmul.f32 0.35355338, %v3598_v4 }
 0x360   : > { %v975_v8 = vpop.f32.mrf.mxu0 }
 0x361   : > { %v984_v10 = vmul.f32 0.35355338, %v975_v8  ;;  %v987_v11 = vadd.f32 %v985_v7, %v4216_v6 }
 0x363   : > { %v993_v12 = vsel %vm992_vm8, %v987_v11, -inf  ;;  %v986_v13 = vadd.f32 %v984_v10, %v4218_v9 }
 0x364   : > { %994 = vmax.xlane.f32.xlu0 %v993_v12 }
 0x365   : > { %v989_v14 = vsel %vm988_vm9, %v986_v13, -inf }
 0x366   : > { %990 = vmax.xlane.f32.xlu1 %v989_v14 }
 0x3ed   : > { %v995_v15 = vpop.xlane.xlu0 %994 }
 0x3ee   : > { %v997_v16 = vsub.f32 %v987_v11, %v995_v15 }
 0x3ef   : > { %v991_v17 = vpop.xlane.xlu1 %990 }
 0x3f0   : > { %v1000_v18 = vmul.f32 1.442695, %v997_v16  ;;  %v996_v19 = vsub.f32 %v986_v13, %v991_v17 }
 0x3f2   : > { %3885 = vpow2.f32 %v1000_v18  ;;  %v998_v20 = vmul.f32 1.442695, %v996_v19 }
 0x3f4   : > { %3887 = vpow2.f32 %v998_v20 }
 0x3ff   : > { %v3886_v21 = vpop.eup %3885 }
 0x400   : > { %v1005_v22 = vsel %vm992_vm8, %v3886_v21, 0.0 }
 0x401   : > { %v3888_v23 = vpop.eup %3887  ;;  %1006 = vadd.xlane.f32.xlu1 %v1005_v22 }
 0x402   : > { %v1002_v24 = vsel %vm988_vm9, %v3888_v23, 0.0 }
 0x403   : > { %1003 = vadd.xlane.f32.xlu0 %v1002_v24 }
 0x412   : > { %1012 = vrot.lane.b32.xlu1 %v4198_v54, %s3982_s29 }
 0x416   : > { %1110 = vrot.lane.b32.xlu1 %v4204_v57, %s3983_s21 }
 0x419   : > { %1014 = vrot.lane.b32.xlu0 %v4204_v57, %s3982_s29 }
 0x41a   : > { %1108 = vrot.lane.b32.xlu1 %v4198_v54, %s3983_s21 }
 0x41d   : > { %1104 = vrot.lane.b32.xlu0 %v4198_v54, %s3984_s20 }
 0x41e   : > { %1106 = vrot.lane.b32.xlu1 %v4204_v57, %s3984_s20 }
 0x48a   : > { %v1007_v26 = vpop.xlane.xlu1 %1006 }
 0x48b   : > { %3889 = vrcp.f32 %v1007_v26 }
 0x48c   : > { %v1004_v27 = vpop.xlane.xlu0 %1003 }
 0x48d   : > { %3891 = vrcp.f32 %v1004_v27 }
 0x48e   : > { %v1013_v28 = vpop.permute.xlu1 %1012 }
 0x490   : > { %v1015_v29 = vpop.permute.xlu0 %1014 }
 0x491   : > { %3599 = vmatprep.subr.msk.mxu0 %vm1023_vm10, %v1015_v29 }
 0x492   : > { %3600 = vmatpush3.msk.msra.mxu0 %vm1023_vm10, %v1015_v29  ;;  %v1111_v30 = vpop.permute.xlu1 %1110 }
 0x493   : > { %3601 = vmatprep.subr.mxu0 %v1013_v28 }
 0x494   : > { %3602 = vmatpush3.msra.mxu0 %v1013_v28  ;;  %v1105_v35 = vpop.permute.xlu0 %1104 }
 0x495   : > { %3606 = vmatprep.subr.msk.mxu0 %vm900_vm5, %v1111_v30 }
 0x496   : > { %v1109_v36 = vpop.permute.xlu1 %1108 }
 0x498   : > { %v3890_v31 = vpop.eup %3889 }
 0x499   : > { %v1011_v34 = vmul.f32 %v3890_v31, %v3886_v21 }
 0x49a   : > { %v3892_v32 = vpop.eup %3891  ;;  %v1107_v37 = vpop.permute.xlu1 %1106 }
 0x49b   : > { %v1010_v33 = vmul.f32 %v3892_v32, %v3888_v23 }
 0x49d   : > { %3603 = vmatprep.mubr.msk.f32.mxu0 %vm988_vm9, %v1010_v33 }
 0x49e   : > { %3604 = vmatmul.mubr.msk.f32.vlgmr.msra.gmra.mxu0 %vm988_vm9, %v1011_v34 }
 0x49f   : > { %3607 = vmatpush3.xpose.msk.msra.mxu0 %vm900_vm5, %v1111_v30  ;;  %3610 = vmatprep.mubr.msk.f32.mxu0 %vm900_vm5, %v1105_v35 }
 0x4a0   : > { %3608 = vmatprep.subr.msk.mxu0 %vm900_vm5, %v1109_v36 }
 0x4a3   : > { %3609 = vmatpush3.xpose.msk.msra.mxu0 %vm900_vm5, %v1109_v36 }
 0x4a6   : > { %3611 = vmatmul.mubr.msk.f32.vlgmr.msra.gmra.mxu0 %vm900_vm5, %v1107_v37 }
 0x55e   : > { %v3605_v38 = vpop.f32.mrf.mxu0 }
 0x55f   : > { %1103 = vst.msk [vmem:[#allocation3 + $0x8] sm:$0x1] %vm1102_vm11, %v3605_v38 }
 0x560   : > { %v1092_v39 = vpop.f32.mrf.mxu0 }
 0x561   : > { %1101 = vst.msk [vmem:[#allocation3] sm:$0xff] %vm900_vm5, %v1092_v39 }
 0x566   : > { %v3612_v40 = vpop.f32.mrf.mxu0 }
 0x567   : > { %v1196_v41 = vmul.f32 0.35355338, %v3612_v40 }
 0x568   : > { %v1186_v42 = vpop.f32.mrf.mxu0 }
 0x569   : > { %v1195_v43 = vmul.f32 0.35355338, %v1186_v42  ;;  %v1198_v44 = vadd.f32 %v1196_v41, %v4216_v6 }
 0x56b   : > { %v1202_v45 = vsel %vm992_vm8, %v1198_v44, -inf  ;;  %v1197_v46 = vadd.f32 %v1195_v43, %v4218_v9 }
 0x56c   : > { %1203 = vmax.xlane.f32.xlu1 %v1202_v45 }
 0x56d   : > { %v1199_v47 = vsel %vm988_vm9, %v1197_v46, -inf }
 0x56e   : > { %1200 = vmax.xlane.f32.xlu0 %v1199_v47 }
 0x57d   : > { %1221 = vrot.lane.b32.xlu1 %v4198_v54, %s3985_s16 }
 0x581   : > { %1327 = vrot.lane.b32.xlu1 %v4204_v57, %s3986_s24 }
 0x585   : > { %1325 = vrot.lane.b32.xlu1 %v4198_v54, %s3986_s24 }
 0x589   : > { %1323 = vrot.lane.b32.xlu1 %v4204_v57, %s3987_s15 }
 0x5f5   : > { %v1204_v48 = vpop.xlane.xlu1 %1203 }
 0x5f6   : > { %v1206_v49 = vsub.f32 %v1198_v44, %v1204_v48 }
 0x5f7   : > { %v1201_v50 = vpop.xlane.xlu0 %1200 }
 0x5f8   : > { %v1209_v51 = vmul.f32 1.442695, %v1206_v49  ;;  %v1205_v52 = vsub.f32 %v1197_v46, %v1201_v50 }
 0x5f9   : > { %v1222_v63 = vpop.permute.xlu1 %1221 }
 0x5fa   : > { %3893 = vpow2.f32 %v1209_v51  ;;  %v1207_v53 = vmul.f32 1.442695, %v1205_v52 }
 0x5fc   : > { %3895 = vpow2.f32 %v1207_v53 }
 0x5fd   : > { %v1328_v1 = vpop.permute.xlu1 %1327 }
 0x601   : > { %v1326_v8 = vpop.permute.xlu1 %1325 }
 0x605   : > { %v1324_v10 = vpop.permute.xlu1 %1323 }
 0x607   : > { %v3894_v55 = vpop.eup %3893 }
 0x608   : > { %v1214_v56 = vsel %vm992_vm8, %v3894_v55, 0.0 }
 0x609   : > { %v3896_v58 = vpop.eup %3895  ;;  %1215 = vadd.xlane.f32.xlu0 %v1214_v56  ;;  %v1757_v56 = vrot.slane %v4204_v57, 1 }
 0x60a   : > { %v1211_v59 = vsel %vm988_vm9, %v3896_v58, 0.0 }
 0x60d   : > { %1212 = vadd.xlane.f32.xlu0 %v1211_v59 }
 0x623   : > { %1223 = vrot.lane.b32.xlu0 %v4204_v57, %s3985_s16 }
 0x627   : > { %1321 = vrot.lane.b32.xlu0 %v4198_v54, %s3987_s15 }
 0x692   : > { %v1216_v61 = vpop.xlane.xlu0 %1215 }
 0x693   : > { %3897 = vrcp.f32 %v1216_v61 }
 0x696   : > { %v1213_v62 = vpop.xlane.xlu0 %1212 }
 0x697   : > { %3899 = vrcp.f32 %v1213_v62 }
 0x69a   : > { %v1224_v0 = vpop.permute.xlu0 %1223 }
 0x69b   : > { %3613 = vmatprep.subr.msk.mxu1 %vm1023_vm10, %v1224_v0 }
 0x69c   : > { %3614 = vmatpush3.msk.msra.mxu1 %vm1023_vm10, %v1224_v0 }
 0x69d   : > { %3615 = vmatprep.subr.mxu1 %v1222_v63 }
 0x69e   : > { %3616 = vmatpush3.msra.mxu1 %v1222_v63  ;;  %v1322_v7 = vpop.permute.xlu0 %1321 }
 0x69f   : > { %3620 = vmatprep.subr.msk.mxu1 %vm900_vm5, %v1328_v1 }
 0x6a0   : > { %v3898_v2 = vpop.eup %3897 }
 0x6a1   : > { %v1220_v5 = vmul.f32 %v3898_v2, %v3894_v55  ;;  %v4321_v55 = vrot.slane %v4208_v60, 1 }
 0x6a4   : > { %v3900_v3 = vpop.eup %3899 }
 0x6a5   : > { %v1219_v4 = vmul.f32 %v3900_v3, %v3896_v58  ;;  %v4327_v58 = vsel %vm1756_vm12, %v1757_v56, %v4321_v55 }
 0x6a7   : > { %3617 = vmatprep.mubr.msk.f32.mxu1 %vm988_vm9, %v1219_v4 }
 0x6a8   : > { %3618 = vmatmul.mubr.msk.f32.vlgmr.msra.gmra.mxu1 %vm988_vm9, %v1220_v5 }
 0x6a9   : > { %3621 = vmatpush3.xpose.msk.msra.mxu1 %vm900_vm5, %v1328_v1  ;;  %3624 = vmatprep.mubr.msk.f32.mxu1 %vm900_vm5, %v1322_v7 }
 0x6aa   : > { %3622 = vmatprep.subr.msk.mxu1 %vm900_vm5, %v1326_v8 }
 0x6ad   : > { %3623 = vmatpush3.xpose.msk.msra.mxu1 %vm900_vm5, %v1326_v8 }
 0x6b0   : > { %3625 = vmatmul.mubr.msk.f32.vlgmr.msra.gmra.mxu1 %vm900_vm5, %v1324_v10 }
 0x768   : > { %v4278_v11 = vpop.f32.mrf.mxu1 }
 0x76a   : > { %v4280_v12 = vpop.f32.mrf.mxu1 }
 0x770   : > { %v3626_v13 = vpop.f32.mrf.mxu1 }
 0x771   : > { %v1413_v14 = vmul.f32 0.35355338, %v3626_v13 }
 0x772   : > { %v1403_v15 = vpop.f32.mrf.mxu1 }
 0x773   : > { %v1412_v16 = vmul.f32 0.35355338, %v1403_v15  ;;  %v1415_v17 = vadd.f32 %v1413_v14, %v4216_v6 }
 0x775   : > { %v1419_v18 = vsel %vm992_vm8, %v1415_v17, -inf  ;;  %v1414_v19 = vadd.f32 %v1412_v16, %v4218_v9 }
 0x776   : > { %1420 = vmax.xlane.f32.xlu1 %v1419_v18 }
 0x777   : > { %v1416_v20 = vsel %vm988_vm9, %v1414_v19, -inf }
 0x778   : > { %1417 = vmax.xlane.f32.xlu0 %v1416_v20 }
 0x787   : > { %1438 = vrot.lane.b32.xlu1 %v4198_v54, %s3988_s30 }
 0x78b   : > { %1544 = vrot.lane.b32.xlu1 %v4204_v57, %s3989_s25 }
 0x78f   : > { %1542 = vrot.lane.b32.xlu1 %v4198_v54, %s3989_s25 }
 0x793   : > { %1540 = vrot.lane.b32.xlu1 %v4204_v57, %s3990_s26 }
 0x7ff   : > { %v1421_v21 = vpop.xlane.xlu1 %1420 }
 0x800   : > { %v1423_v22 = vsub.f32 %v1415_v17, %v1421_v21 }
 0x801   : > { %v1418_v23 = vpop.xlane.xlu0 %1417 }
 0x802   : > { %v1426_v24 = vmul.f32 1.442695, %v1423_v22  ;;  %v1422_v26 = vsub.f32 %v1414_v19, %v1418_v23 }
 0x803   : > { %v1439_v34 = vpop.permute.xlu1 %1438 }
 0x804   : > { %3901 = vpow2.f32 %v1426_v24  ;;  %v1424_v27 = vmul.f32 1.442695, %v1422_v26 }
 0x806   : > { %3903 = vpow2.f32 %v1424_v27 }
 0x807   : > { %v1545_v36 = vpop.permute.xlu1 %1544 }
 0x80b   : > { %v1543_v42 = vpop.permute.xlu1 %1542 }
 0x80f   : > { %v1541_v43 = vpop.permute.xlu1 %1540 }
 0x811   : > { %v3902_v28 = vpop.eup %3901 }
 0x812   : > { %v1431_v29 = vsel %vm992_vm8, %v3902_v28, 0.0 }
 0x813   : > { %v3904_v30 = vpop.eup %3903  ;;  %1432 = vadd.xlane.f32.xlu0 %v1431_v29 }
 0x814   : > { %v1428_v31 = vsel %vm988_vm9, %v3904_v30, 0.0 }
 0x817   : > { %1429 = vadd.xlane.f32.xlu0 %v1428_v31 }
 0x82d   : > { %1440 = vrot.lane.b32.xlu0 %v4204_v57, %s3988_s30 }
 0x831   : > { %1538 = vrot.lane.b32.xlu0 %v4198_v54, %s3990_s26 }
 0x89c   : > { %v1433_v32 = vpop.xlane.xlu0 %1432 }
 0x89d   : > { %3905 = vrcp.f32 %v1433_v32 }
 0x8a0   : > { %v1430_v33 = vpop.xlane.xlu0 %1429 }
 0x8a1   : > { %3907 = vrcp.f32 %v1430_v33 }
 0x8a4   : > { %v1441_v35 = vpop.permute.xlu0 %1440 }
 0x8a5   : > { %3627 = vmatprep.subr.msk.mxu0 %vm1023_vm10, %v1441_v35 }
 0x8a6   : > { %3628 = vmatpush3.msk.msra.mxu0 %vm1023_vm10, %v1441_v35 }
 0x8a7   : > { %3629 = vmatprep.subr.mxu0 %v1439_v34 }
 0x8a8   : > { %3630 = vmatpush3.msra.mxu0 %v1439_v34  ;;  %v1539_v41 = vpop.permute.xlu0 %1538 }
 0x8a9   : > { %3634 = vmatprep.subr.msk.mxu0 %vm900_vm5, %v1545_v36 }
 0x8aa   : > { %v3906_v37 = vpop.eup %3905 }
 0x8ab   : > { %v1437_v40 = vmul.f32 %v3906_v37, %v3902_v28 }
 0x8ae   : > { %v3908_v38 = vpop.eup %3907 }
 0x8af   : > { %v1436_v39 = vmul.f32 %v3908_v38, %v3904_v30 }
 0x8b1   : > { %3631 = vmatprep.mubr.msk.f32.mxu0 %vm988_vm9, %v1436_v39 }
 0x8b2   : > { %3632 = vmatmul.mubr.msk.f32.vlgmr.msra.gmra.mxu0 %vm988_vm9, %v1437_v40 }
 0x8b3   : > { %3635 = vmatpush3.xpose.msk.msra.mxu0 %vm900_vm5, %v1545_v36  ;;  %3638 = vmatprep.mubr.msk.f32.mxu0 %vm900_vm5, %v1539_v41 }
 0x8b4   : > { %3636 = vmatprep.subr.msk.mxu0 %vm900_vm5, %v1543_v42 }
 0x8b7   : > { %3637 = vmatpush3.xpose.msk.msra.mxu0 %vm900_vm5, %v1543_v42 }
 0x8ba   : > { %3639 = vmatmul.mubr.msk.f32.vlgmr.msra.gmra.mxu0 %vm900_vm5, %v1541_v43 }
 0x972   : > { %v4310_v44 = vpop.f32.mrf.mxu0 }
 0x974   : > { %v4312_v45 = vpop.f32.mrf.mxu0 }
 0x97a   : > { %v3640_v46 = vpop.f32.mrf.mxu0 }
 0x97b   : > { %v1630_v47 = vmul.f32 0.35355338, %v3640_v46 }
 0x97c   : > { %v1620_v48 = vpop.f32.mrf.mxu0 }
 0x97d   : > { %v1629_v49 = vmul.f32 0.35355338, %v1620_v48  ;;  %v1632_v50 = vadd.f32 %v1630_v47, %v4216_v6 }
 0x97f   : > { %v1636_v51 = vsel %vm992_vm8, %v1632_v50, -inf  ;;  %v1631_v52 = vadd.f32 %v1629_v49, %v4218_v9 }
 0x980   : > { %1637 = vmax.xlane.f32.xlu1 %v1636_v51 }
 0x981   : > { %v1633_v53 = vsel %vm988_vm9, %v1631_v52, -inf }
 0x982   : > { %1634 = vmax.xlane.f32.xlu0 %v1633_v53 }
 0x991   : > { %1655 = vrot.lane.b32.xlu1 %v4198_v54, %s3991_s5 }
 0x995   : > { %1762 = vrot.lane.b32.xlu1 %v4321_v55, %s3980_s3 }
 0x999   : > { %1760 = vrot.lane.b32.xlu1 %v4327_v58, %s3980_s3  ;;  %s3994_s3 = smov 24  }
 0xa09   : > { %v1638_v59 = vpop.xlane.xlu1 %1637 }
 0xa0a   : > { %v1640_v61 = vsub.f32 %v1632_v50, %v1638_v59 }
 0xa0b   : > { %v1635_v62 = vpop.xlane.xlu0 %1634 }
 0xa0c   : > { %v1643_v63 = vmul.f32 1.442695, %v1640_v61  ;;  %v1639_v54 = vsub.f32 %v1631_v52, %v1635_v62 }
 0xa0d   : > { %v1656_v7 = vpop.permute.xlu1 %1655 }
 0xa0e   : > { %3909 = vpow2.f32 %v1643_v63  ;;  %v1641_v60 = vmul.f32 1.442695, %v1639_v54 }
 0xa10   : > { %3911 = vpow2.f32 %v1641_v60 }
 0xa11   : > { %v1763_v10 = vpop.permute.xlu1 %1762 }
 0xa1b   : > { %v3910_v0 = vpop.eup %3909 }
 0xa1c   : > { %v1648_v1 = vsel %vm992_vm8, %v3910_v0, 0.0 }
 0xa1d   : > { %v3912_v2 = vpop.eup %3911  ;;  %1649 = vadd.xlane.f32.xlu0 %v1648_v1 }
 0xa1e   : > { %v1645_v3 = vsel %vm988_vm9, %v3912_v2, 0.0 }
 0xa21   : > { %1646 = vadd.xlane.f32.xlu0 %v1645_v3 }
 0xa37   : > { %1657 = vrot.lane.b32.xlu0 %v4204_v57, %s3991_s5  ;;  %v1761_v57 = vpop.permute.xlu1 %1760 }
 0xaa6   : > { %v1650_v4 = vpop.xlane.xlu0 %1649 }
 0xaa7   : > { %3913 = vrcp.f32 %v1650_v4 }
 0xaaa   : > { %v1647_v5 = vpop.xlane.xlu0 %1646 }
 0xaab   : > { %3915 = vrcp.f32 %v1647_v5 }
 0xaae   : > { %v1658_v8 = vpop.permute.xlu0 %1657 }
 0xaaf   : > { %3641 = vmatprep.subr.msk.mxu1 %vm1023_vm10, %v1658_v8 }
 0xab0   : > { %3642 = vmatpush3.msk.msra.mxu1 %vm1023_vm10, %v1658_v8 }
 0xab1   : > { %3643 = vmatprep.subr.mxu1 %v1656_v7 }
 0xab2   : > { %3644 = vmatpush3.msra.mxu1 %v1656_v7 }
 0xab3   : > { %3648 = vmatprep.subr.msk.mxu1 %vm900_vm5, %v1763_v10 }
 0xab4   : > { %v3914_v13 = vpop.eup %3913 }
 0xab5   : > { %v1654_v16 = vmul.f32 %v3914_v13, %v3910_v0 }
 0xab8   : > { %v3916_v14 = vpop.eup %3915 }
 0xab9   : > { %v1653_v15 = vmul.f32 %v3916_v14, %v3912_v2 }
 0xabb   : > { %3645 = vmatprep.mubr.msk.f32.mxu1 %vm988_vm9, %v1653_v15 }
 0xabc   : > { %3646 = vmatmul.mubr.msk.f32.vlgmr.msra.gmra.mxu1 %vm988_vm9, %v1654_v16 }
 0xabd   : > { %3649 = vmatpush3.xpose.msk.msra.mxu1 %vm900_vm5, %v1763_v10  ;;  %3652 = vmatprep.mubr.msk.f32.mxu1 %vm900_vm5, %v4327_v58 }
 0xabe   : > { %3650 = vmatprep.subr.msk.mxu1 %vm900_vm5, %v1761_v57 }
 0xac1   : > { %3651 = vmatpush3.xpose.msk.msra.mxu1 %vm900_vm5, %v1761_v57 }
 0xac4   : > { %3653 = vmatmul.mubr.msk.f32.vlgmr.msra.gmra.mxu1 %vm900_vm5, %v4321_v55 }
 0xb7c   : > { %v4347_v17 = vpop.f32.mrf.mxu1 }
 0xb7e   : > { %v4349_v18 = vpop.f32.mrf.mxu1 }
 0xb84   : > { %v3654_v19 = vpop.f32.mrf.mxu1 }
 0xb85   : > { %v1848_v20 = vmul.f32 0.35355338, %v3654_v19 }
 0xb86   : > { %v1838_v21 = vpop.f32.mrf.mxu1 }
 0xb87   : > { %v1847_v22 = vmul.f32 0.35355338, %v1838_v21  ;;  %v1850_v23 = vadd.f32 %v1848_v20, %v4216_v6 }
 0xb89   : > { %v1854_v24 = vsel %vm992_vm8, %v1850_v23, -inf  ;;  %v1849_v26 = vadd.f32 %v1847_v22, %v4218_v9 }
 0xb8a   : > { %1855 = vmax.xlane.f32.xlu1 %v1854_v24 }
 0xb8b   : > { %v1851_v27 = vsel %vm988_vm9, %v1849_v26, -inf }
 0xb8c   : > { %1852 = vmax.xlane.f32.xlu0 %v1851_v27 }
 0xb9b   : > { %1873 = vrot.lane.b32.xlu1 %v4327_v58, %s3982_s29 }
 0xb9f   : > { %1969 = vrot.lane.b32.xlu1 %v4321_v55, %s3983_s21 }
 0xba3   : > { %1967 = vrot.lane.b32.xlu1 %v4327_v58, %s3983_s21  ;;  %s4829_s21 = scalar_lea.vmem %s4798_s4, %s4094_s23 }
 0xba7   : > { %1965 = vrot.lane.b32.xlu1 %v4321_v55, %s3984_s20 }
 0xc13   : > { %v1856_v28 = vpop.xlane.xlu1 %1855 }
 0xc14   : > { %v1858_v29 = vsub.f32 %v1850_v23, %v1856_v28 }
 0xc15   : > { %v1853_v30 = vpop.xlane.xlu0 %1852 }
 0xc16   : > { %v1861_v31 = vmul.f32 1.442695, %v1858_v29  ;;  %v1857_v32 = vsub.f32 %v1849_v26, %v1853_v30 }
 0xc17   : > { %v1874_v40 = vpop.permute.xlu1 %1873 }
 0xc18   : > { %3917 = vpow2.f32 %v1861_v31  ;;  %v1859_v33 = vmul.f32 1.442695, %v1857_v32 }
 0xc1a   : > { %3919 = vpow2.f32 %v1859_v33 }
 0xc1b   : > { %v1970_v42 = vpop.permute.xlu1 %1969 }
 0xc1f   : > { %v1968_v50 = vpop.permute.xlu1 %1967 }
 0xc23   : > { %v1966_v51 = vpop.permute.xlu1 %1965 }
 0xc25   : > { %v3918_v34 = vpop.eup %3917 }
 0xc26   : > { %v1866_v35 = vsel %vm992_vm8, %v3918_v34, 0.0 }
 0xc27   : > { %v3920_v36 = vpop.eup %3919  ;;  %1867 = vadd.xlane.f32.xlu0 %v1866_v35 }
 0xc28   : > { %v1863_v37 = vsel %vm988_vm9, %v3920_v36, 0.0 }
 0xc2b   : > { %1864 = vadd.xlane.f32.xlu0 %v1863_v37 }
 0xc41   : > { %1875 = vrot.lane.b32.xlu0 %v4321_v55, %s3982_s29 }
 0xc45   : > { %1963 = vrot.lane.b32.xlu0 %v4327_v58, %s3984_s20 }
 0xcb0   : > { %v1868_v38 = vpop.xlane.xlu0 %1867 }
 0xcb1   : > { %3921 = vrcp.f32 %v1868_v38 }
 0xcb4   : > { %v1865_v39 = vpop.xlane.xlu0 %1864 }
 0xcb5   : > { %3923 = vrcp.f32 %v1865_v39 }
 0xcb8   : > { %v1876_v41 = vpop.permute.xlu0 %1875 }
 0xcb9   : > { %3655 = vmatprep.subr.msk.mxu0 %vm1023_vm10, %v1876_v41 }
 0xcba   : > { %3656 = vmatpush3.msk.msra.mxu0 %vm1023_vm10, %v1876_v41 }
 0xcbb   : > { %3657 = vmatprep.subr.mxu0 %v1874_v40 }
 0xcbc   : > { %3658 = vmatpush3.msra.mxu0 %v1874_v40  ;;  %v1964_v49 = vpop.permute.xlu0 %1963 }
 0xcbd   : > { %3662 = vmatprep.subr.msk.mxu0 %vm900_vm5, %v1970_v42 }
 0xcbe   : > { %v3922_v43 = vpop.eup %3921 }
 0xcbf   : > { %v1872_v48 = vmul.f32 %v3922_v43, %v3918_v34 }
 0xcc2   : > { %v3924_v46 = vpop.eup %3923 }
 0xcc3   : > { %v1871_v47 = vmul.f32 %v3924_v46, %v3920_v36 }
 0xcc5   : > { %3659 = vmatprep.mubr.msk.f32.mxu0 %vm988_vm9, %v1871_v47 }
 0xcc6   : > { %3660 = vmatmul.mubr.msk.f32.vlgmr.msra.gmra.mxu0 %vm988_vm9, %v1872_v48 }
 0xcc7   : > { %3663 = vmatpush3.xpose.msk.msra.mxu0 %vm900_vm5, %v1970_v42  ;;  %3666 = vmatprep.mubr.msk.f32.mxu0 %vm900_vm5, %v1964_v49 }
 0xcc8   : > { %3664 = vmatprep.subr.msk.mxu0 %vm900_vm5, %v1968_v50 }
 0xccb   : > { %3665 = vmatpush3.xpose.msk.msra.mxu0 %vm900_vm5, %v1968_v50 }
 0xcce   : > { %3667 = vmatmul.mubr.msk.f32.vlgmr.msra.gmra.mxu0 %vm900_vm5, %v1966_v51 }
 0xd86   : > { %v3661_v52 = vpop.f32.mrf.mxu0 }
 0xd87   : > { %1962 = vst.msk [vmem:[#allocation3 + $0x11] sm:$0x1] %vm1102_vm11, %v3661_v52 }
 0xd88   : > { %v1952_v53 = vpop.f32.mrf.mxu0 }
 0xd89   : > { %1961 = vst.msk [vmem:[#allocation3 + $0x9] sm:$0xff] %vm900_vm5, %v1952_v53 }
 0xd8e   : > { %v3668_v56 = vpop.f32.mrf.mxu0 }
 0xd8f   : > { %v2055_v59 = vmul.f32 0.35355338, %v3668_v56 }
 0xd90   : > { %v2045_v61 = vpop.f32.mrf.mxu0 }
 0xd91   : > { %v2054_v62 = vmul.f32 0.35355338, %v2045_v61  ;;  %v2057_v63 = vadd.f32 %v2055_v59, %v4216_v6 }
 0xd93   : > { %v2061_v54 = vsel %vm992_vm8, %v2057_v63, -inf  ;;  %v2056_v60 = vadd.f32 %v2054_v62, %v4218_v9 }
 0xd94   : > { %2062 = vmax.xlane.f32.xlu1 %v2061_v54 }
 0xd95   : > { %v2058_v0 = vsel %vm988_vm9, %v2056_v60, -inf }
 0xd96   : > { %2059 = vmax.xlane.f32.xlu0 %v2058_v0 }
 0xda5   : > { %2080 = vrot.lane.b32.xlu1 %v4327_v58, %s3985_s16 }
 0xda9   : > { %2184 = vrot.lane.b32.xlu1 %v4321_v55, %s3986_s24 }
 0xdad   : > { %2182 = vrot.lane.b32.xlu1 %v4327_v58, %s3986_s24  ;;  %s4832_s24 = sld [smem:[#allocation9_spill]] (!%p3424_p5) }
 0xdb1   : > { %2180 = vrot.lane.b32.xlu1 %v4321_v55, %s3987_s15 }
 0xe1d   : > { %v2063_v1 = vpop.xlane.xlu1 %2062 }
 0xe1e   : > { %v2065_v2 = vsub.f32 %v2057_v63, %v2063_v1 }
 0xe1f   : > { %v2060_v3 = vpop.xlane.xlu0 %2059 }
 0xe20   : > { %v2068_v4 = vmul.f32 1.442695, %v2065_v2  ;;  %v2064_v5 = vsub.f32 %v2056_v60, %v2060_v3 }
 0xe21   : > { %v2081_v57 = vpop.permute.xlu1 %2080 }
 0xe22   : > { %3925 = vpow2.f32 %v2068_v4  ;;  %v2066_v7 = vmul.f32 1.442695, %v2064_v5 }
 0xe24   : > { %3927 = vpow2.f32 %v2066_v7 }
 0xe25   : > { %v2185_v20 = vpop.permute.xlu1 %2184 }
 0xe29   : > { %v2183_v27 = vpop.permute.xlu1 %2182 }
 0xe2d   : > { %v2181_v28 = vpop.permute.xlu1 %2180 }
 0xe2f   : > { %v3926_v8 = vpop.eup %3925 }
 0xe30   : > { %v2073_v10 = vsel %vm992_vm8, %v3926_v8, 0.0 }
 0xe31   : > { %v3928_v13 = vpop.eup %3927  ;;  %2074 = vadd.xlane.f32.xlu0 %v2073_v10 }
 0xe32   : > { %v2070_v14 = vsel %vm988_vm9, %v3928_v13, 0.0 }
 0xe35   : > { %2071 = vadd.xlane.f32.xlu0 %v2070_v14 }
 0xe4b   : > { %2082 = vrot.lane.b32.xlu0 %v4321_v55, %s3985_s16 }
 0xe4f   : > { %2178 = vrot.lane.b32.xlu0 %v4327_v58, %s3987_s15 }
 0xeba   : > { %v2075_v15 = vpop.xlane.xlu0 %2074 }
 0xebb   : > { %3929 = vrcp.f32 %v2075_v15 }
 0xebe   : > { %v2072_v16 = vpop.xlane.xlu0 %2071 }
 0xebf   : > { %3931 = vrcp.f32 %v2072_v16 }
 0xec2   : > { %v2083_v19 = vpop.permute.xlu0 %2082 }
 0xec3   : > { %3669 = vmatprep.subr.msk.mxu1 %vm1023_vm10, %v2083_v19 }
 0xec4   : > { %3670 = vmatpush3.msk.msra.mxu1 %vm1023_vm10, %v2083_v19 }
 0xec5   : > { %3671 = vmatprep.subr.mxu1 %v2081_v57 }
 0xec6   : > { %3672 = vmatpush3.msra.mxu1 %v2081_v57  ;;  %v2179_v26 = vpop.permute.xlu0 %2178 }
 0xec7   : > { %3676 = vmatprep.subr.msk.mxu1 %vm900_vm5, %v2185_v20 }
 0xec8   : > { %v3930_v21 = vpop.eup %3929 }
 0xec9   : > { %v2079_v24 = vmul.f32 %v3930_v21, %v3926_v8 }
 0xecc   : > { %v3932_v22 = vpop.eup %3931 }
 0xecd   : > { %v2078_v23 = vmul.f32 %v3932_v22, %v3928_v13 }
 0xecf   : > { %3673 = vmatprep.mubr.msk.f32.mxu1 %vm988_vm9, %v2078_v23 }
 0xed0   : > { %3674 = vmatmul.mubr.msk.f32.vlgmr.msra.gmra.mxu1 %vm988_vm9, %v2079_v24 }
 0xed1   : > { %3677 = vmatpush3.xpose.msk.msra.mxu1 %vm900_vm5, %v2185_v20  ;;  %3680 = vmatprep.mubr.msk.f32.mxu1 %vm900_vm5, %v2179_v26 }
 0xed2   : > { %3678 = vmatprep.subr.msk.mxu1 %vm900_vm5, %v2183_v27 }
 0xed5   : > { %3679 = vmatpush3.xpose.msk.msra.mxu1 %vm900_vm5, %v2183_v27 }
 0xed8   : > { %3681 = vmatmul.mubr.msk.f32.vlgmr.msra.gmra.mxu1 %vm900_vm5, %v2181_v28 }
 0xf90   : > { %v4409_v29 = vpop.f32.mrf.mxu1 }
 0xf92   : > { %v4411_v30 = vpop.f32.mrf.mxu1 }
 0xf98   : > { %v3682_v31 = vpop.f32.mrf.mxu1 }
 0xf99   : > { %v2270_v32 = vmul.f32 0.35355338, %v3682_v31 }
 0xf9a   : > { %v2260_v33 = vpop.f32.mrf.mxu1 }
 0xf9b   : > { %v2269_v34 = vmul.f32 0.35355338, %v2260_v33  ;;  %v2272_v35 = vadd.f32 %v2270_v32, %v4216_v6 }
 0xf9d   : > { %v2276_v36 = vsel %vm992_vm8, %v2272_v35, -inf  ;;  %v2271_v37 = vadd.f32 %v2269_v34, %v4218_v9 }
 0xf9e   : > { %2277 = vmax.xlane.f32.xlu1 %v2276_v36  ;;  %v698_v36 = vld [vmem:[%s4109_s18 + $0x10] sm:$0xff] }
 0xf9f   : > { %v2273_v38 = vsel %vm988_vm9, %v2271_v37, -inf }
 0xfa0   : > { %2274 = vmax.xlane.f32.xlu0 %v2273_v38  ;;  %v696_v38 = vld [vmem:[%s4109_s18] sm:$0xff] }
 0xfaf   : > { %2295 = vrot.lane.b32.xlu1 %v4327_v58, %s3988_s30 }
 0xfb3   : > { %2399 = vrot.lane.b32.xlu1 %v4321_v55, %s3989_s25 }
 0xfb7   : > { %2397 = vrot.lane.b32.xlu1 %v4327_v58, %s3989_s25 }
 0xfbb   : > { %2395 = vrot.lane.b32.xlu1 %v4321_v55, %s3990_s26 }
0x1027   : > { %v2278_v39 = vpop.xlane.xlu1 %2277 }
0x1028   : > { %v2280_v40 = vsub.f32 %v2272_v35, %v2278_v39  ;;  %v699_v35 = vld [vmem:[%s4109_s18 + $0x18] sm:$0xff] }
0x1029   : > { %v2275_v41 = vpop.xlane.xlu0 %2274 }
0x102a   : > { %v2283_v42 = vmul.f32 1.442695, %v2280_v40  ;;  %v2279_v43 = vsub.f32 %v2271_v37, %v2275_v41  ;;  %v697_v37 = vld [vmem:[%s4109_s18 + $0x8] sm:$0xff] }
0x102b   : > { %v2296_v53 = vpop.permute.xlu1 %2295 }
0x102c   : > { %3933 = vpow2.f32 %v2283_v42  ;;  %v2281_v46 = vmul.f32 1.442695, %v2279_v43 }
0x102e   : > { %3935 = vpow2.f32 %v2281_v46  ;;  %v3413_v46 = vld [vmem:[%s4829_s21] ss:$0 sm:$0xff] }
0x102f   : > { %v2400_v59 = vpop.permute.xlu1 %2399 }
0x1033   : > { %v2398_v0 = vpop.permute.xlu1 %2397 }
0x1037   : > { %v2396_v1 = vpop.permute.xlu1 %2395 }
0x1039   : > { %v3934_v47 = vpop.eup %3933 }
0x103a   : > { %v2288_v48 = vsel %vm992_vm8, %v3934_v47, 0.0 }
0x103b   : > { %v3936_v49 = vpop.eup %3935  ;;  %2289 = vadd.xlane.f32.xlu0 %v2288_v48  ;;  %v3961_v48 = vld [vmem:[#allocation2] sm:$0xff] }
0x103c   : > { %v2285_v50 = vsel %vm988_vm9, %v3936_v49, 0.0 }
0x103f   : > { %2286 = vadd.xlane.f32.xlu0 %v2285_v50 }
0x1055   : > { %2297 = vrot.lane.b32.xlu0 %v4321_v55, %s3988_s30 }
0x1059   : > { %2393 = vrot.lane.b32.xlu0 %v4327_v58, %s3990_s26 }
0x10c4   : > { %v2290_v51 = vpop.xlane.xlu0 %2289 }
0x10c5   : > { %3937 = vrcp.f32 %v2290_v51 }
0x10c8   : > { %v2287_v52 = vpop.xlane.xlu0 %2286 }
0x10c9   : > { %3939 = vrcp.f32 %v2287_v52 }
0x10cc   : > { %v2298_v56 = vpop.permute.xlu0 %2297 }
0x10cd   : > { %3683 = vmatprep.subr.msk.mxu0 %vm1023_vm10, %v2298_v56 }
0x10ce   : > { %3684 = vmatpush3.msk.msra.mxu0 %vm1023_vm10, %v2298_v56 }
0x10cf   : > { %3685 = vmatprep.subr.mxu0 %v2296_v53 }
0x10d0   : > { %3686 = vmatpush3.msra.mxu0 %v2296_v53  ;;  %v2394_v60 = vpop.permute.xlu0 %2393 }
0x10d1   : > { %3690 = vmatprep.subr.msk.mxu0 %vm900_vm5, %v2400_v59 }
0x10d2   : > { %v3938_v61 = vpop.eup %3937 }
0x10d3   : > { %v2294_v54 = vmul.f32 %v3938_v61, %v3934_v47 }
0x10d6   : > { %v3940_v62 = vpop.eup %3939 }
0x10d7   : > { %v2293_v63 = vmul.f32 %v3940_v62, %v3936_v49 }
0x10d9   : > { %3687 = vmatprep.mubr.msk.f32.mxu0 %vm988_vm9, %v2293_v63 }
0x10da   : > { %3688 = vmatmul.mubr.msk.f32.vlgmr.msra.gmra.mxu0 %vm988_vm9, %v2294_v54 }
0x10db   : > { %3691 = vmatpush3.xpose.msk.msra.mxu0 %vm900_vm5, %v2400_v59  ;;  %3694 = vmatprep.mubr.msk.f32.mxu0 %vm900_vm5, %v2394_v60 }
0x10dc   : > { %3692 = vmatprep.subr.msk.mxu0 %vm900_vm5, %v2398_v0 }
0x10df   : > { %3693 = vmatpush3.xpose.msk.msra.mxu0 %vm900_vm5, %v2398_v0  ;;  %v3962_v0 = vld [vmem:[#allocation2 + $0x8] sm:$0xff] }
0x10e0   : > { %3721 = vmatprep.subr.mxu0 %v3978_v25 }
0x10e2   : > { %3695 = vmatmul.mubr.msk.f32.vlgmr.msra.gmra.mxu0 %vm900_vm5, %v2396_v1  ;;  %vm1751_vm5 = vcmask 261312  }
0x10e3   : > { %3729 = vmatprep.mubr.msk.f32.mxu0 %vm3979_vm4, %v3978_v25 }
0x119a   : > { %v4444_v2 = vpop.f32.mrf.mxu0 }
0x119c   : > { %v2374_v3 = vpop.f32.mrf.mxu0 }
0x11a2   : > { %v3696_v4 = vpop.f32.mrf.mxu0 }
0x11a3   : > { %v2485_v5 = vmul.f32 0.35355338, %v3696_v4 }
0x11a4   : > { %v2475_v7 = vpop.f32.mrf.mxu0 }
0x11a5   : > { %v2484_v8 = vmul.f32 0.35355338, %v2475_v7  ;;  %v2487_v10 = vadd.f32 %v2485_v5, %v4216_v6 }
0x11a7   : > { %v2491_v13 = vsel %vm992_vm8, %v2487_v10, -inf  ;;  %v2486_v14 = vadd.f32 %v2484_v8, %v4218_v9  ;;  %v3963_v8 = vld [vmem:[#allocation2 + $0x10] sm:$0x3] }
0x11a8   : > { %2492 = vmax.xlane.f32.xlu1 %v2491_v13 }
0x11a9   : > { %v2488_v15 = vsel %vm988_vm9, %v2486_v14, -inf }
0x11aa   : > { %2489 = vmax.xlane.f32.xlu0 %v2488_v15 }
0x11b9   : > { %2510 = vrot.lane.b32.xlu1 %v4327_v58, %s3991_s5 }
0x11bd   : > { %1311 = vrot.lane.b32.xlu1 %v4280_v12, %s3992_s14 }
0x11c1   : > { %1528 = vrot.lane.b32.xlu1 %v4312_v45, %s3993_s1 }
0x11c5   : > { %1313 = vrot.lane.b32.xlu1 %v4278_v11, %s3992_s14 }
0x11c9   : > { %1530 = vrot.lane.b32.xlu1 %v4310_v44, %s3993_s1 }
0x11cd   : > { %1747 = vrot.lane.b32.xlu1 %v4347_v17, %s3994_s3 }
0x11d1   : > { %2172 = vrot.lane.b32.xlu1 %v4409_v29, %s3992_s14 }
0x1231   : > { %v2493_v6 = vpop.xlane.xlu1 %2492 }
0x1232   : > { %v2495_v9 = vsub.f32 %v2487_v10, %v2493_v6  ;;  %v704_v6 = vld [vmem:[%s4118_s13 + $0x18] sm:$0xff] }
0x1233   : > { %v2490_v12 = vpop.xlane.xlu0 %2489  ;;  %3722 = vmatpush3.msra.mxu0 %v704_v6 }
0x1234   : > { %v2498_v58 = vmul.f32 1.442695, %v2495_v9  ;;  %v2494_v16 = vsub.f32 %v2486_v14, %v2490_v12  ;;  %v703_v9 = vld [vmem:[%s4118_s13 + $0x10] sm:$0xff]  ;;  %3723 = vmatprep.subr.mxu0 %v3978_v25  ;;  %v702_v12 = vld [vmem:[%s4118_s13 + $0x8] sm:$0xff] }
0x1235   : > { %v2511_v57 = vpop.permute.xlu1 %2510  ;;  %3724 = vmatpush3.msra.mxu0 %v703_v9 }
0x1236   : > { %3941 = vpow2.f32 %v2498_v58  ;;  %v2496_v45 = vmul.f32 1.442695, %v2494_v16  ;;  %3725 = vmatprep.subr.mxu0 %v3978_v25  ;;  %v701_v58 = vld [vmem:[%s4118_s13] sm:$0xff] }
0x1237   : > { %3726 = vmatpush3.msra.mxu0 %v702_v12 }
0x1238   : > { %3943 = vpow2.f32 %v2496_v45  ;;  %3727 = vmatprep.subr.mxu0 %v3978_v25 }
0x1239   : > { %v1312_v11 = vpop.permute.xlu1 %1311  ;;  %3728 = vmatpush3.msra.mxu0 %v701_v58 }
0x123a   : > { %1318 = vst.msk [vmem:[#allocation3] sm:$0xff] %vm1317_vm13, %v1312_v11 }
0x123d   : > { %v1529_v44 = vpop.permute.xlu1 %1528 }
0x123e   : > { %1535 = vst.msk [vmem:[#allocation3] sm:$0xff] %vm1534_vm14, %v1529_v44 }
0x1241   : > { %v1314_v17 = vpop.permute.xlu1 %1313 }
0x1242   : > { %1320 = vst.msk [vmem:[#allocation3 + $0x8] sm:$0x1] %vm1319_vm15, %v1314_v17 }
0x1243   : > { %v3942_v19 = vpop.eup %3941 }
0x1244   : > { %v2503_v20 = vsel %vm992_vm8, %v3942_v19, 0.0 }
0x1245   : > { %v3944_v21 = vpop.eup %3943  ;;  %v1531_v22 = vpop.permute.xlu1 %1530  ;;  %2504 = vadd.xlane.f32.xlu0 %v2503_v20 }
0x1246   : > { %1537 = vst.msk [vmem:[#allocation3 + $0x8] sm:$0x1] %vm1536_vm0, %v1531_v22  ;;  %v2500_v23 = vsel %vm988_vm9, %v3944_v21, 0.0 }
0x1249   : > { %v1748_v24 = vpop.permute.xlu1 %1747  ;;  %2501 = vadd.xlane.f32.xlu0 %v2500_v23 }
0x124a   : > { %1754 = vst.msk [vmem:[#allocation3 + $0x8] sm:$0x1] %vm1753_vm1, %v1748_v24 }
0x124d   : > { %v2173_v26 = vpop.permute.xlu1 %2172 }
0x124e   : > { %2177 = vst.msk [vmem:[#allocation3 + $0x11] sm:$0x1] %vm1319_vm15, %v2173_v26 }
0x125f   : > { %2512 = vrot.lane.b32.xlu0 %v4321_v55, %s3991_s5 }
0x1263   : > { %1745 = vrot.lane.b32.xlu0 %v4349_v18, %s3994_s3 }
0x1267   : > { %2170 = vrot.lane.b32.xlu0 %v4411_v30, %s3992_s14 }
0x126b   : > { %2385 = vrot.lane.b32.xlu0 %v2374_v3, %s3993_s1 }
0x12ce   : > { %v2505_v27 = vpop.xlane.xlu0 %2504 }
0x12cf   : > { %3945 = vrcp.f32 %v2505_v27 }
0x12d2   : > { %v2502_v28 = vpop.xlane.xlu0 %2501 }
0x12d3   : > { %3947 = vrcp.f32 %v2502_v28  ;;  %v4556_v28 = vld [vmem:[%s675_s28] ss:$0 sm:$0xff] }
0x12d6   : > { %v2513_v29 = vpop.permute.xlu0 %2512 }
0x12d7   : > { %3697 = vmatprep.subr.msk.mxu1 %vm1023_vm10, %v2513_v29 }
0x12d8   : > { %3698 = vmatpush3.msk.msra.mxu1 %vm1023_vm10, %v2513_v29 }
0x12d9   : > { %3699 = vmatprep.subr.mxu1 %v2511_v57 }
0x12da   : > { %3700 = vmatpush3.msra.mxu1 %v2511_v57  ;;  %v1746_v55 = vpop.permute.xlu0 %1745 }
0x12db   : > { %1752 = vst.msk [vmem:[#allocation3] sm:$0xff] %vm1751_vm5, %v1746_v55  ;;  %3704 = vmatprep.subr.mxu1 %v3978_v25  ;;  %v4563_v55 = vld [vmem:[%s678_s27] ss:$0 sm:$0xff]  ;;  %s4830_s27 = scalar_lea.vmem %s4800_s6, %s4094_s23 }
0x12dc   : > { %v3946_v30 = vpop.eup %3945 }
0x12dd   : > { %v2509_v34 = vmul.f32 %v3946_v30, %v3942_v19 }
0x12de   : > { %v2171_v18 = vpop.permute.xlu0 %2170 }
0x12df   : > { %2176 = vst.msk [vmem:[#allocation3 + $0x9] sm:$0xff] %vm1317_vm13, %v2171_v18 }
0x12e0   : > { %v3948_v31 = vpop.eup %3947 }
0x12e1   : > { %v2508_v32 = vmul.f32 %v3948_v31, %v3944_v21  ;;  %v721_v31 = vld [vmem:[%s4128_s0 + $0x78] sm:$0xff] }
0x12e2   : > { %v2386_v33 = vpop.permute.xlu0 %2385  ;;  %v2608_v39 = vld [vmem:[#allocation3] sm:$0xff] }
0x12e3   : > { %2391 = vst.msk [vmem:[#allocation3 + $0x9] sm:$0xff] %vm1534_vm14, %v2386_v33  ;;  %3701 = vmatprep.mubr.msk.f32.mxu1 %vm988_vm9, %v2508_v32  ;;  %v720_v32 = vld [vmem:[%s4128_s0 + $0x70] sm:$0xff]  ;;  %v719_v33 = vld [vmem:[%s4128_s0 + $0x68] sm:$0xff] }
0x12e4   : > { %3702 = vmatmul.mubr.msk.f32.vlgmr.msra.gmra.mxu1 %vm988_vm9, %v2509_v34  ;;  %v718_v34 = vld [vmem:[%s4128_s0 + $0x60] sm:$0xff] }
0x12e5   : > { %3705 = vmatpush3.msra.mxu1 %v699_v35  ;;  %3712 = vmatprep.mubr.msk.f32.mxu1 %vm3979_vm4, %v3978_v25  ;;  %v717_v35 = vld [vmem:[%s4128_s0 + $0x58] sm:$0xff] }
0x12e6   : > { %3706 = vmatprep.subr.mxu1 %v3978_v25 }
0x12e7   : > { %3707 = vmatpush3.msra.mxu1 %v698_v36  ;;  %v716_v36 = vld [vmem:[%s4128_s0 + $0x50] sm:$0xff] }
0x12e8   : > { %3708 = vmatprep.subr.mxu1 %v3978_v25 }
0x12e9   : > { %3709 = vmatpush3.msra.mxu1 %v697_v37  ;;  %v715_v37 = vld [vmem:[%s4128_s0 + $0x48] sm:$0xff] }
0x12ea   : > { %3710 = vmatprep.subr.mxu1 %v3978_v25 }
0x12eb   : > { %3711 = vmatpush3.msra.mxu1 %v696_v38  ;;  %v714_v38 = vld [vmem:[%s4128_s0 + $0x40] sm:$0xff] }
0x12ec   : > { %3713 = vmatmul.mubr.msk.f32.vlgmr.msra.gmra.mxu1 %vm730_vm2, %v2608_v39  ;;  %3738 = vmatprep.subr.mxu1 %v3978_v25  ;;  %v713_v39 = vld [vmem:[%s4128_s0 + $0x38] sm:$0xff] }
0x12ed   : > { %3715 = vmatprep.mubr.msk.f32.mxu1 %vm3979_vm4, %v3978_v25  ;;  %3739 = vmatpush3.msra.mxu1 %v721_v31 }
0x12ee   : > { %3740 = vmatprep.subr.mxu1 %v3978_v25 }
0x12ef   : > { %3741 = vmatpush3.msra.mxu1 %v720_v32 }
0x12f0   : > { %3742 = vmatprep.subr.mxu1 %v3978_v25 }
0x12f1   : > { %3743 = vmatpush3.msra.mxu1 %v719_v33 }
0x12f2   : > { %3744 = vmatprep.subr.mxu1 %v3978_v25 }
0x12f3   : > { %3745 = vmatpush3.msra.mxu1 %v718_v34 }
0x12f4   : > { %3746 = vmatprep.subr.mxu1 %v3978_v25 }
0x12f5   : > { %3747 = vmatpush3.msra.mxu1 %v717_v35 }
0x12f6   : > { %3748 = vmatprep.subr.mxu1 %v3978_v25 }
0x12f7   : > { %3749 = vmatpush3.msra.mxu1 %v716_v36 }
0x12f8   : > { %3750 = vmatprep.subr.mxu1 %v3978_v25 }
0x12f9   : > { %3751 = vmatpush3.msra.mxu1 %v715_v37 }
0x12fa   : > { %3752 = vmatprep.subr.mxu1 %v3978_v25 }
0x12fb   : > { %3753 = vmatpush3.msra.mxu1 %v714_v38  ;;  %v3423_v38 = vld [vmem:[%s666_s19] ss:$0 sm:$0xff]  ;;  %s4831_s19 = sld [smem:[#allocation11_spill]] (!%p3424_p5) }
0x12fc   : > { %3754 = vmatprep.subr.mxu1 %v3978_v25 }
0x12fd   : > { %3755 = vmatpush3.msra.mxu1 %v713_v39 }
0x12fe   : > { %3756 = vmatprep.subr.mxu1 %v3978_v25 }
0x13a4   : > { %v3703_v40 = vpop.f32.mrf.mxu1 }
0x13a5   : > { %2602 = vrot.lane.b32.xlu1 %v3703_v40, %s3994_s3  ;;  %v712_v40 = vld [vmem:[%s4128_s0 + $0x30] sm:$0xff] }
0x13a6   : > { %v2589_v41 = vpop.f32.mrf.mxu1  ;;  %3757 = vmatpush3.msra.mxu1 %v712_v40 }
0x13a7   : > { %2600 = vrot.lane.b32.xlu0 %v2589_v41, %s3994_s3  ;;  %v711_v41 = vld [vmem:[%s4128_s0 + $0x28] sm:$0xff]  ;;  %3758 = vmatprep.subr.mxu1 %v3978_v25 }
0x13a8   : > { %3759 = vmatpush3.msra.mxu1 %v711_v41 }
0x13a9   : > { %3760 = vmatprep.subr.mxu1 %v3978_v25 }
0x13ab   : > { %2387 = vrot.lane.b32.xlu0 %v4444_v2, %s3993_s1 }
0x13ac   : > { %v2692_v42 = vpop.f32.mrf.mxu1 }
0x13ad   : > { %v2693_v47 = vadd.f32 %v3413_v46, %v2692_v42  ;;  %v710_v42 = vld [vmem:[%s4128_s0 + $0x20] sm:$0xff] }
0x13ae   : > { %v3714_v43 = vpop.f32.mrf.mxu1  ;;  %3761 = vmatpush3.msra.mxu1 %v710_v42 }
0x13af   : > { %v4509_v49 = vadd.f32 %v3961_v48, %v2693_v47  ;;  %v709_v43 = vld [vmem:[%s4128_s0 + $0x18] sm:$0xff]  ;;  %3762 = vmatprep.subr.mxu1 %v3978_v25  ;;  %v707_v47 = vld [vmem:[%s4128_s0 + $0x8] sm:$0xff]  ;;  %v706_v48 = vld [vmem:[%s4128_s0] sm:$0xff] }
0x13b0   : > { %3763 = vmatpush3.msra.mxu1 %v709_v43 }
0x13b1   : > { %v2709_v50 = vsel %vm730_vm2, %v4509_v49, 0.0  ;;  %3764 = vmatprep.subr.mxu1 %v3978_v25 }
0x13ca   : > { %2710 = vadd.xlane.f32.xlu0 %v2709_v50 }
0x1417   : > { %v2603_v53 = vpop.permute.xlu1 %2602 }
0x1419   : > { %v2601_v51 = vpop.permute.xlu0 %2600 }
0x141a   : > { %2606 = vst.msk [vmem:[#allocation3 + $0x9] sm:$0xff] %vm1751_vm5, %v2601_v51 }
0x141d   : > { %v2388_v52 = vpop.permute.xlu0 %2387 }
0x141e   : > { %2392 = vst.msk [vmem:[#allocation3 + $0x11] sm:$0x1] %vm1536_vm0, %v2388_v52 }
0x141f   : > { %2607 = vst.msk [vmem:[#allocation3 + $0x11] sm:$0x1] %vm1753_vm1, %v2603_v53 }
0x1421   : > { %v2609_v56 = vld [vmem:[#allocation3 + $0x8] sm:$0xff] }
0x1422   : > { %3716 = vmatmul.mubr.msk.f32.gmra.mxu1 %vm730_vm2, %v2609_v56 }
0x1423   : > { %3718 = vmatprep.mubr.msk.f32.mxu1 %vm3979_vm4, %v3978_v25 }
0x1426   : > { %v2610_v59 = vld [vmem:[#allocation3 + $0x10] sm:$0x3] }
0x1427   : > { %3719 = vmatmul.mubr.msk.f32.gmra.mxu1 %vm730_vm2, %v2610_v59 }
0x1428   : > { %3770 = vmatprep.mubr.msk.f32.mxu1 %vm3979_vm4, %v3978_v25 }
0x1453   : > { %v2711_v61 = vpop.xlane.xlu0 %2710 }
0x1454   : > { %v2718_v54 = vmul.f32 0.03125, %v2711_v61 }
0x1456   : > { %v2721_v4 = vsub.f32 %v4509_v49, %v2718_v54 }
0x1458   : > { %v2724_v14 = vmul.f32 %v2721_v4, %v2721_v4 }
0x145a   : > { %v2727_v15 = vsel %vm730_vm2, %v2724_v14, 0.0 }
0x14e2   : > { %v2697_v62 = vpop.f32.mrf.mxu1 }
0x14e3   : > { %v2698_v63 = vadd.f32 %v3413_v46, %v2697_v62 }
0x14e4   : > { %v3717_v60 = vpop.f32.mrf.mxu1 }
0x14e5   : > { %v4522_v1 = vadd.f32 %v3962_v0, %v2698_v63 }
0x14e7   : > { %v2702_v2 = vpop.f32.mrf.mxu1  ;;  %v2712_v3 = vsel %vm730_vm2, %v4522_v1, 0.0 }
0x14e8   : > { %v2703_v5 = vadd.f32 %v3413_v46, %v2702_v2  ;;  %2713 = vadd.xlane.f32.xlu1 %v2712_v3  ;;  %v708_v46 = vld [vmem:[%s4128_s0 + $0x10] sm:$0xff] }
0x14e9   : > { %v3720_v7 = vpop.f32.mrf.mxu1  ;;  %3765 = vmatpush3.msra.mxu1 %v708_v46 }
0x14ea   : > { %v4527_v10 = vadd.f32 %v3963_v8, %v2703_v5  ;;  %3766 = vmatprep.subr.mxu1 %v3978_v25 }
0x14eb   : > { %3767 = vmatpush3.msra.mxu1 %v707_v47 }
0x14ec   : > { %v2715_v13 = vsel %vm737_vm3, %v4527_v10, 0.0  ;;  %3768 = vmatprep.subr.mxu1 %v3978_v25 }
0x14ed   : > { %2716 = vadd.xlane.f32.xlu0 %v2715_v13  ;;  %3769 = vmatpush3.msra.mxu1 %v706_v48 }
0x14f1   : > { %2728 = vadd.xlane.f32.xlu0 %v2727_v15 }
0x1571   : > { %v2714_v16 = vpop.xlane.xlu1 %2713 }
0x1572   : > { %v2719_v57 = vmul.f32 0.03125, %v2714_v16 }
0x1574   : > { %v4540_v45 = vsub.f32 %v4522_v1, %v2719_v57 }
0x1576   : > { %v2717_v11 = vpop.xlane.xlu0 %2716  ;;  %v2725_v44 = vmul.f32 %v4540_v45, %v4540_v45 }
0x1577   : > { %v2720_v17 = vmul.f32 0.03125, %v2717_v11 }
0x1578   : > { %v2730_v19 = vsel %vm730_vm2, %v2725_v44, 0.0 }
0x1579   : > { %v4546_v20 = vsub.f32 %v4527_v10, %v2720_v17  ;;  %2731 = vadd.xlane.f32.xlu0 %v2730_v19 }
0x157a   : > { %v2729_v21 = vpop.xlane.xlu0 %2728 }
0x157b   : > { %v2736_v22 = vmul.f32 0.03125, %v2729_v21  ;;  %v2726_v23 = vmul.f32 %v4546_v20, %v4546_v20 }
0x157d   : > { %v2739_v24 = vadd.f32 1e-05, %v2736_v22  ;;  %v2733_v26 = vsel %vm737_vm3, %v2726_v23, 0.0 }
0x157e   : > { %2734 = vadd.xlane.f32.xlu1 %v2733_v26 }
0x157f   : > { %3949 = vrsqrt.f32 %v2739_v24 }
0x158c   : > { %v3950_v27 = vpop.eup %3949 }
0x158d   : > { %v2745_v29 = vmul.f32 %v3950_v27, %v2721_v4  ;;  %v3419_v4 = vld [vmem:[%s4830_s27] ss:$0 sm:$0xff]  ;;  %s4833_s27 = sld [smem:[#allocation10_spill]] (!%p3424_p5) }
0x158f   : > { %v2754_v18 = vmul.f32 %v4556_v28, %v2745_v29 }
0x1591   : > { %v2763_v30 = vadd.f32 %v4563_v55, %v2754_v18 }
0x1593   : > { %3730 = vmatmul.mubr.msk.f32.vlgmr.msra.gmra.mxu0 %vm730_vm2, %v2763_v30 }
0x1594   : > { %3732 = vmatprep.mubr.msk.f32.mxu0 %vm3979_vm4, %v3978_v25 }
0x1602   : > { %v2732_v50 = vpop.xlane.xlu0 %2731 }
0x1603   : > { %v2737_v51 = vmul.f32 0.03125, %v2732_v50 }
0x1605   : > { %v2740_v52 = vadd.f32 1e-05, %v2737_v51 }
0x1607   : > { %3951 = vrsqrt.f32 %v2740_v52  ;;  %v2735_v53 = vpop.xlane.xlu1 %2734 }
0x1608   : > { %v2738_v56 = vmul.f32 0.03125, %v2735_v53 }
0x160a   : > { %v2741_v59 = vadd.f32 1e-05, %v2738_v56 }
0x160c   : > { %3953 = vrsqrt.f32 %v2741_v59 }
0x1614   : > { %v3952_v61 = vpop.eup %3951 }
0x1615   : > { %v2746_v62 = vmul.f32 %v3952_v61, %v4540_v45 }
0x1617   : > { %v2755_v63 = vmul.f32 %v4556_v28, %v2746_v62 }
0x1619   : > { %v3954_v54 = vpop.eup %3953  ;;  %v2764_v60 = vadd.f32 %v4563_v55, %v2755_v63 }
0x161a   : > { %v2747_v0 = vmul.f32 %v3954_v54, %v4546_v20 }
0x161b   : > { %3733 = vmatmul.mubr.msk.f32.gmra.mxu0 %vm730_vm2, %v2764_v60 }
0x161c   : > { %3735 = vmatprep.mubr.msk.f32.mxu0 %vm3979_vm4, %v3978_v25  ;;  %v2756_v2 = vmul.f32 %v4556_v28, %v2747_v0 }
0x161e   : > { %v2765_v3 = vadd.f32 %v4563_v55, %v2756_v2 }
0x1620   : > { %3736 = vmatmul.mubr.msk.f32.gmra.mxu0 %vm730_vm2, %v2765_v3 }
0x1653   : > { %v2847_v5 = vpop.f32.mrf.mxu0 }
0x1654   : > { %v2848_v7 = vadd.f32 %v3419_v4, %v2847_v5 }
0x1655   : > { %v3731_v8 = vpop.f32.mrf.mxu0 }
0x1656   : > { %v2864_v13 = vmul.f32 0.044715, %v2848_v7  ;;  %v2861_v58 = vmul.f32 0.5, %v2848_v7 }
0x1658   : > { %v2867_v14 = vmul.f32 %v2864_v13, %v2848_v7 }
0x165a   : > { %v2870_v15 = vmul.f32 %v2867_v14, %v2848_v7 }
0x165c   : > { %v2873_v6 = vadd.f32 %v2870_v15, %v2848_v7 }
0x165e   : > { %v2876_v9 = vmul.f32 0.7978845, %v2873_v6 }
0x1660   : > { %3955 = vtanh.f32 %v2876_v9 }
0x166d   : > { %v3956_v12 = vpop.eup %3955 }
0x166e   : > { %v2882_v16 = vadd.f32 1.0, %v3956_v12 }
0x1670   : > { %v2885_v57 = vmul.f32 %v2882_v16, %v2861_v58 }
0x1672   : > { %3771 = vmatmul.mubr.f32.vlgmr.msra.gmra.mxu1 %v2885_v57 }
0x1673   : > { %3773 = vmatprep.mubr.msk.f32.mxu1 %vm3979_vm4, %v3978_v25 }
0x16db   : > { %v2852_v45 = vpop.f32.mrf.mxu0 }
0x16dc   : > { %v2853_v11 = vadd.f32 %v3419_v4, %v2852_v45 }
0x16dd   : > { %v3734_v44 = vpop.f32.mrf.mxu0 }
0x16de   : > { %v2865_v17 = vmul.f32 0.044715, %v2853_v11  ;;  %v2862_v31 = vmul.f32 0.5, %v2853_v11 }
0x16e0   : > { %v2868_v19 = vmul.f32 %v2865_v17, %v2853_v11  ;;  %v2857_v20 = vpop.f32.mrf.mxu0 }
0x16e1   : > { %v2858_v21 = vadd.f32 %v3419_v4, %v2857_v20 }
0x16e2   : > { %v3737_v22 = vpop.f32.mrf.mxu0  ;;  %v2871_v23 = vmul.f32 %v2868_v19, %v2853_v11 }
0x16e3   : > { %v2866_v24 = vmul.f32 0.044715, %v2858_v21  ;;  %v2863_v35 = vmul.f32 0.5, %v2858_v21 }
0x16e4   : > { %v2874_v26 = vadd.f32 %v2871_v23, %v2853_v11 }
0x16e5   : > { %v2869_v27 = vmul.f32 %v2866_v24, %v2858_v21 }
0x16e6   : > { %v2877_v28 = vmul.f32 0.7978845, %v2874_v26 }
0x16e7   : > { %v2872_v29 = vmul.f32 %v2869_v27, %v2858_v21 }
0x16e8   : > { %3957 = vtanh.f32 %v2877_v28 }
0x16e9   : > { %v2875_v55 = vadd.f32 %v2872_v29, %v2858_v21 }
0x16eb   : > { %v2878_v18 = vmul.f32 0.7978845, %v2875_v55 }
0x16ed   : > { %3959 = vtanh.f32 %v2878_v18 }
0x16f5   : > { %v3958_v30 = vpop.eup %3957 }
0x16f6   : > { %v2883_v32 = vadd.f32 1.0, %v3958_v30 }
0x16f8   : > { %v2886_v33 = vmul.f32 %v2883_v32, %v2862_v31 }
0x16fa   : > { %v3960_v34 = vpop.eup %3959  ;;  %3774 = vmatmul.mubr.f32.gmra.mxu1 %v2886_v33 }
0x16fb   : > { %3776 = vmatprep.mubr.msk.f32.mxu1 %vm3979_vm4, %v3978_v25  ;;  %v2884_v36 = vadd.f32 1.0, %v3960_v34 }
0x16fd   : > { %v2887_v37 = vmul.f32 %v2884_v36, %v2863_v35 }
0x16ff   : > { %3777 = vmatmul.mubr.f32.gmra.mxu1 %v2887_v37 }
0x1732   : > { %v2960_v39 = vpop.f32.mrf.mxu1 }
0x1733   : > { %v2961_v40 = vadd.f32 %v3423_v38, %v2960_v39 }
0x1734   : > { %v3772_v41 = vpop.f32.mrf.mxu1 }
0x1735   : > { %v2974_v42 = vadd.f32 %v2961_v40, %v4509_v49 }
0x1737   : > { %2977 = vst.msk [vmem:[#allocation2] sm:$0xff] %vm730_vm2, %v2974_v42 }
0x17ba   : > { %v2965_v43 = vpop.f32.mrf.mxu1 }
0x17bb   : > { %v2966_v46 = vadd.f32 %v3423_v38, %v2965_v43 }
0x17bc   : > { %v3775_v47 = vpop.f32.mrf.mxu1 }
0x17bd   : > { %v2975_v25 = vadd.f32 %v2966_v46, %v4522_v1 }
0x17bf   : > { %2978 = vst.msk [vmem:[#allocation2 + $0x8] sm:$0xff] %vm730_vm2, %v2975_v25  ;;  %v2970_v48 = vpop.f32.mrf.mxu1 }
0x17c0   : > { %v2971_v50 = vadd.f32 %v3423_v38, %v2970_v48  ;;  %2983 = sbr.rel (%p3424_p5) target bundleno = 6596 (0x19c4), region = 92 }
0x17c1   : > { %v3778_v51 = vpop.f32.mrf.mxu1 }
0x17c2   : > { %v2976_v52 = vadd.f32 %v2971_v50, %v4527_v10 }
0x17c4   : > { %2979 = vst.msk [vmem:[#allocation2 + $0x10] sm:$0x3] %vm737_vm3, %v2976_v52 }
0x17c5   : > { %v4636_v56 = vld [vmem:[#allocation2] sm:$0xff]  ;;  %v3061_v61 = vld [vmem:[%s4831_s19 + $0x78] sm:$0xff]  ;;  %v3995_v62 = vmov 0.0   ;;  %v3060_v63 = vld [vmem:[%s4831_s19 + $0x70] sm:$0xff] }
0x17c6   : > { %v4632_v49 = vld [vmem:[#allocation2 + $0x8] sm:$0xff]  ;;  %v2989_v10 = vsel %vm730_vm2, %v4636_v56, 0.0  ;;  %3820 = vmatprep.subr.mxu1 %v3995_v62  ;;  %3779 = vmatprep.subr.mxu0 %v3995_v62  ;;  %v3058_v60 = vld [vmem:[%s4831_s19 + $0x60] sm:$0xff]  ;;  %v3057_v0 = vld [vmem:[%s4831_s19 + $0x58] sm:$0xff] }
0x17c7   : > { %v2992_v1 = vsel %vm730_vm2, %v4632_v49, 0.0  ;;  %3836 = vmatpush3.xpose.msk.msra.mxu1 %vm730_vm2, %v3061_v61  ;;  %3780 = vmatpush3.xpose.msk.msra.mxu0 %vm730_vm2, %v3061_v61  ;;  %v3059_v54 = vld [vmem:[%s4831_s19 + $0x68] sm:$0xff]  ;;  %v3056_v2 = vld [vmem:[%s4831_s19 + $0x50] sm:$0xff]  ;;  %v3054_v4 = vld [vmem:[%s4831_s19 + $0x40] sm:$0xff] }
0x17c8   : > { %2993 = vadd.xlane.f32.xlu0 %v2992_v1  ;;  %3821 = vmatprep.subr.mxu1 %v3995_v62  ;;  %v3055_v3 = vld [vmem:[%s4831_s19 + $0x48] sm:$0xff]  ;;  %v3053_v5 = vld [vmem:[%s4831_s19 + $0x38] sm:$0xff]  ;;  %v3052_v7 = vld [vmem:[%s4831_s19 + $0x30] sm:$0xff] }
0x17c9   : > { %3781 = vmatprep.subr.mxu0 %v3995_v62  ;;  %v3051_v20 = vld [vmem:[%s4831_s19 + $0x28] sm:$0xff]  ;;  %v3050_v21 = vld [vmem:[%s4831_s19 + $0x20] sm:$0xff]  ;;  %v3049_v22 = vld [vmem:[%s4831_s19 + $0x18] sm:$0xff] }
0x17ca   : > { %v3048_v23 = vld [vmem:[%s4831_s19 + $0x10] sm:$0xff]  ;;  %v3047_v24 = vld [vmem:[%s4831_s19 + $0x8] sm:$0xff]  ;;  %v3046_v26 = vld [vmem:[%s4831_s19] sm:$0xff] }
0x17cb   : > { %v4634_v53 = vld [vmem:[#allocation2 + $0x10] sm:$0x3]  ;;  %3837 = vmatpush3.xpose.msk.msra.mxu1 %vm730_vm2, %v3060_v63  ;;  %3782 = vmatpush3.xpose.msk.msra.mxu0 %vm730_vm2, %v3060_v63  ;;  %v3425_v35 = vld [vmem:[%s4832_s24] ss:$0 sm:$0xff] }
0x17cc   : > { %v2995_v59 = vsel %vm737_vm3, %v4634_v53, 0.0  ;;  %2990 = vadd.xlane.f32.xlu0 %v2989_v10  ;;  %3822 = vmatprep.subr.mxu1 %v3995_v62  ;;  %v3426_v37 = vld [vmem:[%s4833_s27] ss:$0 sm:$0xff] }
0x17cd   : > { %2996 = vadd.xlane.f32.xlu1 %v2995_v59  ;;  %3783 = vmatprep.subr.mxu0 %v3995_v62 }
0x17cf   : > { %3838 = vmatpush3.xpose.msk.msra.mxu1 %vm730_vm2, %v3059_v54  ;;  %3784 = vmatpush3.xpose.msk.msra.mxu0 %vm730_vm2, %v3059_v54 }
0x17d0   : > { %3823 = vmatprep.subr.mxu1 %v3995_v62  ;;  %3785 = vmatprep.subr.mxu0 %v3995_v62 }
0x17d3   : > { %3839 = vmatpush3.xpose.msk.msra.mxu1 %vm730_vm2, %v3058_v60  ;;  %3786 = vmatpush3.xpose.msk.msra.mxu0 %vm730_vm2, %v3058_v60 }
0x17d4   : > { %3824 = vmatprep.subr.mxu1 %v3995_v62  ;;  %3787 = vmatprep.subr.mxu0 %v3995_v62 }
0x17d7   : > { %3840 = vmatpush3.xpose.msk.msra.mxu1 %vm730_vm2, %v3057_v0  ;;  %3788 = vmatpush3.xpose.msk.msra.mxu0 %vm730_vm2, %v3057_v0 }
0x17d8   : > { %3825 = vmatprep.subr.mxu1 %v3995_v62  ;;  %3789 = vmatprep.subr.mxu0 %v3995_v62 }
0x17db   : > { %3841 = vmatpush3.xpose.msk.msra.mxu1 %vm730_vm2, %v3056_v2  ;;  %3790 = vmatpush3.xpose.msk.msra.mxu0 %vm730_vm2, %v3056_v2 }
0x17dc   : > { %3826 = vmatprep.subr.mxu1 %v3995_v62  ;;  %3791 = vmatprep.subr.mxu0 %v3995_v62 }
0x17df   : > { %3842 = vmatpush3.xpose.msk.msra.mxu1 %vm730_vm2, %v3055_v3  ;;  %3792 = vmatpush3.xpose.msk.msra.mxu0 %vm730_vm2, %v3055_v3 }
0x17e0   : > { %3827 = vmatprep.subr.mxu1 %v3995_v62  ;;  %3793 = vmatprep.subr.mxu0 %v3995_v62 }
0x17e3   : > { %3843 = vmatpush3.xpose.msk.msra.mxu1 %vm730_vm2, %v3054_v4  ;;  %3794 = vmatpush3.xpose.msk.msra.mxu0 %vm730_vm2, %v3054_v4 }
0x17e4   : > { %3828 = vmatprep.subr.mxu1 %v3995_v62  ;;  %3795 = vmatprep.subr.mxu0 %v3995_v62 }
0x17e7   : > { %3844 = vmatpush3.xpose.msk.msra.mxu1 %vm730_vm2, %v3053_v5  ;;  %3796 = vmatpush3.xpose.msk.msra.mxu0 %vm730_vm2, %v3053_v5 }
0x17e8   : > { %3829 = vmatprep.subr.mxu1 %v3995_v62  ;;  %3797 = vmatprep.subr.mxu0 %v3995_v62 }
0x17eb   : > { %3845 = vmatpush3.xpose.msk.msra.mxu1 %vm730_vm2, %v3052_v7  ;;  %3798 = vmatpush3.xpose.msk.msra.mxu0 %vm730_vm2, %v3052_v7 }
0x17ec   : > { %3830 = vmatprep.subr.mxu1 %v3995_v62  ;;  %3799 = vmatprep.subr.mxu0 %v3995_v62 }
0x17ef   : > { %3846 = vmatpush3.xpose.msk.msra.mxu1 %vm730_vm2, %v3051_v20  ;;  %3800 = vmatpush3.xpose.msk.msra.mxu0 %vm730_vm2, %v3051_v20 }
0x17f0   : > { %3831 = vmatprep.subr.mxu1 %v3995_v62  ;;  %3801 = vmatprep.subr.mxu0 %v3995_v62 }
0x17f3   : > { %3847 = vmatpush3.xpose.msk.msra.mxu1 %vm730_vm2, %v3050_v21  ;;  %3802 = vmatpush3.xpose.msk.msra.mxu0 %vm730_vm2, %v3050_v21 }
0x17f4   : > { %3832 = vmatprep.subr.mxu1 %v3995_v62  ;;  %3803 = vmatprep.subr.mxu0 %v3995_v62 }
0x17f7   : > { %3848 = vmatpush3.xpose.msk.msra.mxu1 %vm730_vm2, %v3049_v22  ;;  %3804 = vmatpush3.xpose.msk.msra.mxu0 %vm730_vm2, %v3049_v22 }
0x17f8   : > { %3833 = vmatprep.subr.mxu1 %v3995_v62  ;;  %3805 = vmatprep.subr.mxu0 %v3995_v62 }
0x17fb   : > { %3849 = vmatpush3.xpose.msk.msra.mxu1 %vm730_vm2, %v3048_v23  ;;  %3806 = vmatpush3.xpose.msk.msra.mxu0 %vm730_vm2, %v3048_v23 }
0x17fc   : > { %3834 = vmatprep.subr.mxu1 %v3995_v62  ;;  %3807 = vmatprep.subr.mxu0 %v3995_v62 }
0x17ff   : > { %3850 = vmatpush3.xpose.msk.msra.mxu1 %vm730_vm2, %v3047_v24  ;;  %3808 = vmatpush3.xpose.msk.msra.mxu0 %vm730_vm2, %v3047_v24 }
0x1800   : > { %3835 = vmatprep.subr.mxu1 %v3995_v62  ;;  %3809 = vmatprep.subr.mxu0 %v3995_v62 }
0x1803   : > { %3851 = vmatpush3.xpose.msk.msra.mxu1 %vm730_vm2, %v3046_v26  ;;  %3810 = vmatpush3.xpose.msk.msra.mxu0 %vm730_vm2, %v3046_v26 }
0x1851   : > { %v2994_v8 = vpop.xlane.xlu0 %2993 }
0x1852   : > { %v2999_v14 = vmul.f32 0.03125, %v2994_v8 }
0x1854   : > { %v3002_v6 = vsub.f32 %v4632_v49, %v2999_v14 }
0x1855   : > { %v2991_v12 = vpop.xlane.xlu0 %2990 }
0x1856   : > { %v2997_v13 = vpop.xlane.xlu1 %2996  ;;  %v2998_v58 = vmul.f32 0.03125, %v2991_v12  ;;  %v3005_v16 = vmul.f32 %v3002_v6, %v3002_v6 }
0x1857   : > { %v3000_v15 = vmul.f32 0.03125, %v2997_v13 }
0x1858   : > { %v3001_v45 = vsub.f32 %v4636_v56, %v2998_v58  ;;  %v3010_v11 = vsel %vm730_vm2, %v3005_v16, 0.0 }
0x1859   : > { %v4718_v9 = vsub.f32 %v4634_v53, %v3000_v15  ;;  %3011 = vadd.xlane.f32.xlu1 %v3010_v11 }
0x185a   : > { %v3004_v17 = vmul.f32 %v3001_v45, %v3001_v45 }
0x185b   : > { %v3006_v57 = vmul.f32 %v4718_v9, %v4718_v9 }
0x185c   : > { %v3007_v19 = vsel %vm730_vm2, %v3004_v17, 0.0 }
0x185d   : > { %v3013_v44 = vsel %vm737_vm3, %v3006_v57, 0.0  ;;  %3008 = vadd.xlane.f32.xlu0 %v3007_v19  ;;  %vm3996_vm3 = vmmov 0  }
0x185e   : > { %3014 = vadd.xlane.f32.xlu1 %v3013_v44  ;;  %3814 = vmatprep.mubr.msk.f32.mxu1 %vm3996_vm3, %v3995_v62 }
0x185f   : > { %3811 = vmatprep.mubr.msk.f32.mxu0 %vm3996_vm3, %v3995_v62 }
0x18e2   : > { %v3012_v27 = vpop.xlane.xlu1 %3011 }
0x18e3   : > { %v3017_v28 = vmul.f32 0.03125, %v3012_v27 }
0x18e5   : > { %v3020_v29 = vadd.f32 1e-05, %v3017_v28 }
0x18e6   : > { %v3009_v18 = vpop.xlane.xlu0 %3008 }
0x18e7   : > { %v3015_v55 = vpop.xlane.xlu1 %3014  ;;  %3964 = vrsqrt.f32 %v3020_v29  ;;  %v3016_v31 = vmul.f32 0.03125, %v3009_v18 }
0x18e8   : > { %v3018_v30 = vmul.f32 0.03125, %v3015_v55 }
0x18e9   : > { %v3019_v33 = vadd.f32 1e-05, %v3016_v31 }
0x18ea   : > { %v3021_v32 = vadd.f32 1e-05, %v3018_v30 }
0x18ec   : > { %3966 = vrsqrt.f32 %v3021_v32 }
0x18ed   : > { %3968 = vrsqrt.f32 %v3019_v33 }
0x18f4   : > { %v3965_v34 = vpop.eup %3964 }
0x18f5   : > { %v3026_v36 = vmul.f32 %v3965_v34, %v3002_v6 }
0x18f7   : > { %v3035_v38 = vmul.f32 %v3425_v35, %v3026_v36 }
0x18f9   : > { %v3967_v39 = vpop.eup %3966  ;;  %v3044_v41 = vadd.f32 %v3426_v37, %v3035_v38 }
0x18fa   : > { %v3969_v40 = vpop.eup %3968  ;;  %v3027_v42 = vmul.f32 %v3967_v39, %v4718_v9 }
0x18fb   : > { %v3025_v43 = vmul.f32 %v3969_v40, %v3001_v45  ;;  %3815 = vmatmul.mubr.msk.f32.vlgmr.msra.gmra.mxu1 %vm730_vm2, %v3044_v41 }
0x18fc   : > { %v3036_v46 = vmul.f32 %v3425_v35, %v3027_v42  ;;  %3817 = vmatprep.mubr.msk.f32.mxu1 %vm3996_vm3, %v3995_v62 }
0x18fd   : > { %v3034_v47 = vmul.f32 %v3425_v35, %v3025_v43 }
0x18fe   : > { %v3045_v25 = vadd.f32 %v3426_v37, %v3036_v46 }
0x18ff   : > { %v3043_v48 = vadd.f32 %v3426_v37, %v3034_v47 }
0x1900   : > { %3818 = vmatmul.mubr.msk.f32.gmra.mxu1 %vm730_vm2, %v3045_v25 }
0x1901   : > { %3812 = vmatmul.mubr.msk.f32.vlgmr.msra.gmra.mxu0 %vm730_vm2, %v3043_v48 }
0x19bb   : > { %v3190_v50 = vpop.f32.mrf.mxu1 }
0x19bc   : > { %3200 = vst [vmem:[%s4834_s22 + $0x8] sm:$0xff] %v3190_v50 }
0x19bd   : > { %v3816_v51 = vpop.f32.mrf.mxu1 }
0x19c0   : > { %v3195_v52 = vpop.f32.mrf.mxu1 }
0x19c1   : > { %v3185_v49 = vpop.f32.mrf.mxu0  ;;  %3201 = vst [vmem:[%s4834_s22 + $0x10] sm:$0x3] %v3195_v52 }
0x19c2   : > { %3199 = vst [vmem:[%s4834_s22] sm:$0xff] %v3185_v49  ;;  %v3819_v53 = vpop.f32.mrf.mxu1 }
0x19c3   : > { %v3813_v56 = vpop.f32.mrf.mxu0 }
0x19c4 PF: > { %s4835_s14 = sld [smem:[#allocation4_spill]] }
0x19ca   : > { %s26_s21 = sadd.s32 1, %s4835_s14  }
0x19cb   : > { %p23_p6 = scmp.ge.s32.totalorder %s26_s21, 4  }
0x19cd   :  { %25 = sbr.rel (!%p23_p6) target bundleno = 9 (0x9), region = 151 }

</bundles_post_ra>
